<compile_context>
chip_gen: v7x
topology: tpu7x:2x2x1
jax: 0.10.0
libtpu: 0.0.40
codegen_flags: <defaults>
</compile_context>

<pallas_src>
import functools

import jax
import jax.numpy as jnp
from jax.experimental import pallas as pl
from jax.experimental.pallas import tpu as pltpu

NEG_INF = -1e30


# ----------------------------------------------------------------------------
# kernels
# ----------------------------------------------------------------------------
def pre_kernel(x_ref, w0_ref, b0_ref, w1_ref, a1_ref, hp1_ref, al1_ref):
    """Node-local: input_proj(+folded bn_input)+ReLU, conv1 linear, attn logits."""
    h0 = jnp.dot(x_ref[...], w0_ref[...], preferred_element_type=jnp.float32)
    h0 = jnp.maximum(h0 + b0_ref[...], 0.0)
    hp1 = jnp.dot(h0, w1_ref[...], preferred_element_type=jnp.float32)       # [T, 2H]
    # per-head (src0, src1, dst0, dst1) logits in one small matmul -> [T, 4]
    al1_ref[...] = jnp.dot(hp1, a1_ref[...], preferred_element_type=jnp.float32)
    hp1_ref[...] = hp1.astype(jnp.bfloat16)


def _masked_attention(mask, a_dst, a_srcT, values):
    """One GAT head for a row tile of targets over all sources.

    mask:   [T, N] bool   a_dst: [T, 1] f32   a_srcT: [1, N] f32
    values: [N, D] bf16   ->  [T, D] f32
    """
    e = a_dst + a_srcT                                   # e[i, j] = dst_i + src_j
    e = jnp.where(e >= 0.0, e, 0.2 * e)                  # LeakyReLU(0.2)
    e = jnp.where(mask, e, NEG_INF)
    m = jnp.max(e, axis=-1, keepdims=True)               # finite (self-loops)
    p = jnp.exp(e - m)                                   # masked entries -> 0.0
    s = jnp.sum(p, axis=-1, keepdims=True)
    num = jnp.dot(p.astype(jnp.bfloat16), values,
                  preferred_element_type=jnp.float32)    # bf16 MXU, f32 acc
    return num * pl.reciprocal(s, approx=True)           # normalize after matmul


def gat1_kernel(hidden, adj_ref, hp1_ref, al1_ref, asrcT1_ref, g1_ref, sh1_ref,
                w2_ref, a2_ref, hp2_ref, al2_ref):
    """conv1 (heads=2) aggregation + bn1(+bias1) + ReLU + conv2 linear + logits."""
    H = hidden
    mask = adj_ref[...] > 0.0                            # [T, N]
    hp1 = hp1_ref[...]                                   # [N, 2H] bf16
    al1 = al1_ref[...]                                   # [T, 4]
    asrcT1 = asrcT1_ref[...]                             # [2, N]
    outs = []
    for hd in range(2):                                  # static head loop
        outs.append(_masked_attention(mask,
                                      al1[:, 2 + hd:3 + hd],
                                      asrcT1[hd:hd + 1, :],
                                      hp1[:, hd * H:(hd + 1) * H]))
    agg = jnp.concatenate(outs, axis=-1)                 # [T, 2H]
    h1 = jnp.maximum(agg * g1_ref[...] + sh1_ref[...], 0.0)
    hp2 = jnp.dot(h1, w2_ref[...], preferred_element_type=jnp.float32)       # [T, H]
    al2_ref[...] = jnp.dot(hp2, a2_ref[...], preferred_element_type=jnp.float32)
    hp2_ref[...] = hp2.astype(jnp.bfloat16)


def gat2_kernel(adj_ref, hp2_ref, al2_ref, asrcT2_ref, g2_ref, sh2_ref,
                w3_ref, b3_ref, w4_ref, b4_ref, out_ref):
    """conv2 (heads=1) + bn2(+bias2) + ReLU + fc1(+folded bn_fc1) + ReLU + fc2."""
    mask = adj_ref[...] > 0.0
    al2 = al2_ref[...]                                   # [T, 2] (src, dst)
    h2 = _masked_attention(mask, al2[:, 1:2], asrcT2_ref[...], hp2_ref[...])
    h2 = jnp.maximum(h2 * g2_ref[...] + sh2_ref[...], 0.0)
    h3 = jnp.dot(h2, w3_ref[...], preferred_element_type=jnp.float32) + b3_ref[...]
    h3 = jnp.maximum(h3, 0.0)
    # dropout: identity in eval mode
    out_ref[...] = jnp.dot(h3, w4_ref[...],
                           preferred_element_type=jnp.float32) + b4_ref[...]


# ----------------------------------------------------------------------------
# wrapper
# ----------------------------------------------------------------------------
@functools.partial(jax.jit, static_argnames=("hidden", "tile"))
def improved_gnn_forward(x, edge_index, fp, hidden, tile=128):
    """x: [N, F] f32; edge_index: [2, E] int32 (row 0 = src, row 1 = dst)."""
    n, f = x.shape
    H = hidden
    assert n % tile == 0, "demo requires N to be a multiple of the row tile"
    nt = n // tile

    # Dense adjacency adj[target, source] via one-hot matmul (no serialized
    # scatter), self-loops added, stored bf16 (halves the O(N^2) DMA).
    # TODO(synk): for large sparse graphs, a CSR/edge-list kernel with scalar
    # prefetch would avoid the dense O(N^2) adjacency entirely.
    src, dst = edge_index[0], edge_index[1]
    src_oh = jax.nn.one_hot(src, n, dtype=jnp.float32)
    dst_oh = jax.nn.one_hot(dst, n, dtype=jnp.float32)
    adj = jnp.minimum(dst_oh.T @ src_oh + jnp.eye(n, dtype=jnp.float32), 1.0)
    adj = adj.astype(jnp.bfloat16)

    cparams = pltpu.CompilerParams(
        dimension_semantics=("parallel",),
        vmem_limit_bytes=32 * 1024 * 1024,
    )
    row = lambda i: (i, 0)     # row-tiled blocks
    const = lambda i: (0, 0)   # resident (full-array) blocks

    # stage 1: node-local pre-compute
    hp1, al1 = pl.pallas_call(
        pre_kernel,
        grid=(nt,),
        in_specs=[pl.BlockSpec((tile, f), row),
                  pl.BlockSpec((f, H), const),
                  pl.BlockSpec((1, H), const),
                  pl.BlockSpec((H, 2 * H), const),
                  pl.BlockSpec((2 * H, 4), const)],
        out_specs=(pl.BlockSpec((tile, 2 * H), row),
                   pl.BlockSpec((tile, 4), row)),
        out_shape=(jax.ShapeDtypeStruct((n, 2 * H), jnp.bfloat16),
                   jax.ShapeDtypeStruct((n, 4), jnp.float32)),
        compiler_params=cparams,
    )(x, fp["w0f"], fp["b0f"], fp["w1"], fp["A1"])

    # source-side logits transposed ONCE (hoisted out of the per-tile loop)
    asrcT1 = al1[:, 0:2].T                               # [2, N]

    # stage 2: GAT conv1 (2 heads) + bn1 + ReLU, conv2 linear + logits
    hp2, al2 = pl.pallas_call(
        functools.partial(gat1_kernel, H),
        grid=(nt,),
        in_specs=[pl.BlockSpec((tile, n), row),
                  pl.BlockSpec((n, 2 * H), const),
                  pl.BlockSpec((tile, 4), row),
                  pl.BlockSpec((2, n), const),
                  pl.BlockSpec((1, 2 * H), const),
                  pl.BlockSpec((1, 2 * H), const),
                  pl.BlockSpec((2 * H, H), const),
                  pl.BlockSpec((H, 2), const)],
        out_specs=(pl.BlockSpec((tile, H), row),
                   pl.BlockSpec((tile, 2), row)),
        out_shape=(jax.ShapeDtypeStruct((n, H), jnp.bfloat16),
                   jax.ShapeDtypeStruct((n, 2), jnp.float32)),
        compiler_params=cparams,
    )(adj, hp1, al1, asrcT1, fp["g1"], fp["sh1"], fp["w2"], fp["A2"])

    asrcT2 = al2[:, 0:1].T                               # [1, N]

    # stage 3: GAT conv2 (1 head) + bn2 + ReLU + fc1 + ReLU + fc2 (lane-dense)
    out_pad = pl.pallas_call(
        gat2_kernel,
        grid=(nt,),
        in_specs=[pl.BlockSpec((tile, n), row),
                  pl.BlockSpec((n, H), const),
                  pl.BlockSpec((tile, 2), row),
                  pl.BlockSpec((1, n), const),
                  pl.BlockSpec((1, H), const),
                  pl.BlockSpec((1, H), const),
                  pl.BlockSpec((H, H // 2), const),
                  pl.BlockSpec((1, H // 2), const),
                  pl.BlockSpec((H // 2, 128), const),
                  pl.BlockSpec((1, 128), const)],
        out_specs=pl.BlockSpec((tile, 128), row),
        out_shape=jax.ShapeDtypeStruct((n, 128), jnp.float32),
        compiler_params=cparams,
    )(adj, hp2, al2, asrcT2, fp["g2"], fp["sh2"], fp["w3f"], fp["b3f"],
      fp["w4p"], fp["b4p"])

    return out_pad[:, 0]                                 # matches x.squeeze()


# ----------------------------------------------------------------------------
# parameters
# ----------------------------------------------------------------------------
def init_raw_params(key, input_dim, hidden):
    H = hidden
    ks = iter(jax.random.split(key, 24))

    def lin_w(fi, fo):
        lim = 1.0 / jnp.sqrt(jnp.float32(fi))
        return jax.random.uniform(next(ks), (fi, fo), jnp.float32, -lim, lim)

    def vec(d, scale=0.1):
        return scale * jax.random.normal(next(ks), (1, d), jnp.float32)

    p = {}
    p["w0"], p["b0"] = lin_w(input_dim, H), vec(H)
    p["gamma0"], p["beta0"] = 1.0 + vec(H), vec(H)
    p["w1"] = lin_w(H, 2 * H)
    p["att_src1"] = 0.1 * jax.random.normal(next(ks), (2, H), jnp.float32)
    p["att_dst1"] = 0.1 * jax.random.normal(next(ks), (2, H), jnp.float32)
    p["bias1"] = vec(2 * H)
    p["gamma1"], p["beta1"] = 1.0 + vec(2 * H), vec(2 * H)
    p["w2"] = lin_w(2 * H, H)
    p["att_src2"] = 0.1 * jax.random.normal(next(ks), (1, H), jnp.float32)
    p["att_dst2"] = 0.1 * jax.random.normal(next(ks), (1, H), jnp.float32)
    p["bias2"] = vec(H)
    p["gamma2"], p["beta2"] = 1.0 + vec(H), vec(H)
    p["w3"], p["b3"] = lin_w(H, H // 2), vec(H // 2)
    p["gamma3"], p["beta3"] = 1.0 + vec(H // 2), vec(H // 2)
    p["w4"], p["b4"] = lin_w(H // 2, 1), vec(1)
    return p


def fold_params(p, hidden):
    """Fold eval-mode BN (running_mean=0, running_var=1) and GAT biases."""
    H = hidden
    eps = 1e-5

    def bn(gamma, beta):
        return gamma / jnp.sqrt(1.0 + eps), beta

    s0, t0 = bn(p["gamma0"], p["beta0"])
    s1, t1 = bn(p["gamma1"], p["beta1"])
    s2, t2 = bn(p["gamma2"], p["beta2"])
    s3, t3 = bn(p["gamma3"], p["beta3"])

    # input_proj + bn_input folded into one affine
    w0f = p["w0"] * s0
    b0f = p["b0"] * s0 + t0
    # GATConv biases folded into the following BN shift
    sh1 = p["bias1"] * s1 + t1
    sh2 = p["bias2"] * s2 + t2
    # fc1 + bn_fc1 folded
    w3f = p["w3"] * s3
    b3f = p["b3"] * s3 + t3

    # attention projection matrices: hp @ A -> per-head (src..., dst...) logits
    A1 = jnp.zeros((2 * H, 4), jnp.float32)
    A1 = A1.at[:H, 0].set(p["att_src1"][0]).at[H:, 1].set(p["att_src1"][1])
    A1 = A1.at[:H, 2].set(p["att_dst1"][0]).at[H:, 3].set(p["att_dst1"][1])
    A2 = jnp.stack([p["att_src2"][0], p["att_dst2"][0]], axis=1)      # [H, 2]

    # lane-dense fc2: zero-pad to 128 output lanes, wrapper slices column 0
    w4p = jnp.pad(p["w4"], ((0, 0), (0, 127)))
    b4p = jnp.pad(p["b4"], ((0, 0), (0, 127)))

    return dict(w0f=w0f, b0f=b0f, w1=p["w1"], A1=A1, g1=s1, sh1=sh1,
                w2=p["w2"], A2=A2, g2=s2, sh2=sh2, w3f=w3f, b3f=b3f,
                w4p=w4p, b4p=b4p)


# ----------------------------------------------------------------------------
if __name__ == "__main__":
    N, INPUT_DIM, HIDDEN, TILE = 256, 16, 128, 128

    key = jax.random.PRNGKey(0)
    k_x, k_p = jax.random.split(key)
    x = jax.random.normal(k_x, (N, INPUT_DIM), jnp.float32)

    # deterministic graph: bidirectional ring + stride-5 chords (E = 4N edges)
    i = jnp.arange(N, dtype=jnp.int32)
    src = jnp.concatenate([i, (i + 1) % N, i, (i + 5) % N])
    dst = jnp.concatenate([(i + 1) % N, i, (i + 5) % N, i])
    edge_index = jnp.stack([src, dst], axis=0).astype(jnp.int32)

    raw = init_raw_params(k_p, INPUT_DIM, HIDDEN)
    fp = fold_params(raw, HIDDEN)

    out = improved_gnn_forward(x, edge_index, fp, HIDDEN, tile=TILE)
    out = jax.block_until_ready(out)

    assert out.shape == (N,), out.shape
    assert bool(jnp.all(jnp.isfinite(out)))
    print("KERNEL_OK")
</pallas_src>

<mosaic_0001>
module attributes {stable_mosaic.version = 11 : i64} {
  func.func @pre_kernel(%arg0: i32, %arg1: memref<128x16xf32, #tpu.memory_space<vmem>>, %arg2: memref<16x128xf32, #tpu.memory_space<vmem>>, %arg3: memref<1x128xf32, #tpu.memory_space<vmem>>, %arg4: memref<128x256xf32, #tpu.memory_space<vmem>>, %arg5: memref<256x4xf32, #tpu.memory_space<vmem>>, %arg6: memref<128x256xbf16, #tpu.memory_space<vmem>>, %arg7: memref<128x4xf32, #tpu.memory_space<vmem>>) attributes {dimension_semantics = [#tpu.dimension_semantics<parallel>], iteration_bounds = array<i64: 2>, scalar_prefetch = 0 : i64, scratch_operands = 0 : i64, tpu.core_type = #tpu.core_type<tc>, window_params = [{transform_indices = @transform_0, window_bounds = array<i64: 128, 16>}, {pipeline_mode = #tpu.pipeline_mode<synchronous>, transform_indices = @transform_1, window_bounds = array<i64: 16, 128>}, {pipeline_mode = #tpu.pipeline_mode<synchronous>, transform_indices = @transform_2, window_bounds = array<i64: 1, 128>}, {pipeline_mode = #tpu.pipeline_mode<synchronous>, transform_indices = @transform_3, window_bounds = array<i64: 128, 256>}, {pipeline_mode = #tpu.pipeline_mode<synchronous>, transform_indices = @transform_4, window_bounds = array<i64: 256, 4>}, {transform_indices = @transform_5, window_bounds = array<i64: 128, 256>}, {transform_indices = @transform_6, window_bounds = array<i64: 128, 4>}]} {
    %c0 = arith.constant 0 : index
    %c0_0 = arith.constant 0 : index
    %0 = vector.load %arg1[%c0, %c0_0] : memref<128x16xf32, #tpu.memory_space<vmem>>, vector<128x16xf32>
    %c0_1 = arith.constant 0 : index
    %c0_2 = arith.constant 0 : index
    %1 = vector.load %arg2[%c0_1, %c0_2] : memref<16x128xf32, #tpu.memory_space<vmem>>, vector<16x128xf32>
    %cst = arith.constant dense<0.000000e+00> : vector<128x128xf32>
    %2 = tpu.matmul %0, %1, %cst {dimension_numbers = #tpu.dot_dimension_numbers<[1], [0], [0], [1], [0, 0, 1, 1], [], []>} : vector<128x16xf32>, vector<16x128xf32>, vector<128x128xf32> -> vector<128x128xf32>
    %c0_3 = arith.constant 0 : index
    %c0_4 = arith.constant 0 : index
    %3 = vector.load %arg3[%c0_3, %c0_4] : memref<1x128xf32, #tpu.memory_space<vmem>>, vector<1x128xf32>
    %4 = vector.broadcast %3 : vector<1x128xf32> to vector<128x128xf32>
    %5 = arith.addf %2, %4 : vector<128x128xf32>
    %cst_5 = arith.constant 0.000000e+00 : f32
    %6 = vector.broadcast %cst_5 : f32 to vector<128x128xf32>
    %7 = arith.maximumf %5, %6 : vector<128x128xf32>
    %c0_6 = arith.constant 0 : index
    %c0_7 = arith.constant 0 : index
    %8 = vector.load %arg4[%c0_6, %c0_7] : memref<128x256xf32, #tpu.memory_space<vmem>>, vector<128x256xf32>
    %cst_8 = arith.constant dense<0.000000e+00> : vector<128x256xf32>
    %9 = tpu.matmul %7, %8, %cst_8 {dimension_numbers = #tpu.dot_dimension_numbers<[1], [0], [0], [1], [0, 0, 1, 1], [], []>} : vector<128x128xf32>, vector<128x256xf32>, vector<128x256xf32> -> vector<128x256xf32>
    %c0_9 = arith.constant 0 : index
    %c0_10 = arith.constant 0 : index
    %10 = vector.load %arg5[%c0_9, %c0_10] : memref<256x4xf32, #tpu.memory_space<vmem>>, vector<256x4xf32>
    %cst_11 = arith.constant dense<0.000000e+00> : vector<128x4xf32>
    %11 = tpu.matmul %9, %10, %cst_11 {dimension_numbers = #tpu.dot_dimension_numbers<[1], [0], [0], [1], [0, 0, 1, 1], [], []>} : vector<128x256xf32>, vector<256x4xf32>, vector<128x4xf32> -> vector<128x4xf32>
    %c0_12 = arith.constant 0 : index
    %c0_13 = arith.constant 0 : index
    %12 = vector.load %arg7[%c0_12, %c0_13] : memref<128x4xf32, #tpu.memory_space<vmem>>, vector<128x4xf32>
    tpu.vector_store %arg7[%c0_12, %c0_13], %11 {strides = array<i32>} : memref<128x4xf32, #tpu.memory_space<vmem>>, vector<128x4xf32>,
    %13 = arith.truncf %9 : vector<128x256xf32> to vector<128x256xbf16>
    %c0_14 = arith.constant 0 : index
    %c0_15 = arith.constant 0 : index
    %14 = vector.load %arg6[%c0_14, %c0_15] : memref<128x256xbf16, #tpu.memory_space<vmem>>, vector<128x256xbf16>
    tpu.vector_store %arg6[%c0_14, %c0_15], %13 {strides = array<i32>} : memref<128x256xbf16, #tpu.memory_space<vmem>>, vector<128x256xbf16>,
    return
  }
  func.func @transform_0(%arg0: i32) -> (i32, i32) {
    %c0_i32 = arith.constant 0 : i32
    %c0_i32_0 = arith.constant 0 : i32
    return %arg0, %c0_i32 : i32, i32
  }
  func.func @transform_1(%arg0: i32) -> (i32, i32) {
    %c0_i32 = arith.constant 0 : i32
    %c0_i32_0 = arith.constant 0 : i32
    %c0_i32_1 = arith.constant 0 : i32
    return %c0_i32, %c0_i32_0 : i32, i32
  }
  func.func @transform_2(%arg0: i32) -> (i32, i32) {
    %c0_i32 = arith.constant 0 : i32
    %c0_i32_0 = arith.constant 0 : i32
    %c0_i32_1 = arith.constant 0 : i32
    return %c0_i32, %c0_i32_0 : i32, i32
  }
  func.func @transform_3(%arg0: i32) -> (i32, i32) {
    %c0_i32 = arith.constant 0 : i32
    %c0_i32_0 = arith.constant 0 : i32
    %c0_i32_1 = arith.constant 0 : i32
    return %c0_i32, %c0_i32_0 : i32, i32
  }
  func.func @transform_4(%arg0: i32) -> (i32, i32) {
    %c0_i32 = arith.constant 0 : i32
    %c0_i32_0 = arith.constant 0 : i32
    %c0_i32_1 = arith.constant 0 : i32
    return %c0_i32, %c0_i32_0 : i32, i32
  }
  func.func @transform_5(%arg0: i32) -> (i32, i32) {
    %c0_i32 = arith.constant 0 : i32
    %c0_i32_0 = arith.constant 0 : i32
    return %arg0, %c0_i32 : i32, i32
  }
  func.func @transform_6(%arg0: i32) -> (i32, i32) {
    %c0_i32 = arith.constant 0 : i32
    %c0_i32_0 = arith.constant 0 : i32
    return %arg0, %c0_i32 : i32, i32
  }
}

module attributes {stable_mosaic.version = 11 : i64} {
  func.func @gat1_kernel(%arg0: i32, %arg1: memref<128x256xbf16, #tpu.memory_space<vmem>>, %arg2: memref<256x256xbf16, #tpu.memory_space<vmem>>, %arg3: memref<128x4xf32, #tpu.memory_space<vmem>>, %arg4: memref<2x256xf32, #tpu.memory_space<vmem>>, %arg5: memref<1x256xf32, #tpu.memory_space<vmem>>, %arg6: memref<1x256xf32, #tpu.memory_space<vmem>>, %arg7: memref<256x128xf32, #tpu.memory_space<vmem>>, %arg8: memref<128x2xf32, #tpu.memory_space<vmem>>, %arg9: memref<128x128xbf16, #tpu.memory_space<vmem>>, %arg10: memref<128x2xf32, #tpu.memory_space<vmem>>) attributes {dimension_semantics = [#tpu.dimension_semantics<parallel>], iteration_bounds = array<i64: 2>, scalar_prefetch = 0 : i64, scratch_operands = 0 : i64, tpu.core_type = #tpu.core_type<tc>, window_params = [{transform_indices = @transform_0, window_bounds = array<i64: 128, 256>}, {pipeline_mode = #tpu.pipeline_mode<synchronous>, transform_indices = @transform_1, window_bounds = array<i64: 256, 256>}, {transform_indices = @transform_2, window_bounds = array<i64: 128, 4>}, {pipeline_mode = #tpu.pipeline_mode<synchronous>, transform_indices = @transform_3, window_bounds = array<i64: 2, 256>}, {pipeline_mode = #tpu.pipeline_mode<synchronous>, transform_indices = @transform_4, window_bounds = array<i64: 1, 256>}, {pipeline_mode = #tpu.pipeline_mode<synchronous>, transform_indices = @transform_5, window_bounds = array<i64: 1, 256>}, {pipeline_mode = #tpu.pipeline_mode<synchronous>, transform_indices = @transform_6, window_bounds = array<i64: 256, 128>}, {pipeline_mode = #tpu.pipeline_mode<synchronous>, transform_indices = @transform_7, window_bounds = array<i64: 128, 2>}, {transform_indices = @transform_8, window_bounds = array<i64: 128, 128>}, {transform_indices = @transform_9, window_bounds = array<i64: 128, 2>}]} {
    %c0 = arith.constant 0 : index
    %c0_0 = arith.constant 0 : index
    %0 = vector.load %arg1[%c0, %c0_0] : memref<128x256xbf16, #tpu.memory_space<vmem>>, vector<128x256xbf16>
    %cst = arith.constant 0.000000e+00 : bf16
    %1 = vector.broadcast %cst : bf16 to vector<128x256xbf16>
    %2 = arith.cmpf ogt, %0, %1 : vector<128x256xbf16>
    %c0_1 = arith.constant 0 : index
    %c0_2 = arith.constant 0 : index
    %3 = vector.load %arg2[%c0_1, %c0_2] : memref<256x256xbf16, #tpu.memory_space<vmem>>, vector<256x256xbf16>
    %c0_3 = arith.constant 0 : index
    %c0_4 = arith.constant 0 : index
    %4 = vector.load %arg3[%c0_3, %c0_4] : memref<128x4xf32, #tpu.memory_space<vmem>>, vector<128x4xf32>
    %c0_5 = arith.constant 0 : index
    %c0_6 = arith.constant 0 : index
    %5 = vector.load %arg4[%c0_5, %c0_6] : memref<2x256xf32, #tpu.memory_space<vmem>>, vector<2x256xf32>
    %6 = vector.extract_strided_slice %4 {offsets = [0, 2], sizes = [128, 1], strides = [1, 1]} : vector<128x4xf32> to vector<128x1xf32>
    %7 = vector.extract_strided_slice %5 {offsets = [0, 0], sizes = [1, 256], strides = [1, 1]} : vector<2x256xf32> to vector<1x256xf32>
    %8 = vector.extract_strided_slice %3 {offsets = [0, 0], sizes = [256, 128], strides = [1, 1]} : vector<256x256xbf16> to vector<256x128xbf16>
    %9 = vector.broadcast %6 : vector<128x1xf32> to vector<128x256xf32>
    %10 = vector.broadcast %7 : vector<1x256xf32> to vector<128x256xf32>
    %11 = arith.addf %9, %10 : vector<128x256xf32>
    %cst_7 = arith.constant 0.000000e+00 : f32
    %12 = vector.broadcast %cst_7 : f32 to vector<128x256xf32>
    %13 = arith.cmpf oge, %11, %12 : vector<128x256xf32>
    %cst_8 = arith.constant 2.000000e-01 : f32
    %14 = vector.broadcast %cst_8 : f32 to vector<128x256xf32>
    %15 = arith.mulf %14, %11 : vector<128x256xf32>
    %16 = arith.select %13, %11, %15 : vector<128x256xi1>, vector<128x256xf32>
    %cst_9 = arith.constant -1.000000e+30 : f32
    %17 = vector.broadcast %cst_9 : f32 to vector<128x256xf32>
    %18 = arith.select %2, %16, %17 : vector<128x256xi1>, vector<128x256xf32>
    %cst_10 = arith.constant dense<0xFF800000> : vector<128xf32>
    %19 = vector.multi_reduction <maximumf>, %18, %cst_10 [1] : vector<128x256xf32> to vector<128xf32>
    %20 = vector.shape_cast %19 : vector<128xf32> to vector<128x1xf32>
    %21 = vector.broadcast %20 : vector<128x1xf32> to vector<128x256xf32>
    %22 = arith.subf %18, %21 : vector<128x256xf32>
    %23 = math.exp %22 : vector<128x256xf32>
    %cst_11 = arith.constant dense<0.000000e+00> : vector<128xf32>
    %24 = vector.multi_reduction <add>, %23, %cst_11 [1] : vector<128x256xf32> to vector<128xf32>
    %25 = vector.shape_cast %24 : vector<128xf32> to vector<128x1xf32>
    %26 = arith.truncf %23 : vector<128x256xf32> to vector<128x256xbf16>
    %cst_12 = arith.constant dense<0.000000e+00> : vector<128x128xf32>
    %27 = tpu.matmul %26, %8, %cst_12 {dimension_numbers = #tpu.dot_dimension_numbers<[1], [0], [0], [1], [0, 0, 1, 1], [], []>} : vector<128x256xbf16>, vector<256x128xbf16>, vector<128x128xf32> -> vector<128x128xf32>
    %28 = tpu.reciprocal %25 {approx = true} : vector<128x1xf32> -> vector<128x1xf32>
    %29 = vector.broadcast %28 : vector<128x1xf32> to vector<128x128xf32>
    %30 = arith.mulf %27, %29 : vector<128x128xf32>
    %31 = vector.extract_strided_slice %4 {offsets = [0, 3], sizes = [128, 1], strides = [1, 1]} : vector<128x4xf32> to vector<128x1xf32>
    %32 = vector.extract_strided_slice %5 {offsets = [1, 0], sizes = [1, 256], strides = [1, 1]} : vector<2x256xf32> to vector<1x256xf32>
    %33 = vector.extract_strided_slice %3 {offsets = [0, 128], sizes = [256, 128], strides = [1, 1]} : vector<256x256xbf16> to vector<256x128xbf16>
    %34 = vector.broadcast %31 : vector<128x1xf32> to vector<128x256xf32>
    %35 = vector.broadcast %32 : vector<1x256xf32> to vector<128x256xf32>
    %36 = arith.addf %34, %35 : vector<128x256xf32>
    %cst_13 = arith.constant 0.000000e+00 : f32
    %37 = vector.broadcast %cst_13 : f32 to vector<128x256xf32>
    %38 = arith.cmpf oge, %36, %37 : vector<128x256xf32>
    %cst_14 = arith.constant 2.000000e-01 : f32
    %39 = vector.broadcast %cst_14 : f32 to vector<128x256xf32>
    %40 = arith.mulf %39, %36 : vector<128x256xf32>
    %41 = arith.select %38, %36, %40 : vector<128x256xi1>, vector<128x256xf32>
    %cst_15 = arith.constant -1.000000e+30 : f32
    %42 = vector.broadcast %cst_15 : f32 to vector<128x256xf32>
    %43 = arith.select %2, %41, %42 : vector<128x256xi1>, vector<128x256xf32>
    %cst_16 = arith.constant dense<0xFF800000> : vector<128xf32>
    %44 = vector.multi_reduction <maximumf>, %43, %cst_16 [1] : vector<128x256xf32> to vector<128xf32>
    %45 = vector.shape_cast %44 : vector<128xf32> to vector<128x1xf32>
    %46 = vector.broadcast %45 : vector<128x1xf32> to vector<128x256xf32>
    %47 = arith.subf %43, %46 : vector<128x256xf32>
    %48 = math.exp %47 : vector<128x256xf32>
    %cst_17 = arith.constant dense<0.000000e+00> : vector<128xf32>
    %49 = vector.multi_reduction <add>, %48, %cst_17 [1] : vector<128x256xf32> to vector<128xf32>
    %50 = vector.shape_cast %49 : vector<128xf32> to vector<128x1xf32>
    %51 = arith.truncf %48 : vector<128x256xf32> to vector<128x256xbf16>
    %cst_18 = arith.constant dense<0.000000e+00> : vector<128x128xf32>
    %52 = tpu.matmul %51, %33, %cst_18 {dimension_numbers = #tpu.dot_dimension_numbers<[1], [0], [0], [1], [0, 0, 1, 1], [], []>} : vector<128x256xbf16>, vector<256x128xbf16>, vector<128x128xf32> -> vector<128x128xf32>
    %53 = tpu.reciprocal %50 {approx = true} : vector<128x1xf32> -> vector<128x1xf32>
    %54 = vector.broadcast %53 : vector<128x1xf32> to vector<128x128xf32>
    %55 = arith.mulf %52, %54 : vector<128x128xf32>
    %56 = tpu.concatenate %30, %55 in 1 : vector<128x128xf32>, vector<128x128xf32> -> vector<128x256xf32>
    %c0_19 = arith.constant 0 : index
    %c0_20 = arith.constant 0 : index
    %57 = vector.load %arg5[%c0_19, %c0_20] : memref<1x256xf32, #tpu.memory_space<vmem>>, vector<1x256xf32>
    %58 = vector.broadcast %57 : vector<1x256xf32> to vector<128x256xf32>
    %59 = arith.mulf %56, %58 : vector<128x256xf32>
    %c0_21 = arith.constant 0 : index
    %c0_22 = arith.constant 0 : index
    %60 = vector.load %arg6[%c0_21, %c0_22] : memref<1x256xf32, #tpu.memory_space<vmem>>, vector<1x256xf32>
    %61 = vector.broadcast %60 : vector<1x256xf32> to vector<128x256xf32>
    %62 = arith.addf %59, %61 : vector<128x256xf32>
    %cst_23 = arith.constant 0.000000e+00 : f32
    %63 = vector.broadcast %cst_23 : f32 to vector<128x256xf32>
    %64 = arith.maximumf %62, %63 : vector<128x256xf32>
    %c0_24 = arith.constant 0 : index
    %c0_25 = arith.constant 0 : index
    %65 = vector.load %arg7[%c0_24, %c0_25] : memref<256x128xf32, #tpu.memory_space<vmem>>, vector<256x128xf32>
    %cst_26 = arith.constant dense<0.000000e+00> : vector<128x128xf32>
    %66 = tpu.matmul %64, %65, %cst_26 {dimension_numbers = #tpu.dot_dimension_numbers<[1], [0], [0], [1], [0, 0, 1, 1], [], []>} : vector<128x256xf32>, vector<256x128xf32>, vector<128x128xf32> -> vector<128x128xf32>
    %c0_27 = arith.constant 0 : index
    %c0_28 = arith.constant 0 : index
    %67 = vector.load %arg8[%c0_27, %c0_28] : memref<128x2xf32, #tpu.memory_space<vmem>>, vector<128x2xf32>
    %cst_29 = arith.constant dense<0.000000e+00> : vector<128x2xf32>
    %68 = tpu.matmul %66, %67, %cst_29 {dimension_numbers = #tpu.dot_dimension_numbers<[1], [0], [0], [1], [0, 0, 1, 1], [], []>} : vector<128x128xf32>, vector<128x2xf32>, vector<128x2xf32> -> vector<128x2xf32>
    %c0_30 = arith.constant 0 : index
    %c0_31 = arith.constant 0 : index
    %69 = vector.load %arg10[%c0_30, %c0_31] : memref<128x2xf32, #tpu.memory_space<vmem>>, vector<128x2xf32>
    tpu.vector_store %arg10[%c0_30, %c0_31], %68 {strides = array<i32>} : memref<128x2xf32, #tpu.memory_space<vmem>>, vector<128x2xf32>,
    %70 = arith.truncf %66 : vector<128x128xf32> to vector<128x128xbf16>
    %c0_32 = arith.constant 0 : index
    %c0_33 = arith.constant 0 : index
    %71 = vector.load %arg9[%c0_32, %c0_33] : memref<128x128xbf16, #tpu.memory_space<vmem>>, vector<128x128xbf16>
    tpu.vector_store %arg9[%c0_32, %c0_33], %70 {strides = array<i32>} : memref<128x128xbf16, #tpu.memory_space<vmem>>, vector<128x128xbf16>,
    return
  }
  func.func @transform_0(%arg0: i32) -> (i32, i32) {
    %c0_i32 = arith.constant 0 : i32
    %c0_i32_0 = arith.constant 0 : i32
    return %arg0, %c0_i32 : i32, i32
  }
  func.func @transform_1(%arg0: i32) -> (i32, i32) {
    %c0_i32 = arith.constant 0 : i32
    %c0_i32_0 = arith.constant 0 : i32
    %c0_i32_1 = arith.constant 0 : i32
    return %c0_i32, %c0_i32_0 : i32, i32
  }
  func.func @transform_2(%arg0: i32) -> (i32, i32) {
    %c0_i32 = arith.constant 0 : i32
    %c0_i32_0 = arith.constant 0 : i32
    return %arg0, %c0_i32 : i32, i32
  }
  func.func @transform_3(%arg0: i32) -> (i32, i32) {
    %c0_i32 = arith.constant 0 : i32
    %c0_i32_0 = arith.constant 0 : i32
    %c0_i32_1 = arith.constant 0 : i32
    return %c0_i32, %c0_i32_0 : i32, i32
  }
  func.func @transform_4(%arg0: i32) -> (i32, i32) {
    %c0_i32 = arith.constant 0 : i32
    %c0_i32_0 = arith.constant 0 : i32
    %c0_i32_1 = arith.constant 0 : i32
    return %c0_i32, %c0_i32_0 : i32, i32
  }
  func.func @transform_5(%arg0: i32) -> (i32, i32) {
    %c0_i32 = arith.constant 0 : i32
    %c0_i32_0 = arith.constant 0 : i32
    %c0_i32_1 = arith.constant 0 : i32
    return %c0_i32, %c0_i32_0 : i32, i32
  }
  func.func @transform_6(%arg0: i32) -> (i32, i32) {
    %c0_i32 = arith.constant 0 : i32
    %c0_i32_0 = arith.constant 0 : i32
    %c0_i32_1 = arith.constant 0 : i32
    return %c0_i32, %c0_i32_0 : i32, i32
  }
  func.func @transform_7(%arg0: i32) -> (i32, i32) {
    %c0_i32 = arith.constant 0 : i32
    %c0_i32_0 = arith.constant 0 : i32
    %c0_i32_1 = arith.constant 0 : i32
    return %c0_i32, %c0_i32_0 : i32, i32
  }
  func.func @transform_8(%arg0: i32) -> (i32, i32) {
    %c0_i32 = arith.constant 0 : i32
    %c0_i32_0 = arith.constant 0 : i32
    return %arg0, %c0_i32 : i32, i32
  }
  func.func @transform_9(%arg0: i32) -> (i32, i32) {
    %c0_i32 = arith.constant 0 : i32
    %c0_i32_0 = arith.constant 0 : i32
    return %arg0, %c0_i32 : i32, i32
  }
}

module attributes {stable_mosaic.version = 11 : i64} {
  func.func @gat2_kernel(%arg0: i32, %arg1: memref<128x256xbf16, #tpu.memory_space<vmem>>, %arg2: memref<256x128xbf16, #tpu.memory_space<vmem>>, %arg3: memref<128x2xf32, #tpu.memory_space<vmem>>, %arg4: memref<1x256xf32, #tpu.memory_space<vmem>>, %arg5: memref<1x128xf32, #tpu.memory_space<vmem>>, %arg6: memref<1x128xf32, #tpu.memory_space<vmem>>, %arg7: memref<128x64xf32, #tpu.memory_space<vmem>>, %arg8: memref<1x64xf32, #tpu.memory_space<vmem>>, %arg9: memref<64x128xf32, #tpu.memory_space<vmem>>, %arg10: memref<1x128xf32, #tpu.memory_space<vmem>>, %arg11: memref<128x128xf32, #tpu.memory_space<vmem>>) attributes {dimension_semantics = [#tpu.dimension_semantics<parallel>], iteration_bounds = array<i64: 2>, scalar_prefetch = 0 : i64, scratch_operands = 0 : i64, tpu.core_type = #tpu.core_type<tc>, window_params = [{transform_indices = @transform_0, window_bounds = array<i64: 128, 256>}, {pipeline_mode = #tpu.pipeline_mode<synchronous>, transform_indices = @transform_1, window_bounds = array<i64: 256, 128>}, {transform_indices = @transform_2, window_bounds = array<i64: 128, 2>}, {pipeline_mode = #tpu.pipeline_mode<synchronous>, transform_indices = @transform_3, window_bounds = array<i64: 1, 256>}, {pipeline_mode = #tpu.pipeline_mode<synchronous>, transform_indices = @transform_4, window_bounds = array<i64: 1, 128>}, {pipeline_mode = #tpu.pipeline_mode<synchronous>, transform_indices = @transform_5, window_bounds = array<i64: 1, 128>}, {pipeline_mode = #tpu.pipeline_mode<synchronous>, transform_indices = @transform_6, window_bounds = array<i64: 128, 64>}, {pipeline_mode = #tpu.pipeline_mode<synchronous>, transform_indices = @transform_7, window_bounds = array<i64: 1, 64>}, {pipeline_mode = #tpu.pipeline_mode<synchronous>, transform_indices = @transform_8, window_bounds = array<i64: 64, 128>}, {pipeline_mode = #tpu.pipeline_mode<synchronous>, transform_indices = @transform_9, window_bounds = array<i64: 1, 128>}, {transform_indices = @transform_10, window_bounds = array<i64: 128, 128>}]} {
    %c0 = arith.constant 0 : index
    %c0_0 = arith.constant 0 : index
    %0 = vector.load %arg1[%c0, %c0_0] : memref<128x256xbf16, #tpu.memory_space<vmem>>, vector<128x256xbf16>
    %cst = arith.constant 0.000000e+00 : bf16
    %1 = vector.broadcast %cst : bf16 to vector<128x256xbf16>
    %2 = arith.cmpf ogt, %0, %1 : vector<128x256xbf16>
    %c0_1 = arith.constant 0 : index
    %c0_2 = arith.constant 0 : index
    %3 = vector.load %arg3[%c0_1, %c0_2] : memref<128x2xf32, #tpu.memory_space<vmem>>, vector<128x2xf32>
    %4 = vector.extract_strided_slice %3 {offsets = [0, 1], sizes = [128, 1], strides = [1, 1]} : vector<128x2xf32> to vector<128x1xf32>
    %c0_3 = arith.constant 0 : index
    %c0_4 = arith.constant 0 : index
    %5 = vector.load %arg4[%c0_3, %c0_4] : memref<1x256xf32, #tpu.memory_space<vmem>>, vector<1x256xf32>
    %c0_5 = arith.constant 0 : index
    %c0_6 = arith.constant 0 : index
    %6 = vector.load %arg2[%c0_5, %c0_6] : memref<256x128xbf16, #tpu.memory_space<vmem>>, vector<256x128xbf16>
    %7 = vector.broadcast %4 : vector<128x1xf32> to vector<128x256xf32>
    %8 = vector.broadcast %5 : vector<1x256xf32> to vector<128x256xf32>
    %9 = arith.addf %7, %8 : vector<128x256xf32>
    %cst_7 = arith.constant 0.000000e+00 : f32
    %10 = vector.broadcast %cst_7 : f32 to vector<128x256xf32>
    %11 = arith.cmpf oge, %9, %10 : vector<128x256xf32>
    %cst_8 = arith.constant 2.000000e-01 : f32
    %12 = vector.broadcast %cst_8 : f32 to vector<128x256xf32>
    %13 = arith.mulf %12, %9 : vector<128x256xf32>
    %14 = arith.select %11, %9, %13 : vector<128x256xi1>, vector<128x256xf32>
    %cst_9 = arith.constant -1.000000e+30 : f32
    %15 = vector.broadcast %cst_9 : f32 to vector<128x256xf32>
    %16 = arith.select %2, %14, %15 : vector<128x256xi1>, vector<128x256xf32>
    %cst_10 = arith.constant dense<0xFF800000> : vector<128xf32>
    %17 = vector.multi_reduction <maximumf>, %16, %cst_10 [1] : vector<128x256xf32> to vector<128xf32>
    %18 = vector.shape_cast %17 : vector<128xf32> to vector<128x1xf32>
    %19 = vector.broadcast %18 : vector<128x1xf32> to vector<128x256xf32>
    %20 = arith.subf %16, %19 : vector<128x256xf32>
    %21 = math.exp %20 : vector<128x256xf32>
    %cst_11 = arith.constant dense<0.000000e+00> : vector<128xf32>
    %22 = vector.multi_reduction <add>, %21, %cst_11 [1] : vector<128x256xf32> to vector<128xf32>
    %23 = vector.shape_cast %22 : vector<128xf32> to vector<128x1xf32>
    %24 = arith.truncf %21 : vector<128x256xf32> to vector<128x256xbf16>
    %cst_12 = arith.constant dense<0.000000e+00> : vector<128x128xf32>
    %25 = tpu.matmul %24, %6, %cst_12 {dimension_numbers = #tpu.dot_dimension_numbers<[1], [0], [0], [1], [0, 0, 1, 1], [], []>} : vector<128x256xbf16>, vector<256x128xbf16>, vector<128x128xf32> -> vector<128x128xf32>
    %26 = tpu.reciprocal %23 {approx = true} : vector<128x1xf32> -> vector<128x1xf32>
    %27 = vector.broadcast %26 : vector<128x1xf32> to vector<128x128xf32>
    %28 = arith.mulf %25, %27 : vector<128x128xf32>
    %c0_13 = arith.constant 0 : index
    %c0_14 = arith.constant 0 : index
    %29 = vector.load %arg5[%c0_13, %c0_14] : memref<1x128xf32, #tpu.memory_space<vmem>>, vector<1x128xf32>
    %30 = vector.broadcast %29 : vector<1x128xf32> to vector<128x128xf32>
    %31 = arith.mulf %28, %30 : vector<128x128xf32>
    %c0_15 = arith.constant 0 : index
    %c0_16 = arith.constant 0 : index
    %32 = vector.load %arg6[%c0_15, %c0_16] : memref<1x128xf32, #tpu.memory_space<vmem>>, vector<1x128xf32>
    %33 = vector.broadcast %32 : vector<1x128xf32> to vector<128x128xf32>
    %34 = arith.addf %31, %33 : vector<128x128xf32>
    %cst_17 = arith.constant 0.000000e+00 : f32
    %35 = vector.broadcast %cst_17 : f32 to vector<128x128xf32>
    %36 = arith.maximumf %34, %35 : vector<128x128xf32>
    %c0_18 = arith.constant 0 : index
    %c0_19 = arith.constant 0 : index
    %37 = vector.load %arg7[%c0_18, %c0_19] : memref<128x64xf32, #tpu.memory_space<vmem>>, vector<128x64xf32>
    %cst_20 = arith.constant dense<0.000000e+00> : vector<128x64xf32>
    %38 = tpu.matmul %36, %37, %cst_20 {dimension_numbers = #tpu.dot_dimension_numbers<[1], [0], [0], [1], [0, 0, 1, 1], [], []>} : vector<128x128xf32>, vector<128x64xf32>, vector<128x64xf32> -> vector<128x64xf32>
    %c0_21 = arith.constant 0 : index
    %c0_22 = arith.constant 0 : index
    %39 = vector.load %arg8[%c0_21, %c0_22] : memref<1x64xf32, #tpu.memory_space<vmem>>, vector<1x64xf32>
    %40 = vector.broadcast %39 : vector<1x64xf32> to vector<128x64xf32>
    %41 = arith.addf %38, %40 : vector<128x64xf32>
    %cst_23 = arith.constant 0.000000e+00 : f32
    %42 = vector.broadcast %cst_23 : f32 to vector<128x64xf32>
    %43 = arith.maximumf %41, %42 : vector<128x64xf32>
    %c0_24 = arith.constant 0 : index
    %c0_25 = arith.constant 0 : index
    %44 = vector.load %arg9[%c0_24, %c0_25] : memref<64x128xf32, #tpu.memory_space<vmem>>, vector<64x128xf32>
    %cst_26 = arith.constant dense<0.000000e+00> : vector<128x128xf32>
    %45 = tpu.matmul %43, %44, %cst_26 {dimension_numbers = #tpu.dot_dimension_numbers<[1], [0], [0], [1], [0, 0, 1, 1], [], []>} : vector<128x64xf32>, vector<64x128xf32>, vector<128x128xf32> -> vector<128x128xf32>
    %c0_27 = arith.constant 0 : index
    %c0_28 = arith.constant 0 : index
    %46 = vector.load %arg10[%c0_27, %c0_28] : memref<1x128xf32, #tpu.memory_space<vmem>>, vector<1x128xf32>
    %47 = vector.broadcast %46 : vector<1x128xf32> to vector<128x128xf32>
    %48 = arith.addf %45, %47 : vector<128x128xf32>
    %c0_29 = arith.constant 0 : index
    %c0_30 = arith.constant 0 : index
    %49 = vector.load %arg11[%c0_29, %c0_30] : memref<128x128xf32, #tpu.memory_space<vmem>>, vector<128x128xf32>
    tpu.vector_store %arg11[%c0_29, %c0_30], %48 {strides = array<i32>} : memref<128x128xf32, #tpu.memory_space<vmem>>, vector<128x128xf32>,
    return
  }
  func.func @transform_0(%arg0: i32) -> (i32, i32) {
    %c0_i32 = arith.constant 0 : i32
    %c0_i32_0 = arith.constant 0 : i32
    return %arg0, %c0_i32 : i32, i32
  }
  func.func @transform_1(%arg0: i32) -> (i32, i32) {
    %c0_i32 = arith.constant 0 : i32
    %c0_i32_0 = arith.constant 0 : i32
    %c0_i32_1 = arith.constant 0 : i32
    return %c0_i32, %c0_i32_0 : i32, i32
  }
  func.func @transform_2(%arg0: i32) -> (i32, i32) {
    %c0_i32 = arith.constant 0 : i32
    %c0_i32_0 = arith.constant 0 : i32
    return %arg0, %c0_i32 : i32, i32
  }
  func.func @transform_3(%arg0: i32) -> (i32, i32) {
    %c0_i32 = arith.constant 0 : i32
    %c0_i32_0 = arith.constant 0 : i32
    %c0_i32_1 = arith.constant 0 : i32
    return %c0_i32, %c0_i32_0 : i32, i32
  }
  func.func @transform_4(%arg0: i32) -> (i32, i32) {
    %c0_i32 = arith.constant 0 : i32
    %c0_i32_0 = arith.constant 0 : i32
    %c0_i32_1 = arith.constant 0 : i32
    return %c0_i32, %c0_i32_0 : i32, i32
  }
  func.func @transform_5(%arg0: i32) -> (i32, i32) {
    %c0_i32 = arith.constant 0 : i32
    %c0_i32_0 = arith.constant 0 : i32
    %c0_i32_1 = arith.constant 0 : i32
    return %c0_i32, %c0_i32_0 : i32, i32
  }
  func.func @transform_6(%arg0: i32) -> (i32, i32) {
    %c0_i32 = arith.constant 0 : i32
    %c0_i32_0 = arith.constant 0 : i32
    %c0_i32_1 = arith.constant 0 : i32
    return %c0_i32, %c0_i32_0 : i32, i32
  }
  func.func @transform_7(%arg0: i32) -> (i32, i32) {
    %c0_i32 = arith.constant 0 : i32
    %c0_i32_0 = arith.constant 0 : i32
    %c0_i32_1 = arith.constant 0 : i32
    return %c0_i32, %c0_i32_0 : i32, i32
  }
  func.func @transform_8(%arg0: i32) -> (i32, i32) {
    %c0_i32 = arith.constant 0 : i32
    %c0_i32_0 = arith.constant 0 : i32
    %c0_i32_1 = arith.constant 0 : i32
    return %c0_i32, %c0_i32_0 : i32, i32
  }
  func.func @transform_9(%arg0: i32) -> (i32, i32) {
    %c0_i32 = arith.constant 0 : i32
    %c0_i32_0 = arith.constant 0 : i32
    %c0_i32_1 = arith.constant 0 : i32
    return %c0_i32, %c0_i32_0 : i32, i32
  }
  func.func @transform_10(%arg0: i32) -> (i32, i32) {
    %c0_i32 = arith.constant 0 : i32
    %c0_i32_0 = arith.constant 0 : i32
    return %arg0, %c0_i32 : i32, i32
  }
}

</mosaic_0001>

<bundles_post_ra>
// kernel: improved_gnn_forward.3
= control target key start
LH: loop header
LB: loop body
LE: loop exit
PB: predicated region body
PF: predicated region fallthrough
CT: control target
= control target key end

     0   :  { %s1408_s21 = smov 0   ;;  %s1754_s0 = inlined_call_operand.vmem [shape: f32[256,16], index: 0, kind: input, shape index: {}]   ;;  %s1755_s1 = inlined_call_operand.vmem [shape: f32[16,128], index: 1, kind: input, shape index: {}]   ;;  %s1756_s2 = inlined_call_operand.vmem [shape: f32[1,128], index: 2, kind: input, shape index: {}]   ;;  %s1757_s3 = inlined_call_operand.vmem [shape: f32[128,256], index: 3, kind: input, shape index: {}]   ;;  %s1758_s4 = inlined_call_operand.vmem [shape: f32[256,4], index: 4, kind: input, shape index: {}]   ;;  %s1759_s5 = inlined_call_operand.vmem [shape: bf16[256,256], index: 5, kind: output, shape index: {0}]   ;;  %s1760_s6 = inlined_call_operand.vmem [shape: f32[256,4], index: 6, kind: output, shape index: {1}]  }
   0x1 LB: > { %s1097_s22 = sadd.s32 4294967295, %s1370_s21   ;;  %p1101_p0 = scmp.ge.s32.totalorder %s1370_s21, 1  ;;  %s1370_s21 = sphi %s1408_s21, %s17_s21  }
   0x2   : > { %p216_p1 = scmp.lt.s32.totalorder %s1370_s21, 3 }
   0x4   : > { %p217_p2 = pnand %p1101_p0, %p216_p1 }
   0x5   : > { %v287_v0 = vld [vmem:[%s1755_s1] sm:$0xff] (!%p217_p2)  ;;  %v288_v1 = vld [vmem:[%s1755_s1 + $0x8] sm:$0xff] (!%p217_p2)  ;;  %s1102_s27 = sshll.u32 (!%p217_p2), %s1097_s22, 4  ;;  %v509_v4 = vld [vmem:[%s1757_s3 + $0x18] sm:$0xff] (!%p217_p2)  ;;  %vm296_vm0 = vcmask (!%p217_p2), 130048   ;;  %vm876_vm1 = vcmask (!%p217_p2), 31744  }
   0x6   : > { %220 = sbr.rel (%p217_p2) target bundleno = 725 (0x2d5), region = 40  ;;  %v507_v2 = vld [vmem:[%s1757_s3 + $0x8] sm:$0xff] (!%p217_p2)  ;;  %v1287_v3 = vpack.c.bf16 (!%p217_p2), %v288_v1, %v287_v0  ;;  %p253_p3 = scmp.lt.s32.totalorder (!%p217_p2), %s1102_s27, 31  ;;  %v506_v5 = vld [vmem:[%s1757_s3] sm:$0xff] (!%p217_p2)  ;;  %v508_v6 = vld [vmem:[%s1757_s3 + $0x10] sm:$0xff] (!%p217_p2) }
   0x7   : > { %v1291_v7 = vpack.c.bf16 (!%p217_p2), %v509_v4, %v507_v2  ;;  %v1293_v8 = vpack.c.bf16 (!%p217_p2), %v508_v6, %v506_v5  ;;  %v511_v9 = vld [vmem:[%s1757_s3 + $0x28] sm:$0xff] (!%p217_p2)  ;;  %v513_v10 = vld [vmem:[%s1757_s3 + $0x38] sm:$0xff] (!%p217_p2)  ;;  %v510_v11 = vld [vmem:[%s1757_s3 + $0x20] sm:$0xff] (!%p217_p2) }
   0x8   : > { %1288 = vmatprep.subr.bf16.mxu0 (!%p217_p2), %v1287_v3  ;;  %v1295_v12 = vpack.c.bf16 (!%p217_p2), %v513_v10, %v511_v9  ;;  %v512_v13 = vld [vmem:[%s1757_s3 + $0x30] sm:$0xff] (!%p217_p2)  ;;  %v515_v14 = vld [vmem:[%s1757_s3 + $0x48] sm:$0xff] (!%p217_p2)  ;;  %v517_v15 = vld [vmem:[%s1757_s3 + $0x58] sm:$0xff] (!%p217_p2) }
   0x9   : > { %1290 = vmatpush3.bf16.msra.mxu0 (!%p217_p2), %v1287_v3  ;;  %1292 = vmatprep.subr.bf16.mxu1 (!%p217_p2), %v1291_v7  ;;  %v1297_v16 = vpack.c.bf16 (!%p217_p2), %v512_v13, %v510_v11  ;;  %v514_v17 = vld [vmem:[%s1757_s3 + $0x40] sm:$0xff] (!%p217_p2)  ;;  %v1299_v18 = vpack.c.bf16 (!%p217_p2), %v517_v15, %v515_v14  ;;  %v516_v19 = vld [vmem:[%s1757_s3 + $0x50] sm:$0xff] (!%p217_p2)  ;;  %v519_v20 = vld [vmem:[%s1757_s3 + $0x68] sm:$0xff] (!%p217_p2)  ;;  %v1372_v3 = vmov (!%p217_p2), 0.0  }
   0xa   : > { %1294 = vmatpush1.bf16.msra.mxu1 (!%p217_p2), %v1293_v8  ;;  %v521_v21 = vld [vmem:[%s1757_s3 + $0x78] sm:$0xff] (!%p217_p2)  ;;  %v1301_v25 = vpack.c.bf16 (!%p217_p2), %v516_v19, %v514_v17  ;;  %v518_v28 = vld [vmem:[%s1757_s3 + $0x60] sm:$0xff] (!%p217_p2)  ;;  %v520_v29 = vld [vmem:[%s1757_s3 + $0x70] sm:$0xff] (!%p217_p2)  ;;  %602 = vmatprep.mubr.f32.mxu1 (!%p217_p2), %v1372_v3 }
   0xb   : > { %1296 = vmatprep.subr.bf16.mxu1 (!%p217_p2), %v1295_v12  ;;  %v1303_v27 = vpack.c.bf16 (!%p217_p2), %v521_v21, %v519_v20  ;;  %v523_v31 = vld [vmem:[%s1757_s3 + $0x88] sm:$0xff] (!%p217_p2)  ;;  %v525_v32 = vld [vmem:[%s1757_s3 + $0x98] sm:$0xff] (!%p217_p2)  ;;  %v1305_v33 = vpack.c.bf16 (!%p217_p2), %v520_v29, %v518_v28  ;;  %v522_v36 = vld [vmem:[%s1757_s3 + $0x80] sm:$0xff] (!%p217_p2) }
   0xc   : > { %v1307_v35 = vpack.c.bf16 (!%p217_p2), %v525_v32, %v523_v31  ;;  %v524_v37 = vld [vmem:[%s1757_s3 + $0x90] sm:$0xff] (!%p217_p2)  ;;  %v527_v39 = vld [vmem:[%s1757_s3 + $0xa8] sm:$0xff] (!%p217_p2)  ;;  %v529_v40 = vld [vmem:[%s1757_s3 + $0xb8] sm:$0xff] (!%p217_p2) }
   0xd   : > { %s1762_s27 = smov (!%p253_p3, %s1102_s27), 31  ;;  %v1309_v41 = vpack.c.bf16 %v524_v37, %v522_v36  ;;  %v1311_v43 = vpack.c.bf16 %v529_v40, %v527_v39  ;;  %v526_v44 = vld [vmem:[%s1757_s3 + $0xa0] sm:$0xff]  ;;  %v528_v45 = vld [vmem:[%s1757_s3 + $0xb0] sm:$0xff]  ;;  %v531_v47 = vld [vmem:[%s1757_s3 + $0xc8] sm:$0xff] }
   0xe   : > { %s1452_s25 = sshll.u32 %s1762_s27, 3  ;;  %1298 = vmatpush1.bf16.msra.mxu1 %v1297_v16  ;;  %v533_v48 = vld [vmem:[%s1757_s3 + $0xd8] sm:$0xff]  ;;  %v1313_v49 = vpack.c.bf16 %v528_v45, %v526_v44  ;;  %v530_v52 = vld [vmem:[%s1757_s3 + $0xc0] sm:$0xff]  ;;  %v532_v53 = vld [vmem:[%s1757_s3 + $0xd0] sm:$0xff] }
   0xf   : > { %s1461_s7 = scalar_lea.vmem %s1754_s0, %s1452_s25  ;;  %1300 = vmatprep.subr.bf16.mxu1 %v1299_v18  ;;  %v1315_v51 = vpack.c.bf16 %v533_v48, %v531_v47  ;;  %v1317_v55 = vpack.c.bf16 %v532_v53, %v530_v52  ;;  %v535_v61 = vld [vmem:[%s1757_s3 + $0xe8] sm:$0xff]  ;;  %v537_v62 = vld [vmem:[%s1757_s3 + $0xf8] sm:$0xff]  ;;  %v534_v0 = vld [vmem:[%s1757_s3 + $0xe0] sm:$0xff]  ;;  %s1695_s8 = scalar_lea.vmem %s1759_s5, %s1452_s25 }
  0x10   : > { %v271_v22 = vld [vmem:[%s1461_s7] sm:$0xff]  ;;  %v272_v23 = vld [vmem:[%s1461_s7 + $0x8] sm:$0xff]  ;;  %v273_v24 = vld [vmem:[%s1461_s7 + $0x10] sm:$0xff]  ;;  %v1319_v63 = vpack.c.bf16 %v537_v62, %v535_v61  ;;  %s1717_s11 = scalar_lea.vmem %s1760_s6, %s1452_s25 }
  0x11   : > { %1263 = vmatprep.mubr.msk.f32.mxu0 %vm296_vm0, %v271_v22  ;;  %v274_v26 = vld [vmem:[%s1461_s7 + $0x18] sm:$0xff]  ;;  %v275_v30 = vld [vmem:[%s1461_s7 + $0x20] sm:$0xff]  ;;  %v276_v34 = vld [vmem:[%s1461_s7 + $0x28] sm:$0xff] }
  0x12   : > { %1264 = vmatmul.mubr.msk.f32.vlgmr.msra.gmra.mrb[0].mxu0 %vm296_vm0, %v272_v23  ;;  %1302 = vmatpush1.bf16.msra.mxu1 %v1301_v25  ;;  %v277_v38 = vld [vmem:[%s1461_s7 + $0x30] sm:$0xff]  ;;  %v278_v42 = vld [vmem:[%s1461_s7 + $0x38] sm:$0xff]  ;;  %v279_v46 = vld [vmem:[%s1461_s7 + $0x40] sm:$0xff] }
  0x13   : > { %1266 = vmatprep.mubr.msk.f32.mxu0 %vm296_vm0, %v273_v24  ;;  %1304 = vmatprep.subr.bf16.mxu1 %v1303_v27  ;;  %v280_v50 = vld [vmem:[%s1461_s7 + $0x48] sm:$0xff]  ;;  %v281_v54 = vld [vmem:[%s1461_s7 + $0x50] sm:$0xff]  ;;  %v282_v56 = vld [vmem:[%s1461_s7 + $0x58] sm:$0xff] }
  0x14   : > { %v283_v57 = vld [vmem:[%s1461_s7 + $0x60] sm:$0xff]  ;;  %v284_v58 = vld [vmem:[%s1461_s7 + $0x68] sm:$0xff]  ;;  %v285_v59 = vld [vmem:[%s1461_s7 + $0x70] sm:$0xff] }
  0x15   : > { %v286_v60 = vld [vmem:[%s1461_s7 + $0x78] sm:$0xff]  ;;  %v536_v1 = vld [vmem:[%s1757_s3 + $0xf0] sm:$0xff]  ;;  %v715_v4 = vld [vmem:[%s1758_s4 + $0x80] sm:$0xff] }
  0x16   : > { %1267 = vmatmul.mubr.msk.f32.gmra.mrb[2].mxu0 %vm296_vm0, %v274_v26  ;;  %1306 = vmatpush1.bf16.msra.mxu1 %v1305_v33  ;;  %v1321_v2 = vpack.c.bf16 %v536_v1, %v534_v0  ;;  %v716_v5 = vld [vmem:[%s1758_s4 + $0x88] sm:$0xff]  ;;  %v699_v6 = vld [vmem:[%s1758_s4] sm:$0xff]  ;;  %v717_v9 = vld [vmem:[%s1758_s4 + $0x90] sm:$0xff] }
  0x17   : > { %1269 = vmatprep.mubr.msk.f32.mxu0 %vm296_vm0, %v275_v30  ;;  %1308 = vmatprep.subr.bf16.mxu1 %v1307_v35  ;;  %v1323_v7 = vpack.c.bf16 %v716_v5, %v715_v4  ;;  %v700_v8 = vld [vmem:[%s1758_s4 + $0x8] sm:$0xff]  ;;  %v718_v10 = vld [vmem:[%s1758_s4 + $0x98] sm:$0xff]  ;;  %v701_v13 = vld [vmem:[%s1758_s4 + $0x10] sm:$0xff] }
  0x18   : > { %v1325_v11 = vpack.c.bf16 %v700_v8, %v699_v6  ;;  %v1327_v12 = vpack.c.bf16 %v718_v10, %v717_v9  ;;  %v702_v14 = vld [vmem:[%s1758_s4 + $0x18] sm:$0xff]  ;;  %v719_v15 = vld [vmem:[%s1758_s4 + $0xa0] sm:$0xff]  ;;  %v720_v16 = vld [vmem:[%s1758_s4 + $0xa8] sm:$0xff] }
  0x19   : > { %1324 = vmatprep.subr.bf16.mxu0 %v1323_v7  ;;  %v1329_v17 = vpack.c.bf16 %v702_v14, %v701_v13  ;;  %v1331_v18 = vpack.c.bf16 %v720_v16, %v719_v15  ;;  %v703_v19 = vld [vmem:[%s1758_s4 + $0x20] sm:$0xff]  ;;  %v704_v20 = vld [vmem:[%s1758_s4 + $0x28] sm:$0xff]  ;;  %v721_v21 = vld [vmem:[%s1758_s4 + $0xb0] sm:$0xff] }
  0x1a   : > { %1270 = vmatmul.mubr.msk.f32.gmra.mrb[4].mxu0 %vm296_vm0, %v276_v34  ;;  %1310 = vmatpush1.bf16.msra.mxu1 %v1309_v41  ;;  %v722_v22 = vld [vmem:[%s1758_s4 + $0xb8] sm:$0xff]  ;;  %v1333_v23 = vpack.c.bf16 %v704_v20, %v703_v19  ;;  %v705_v25 = vld [vmem:[%s1758_s4 + $0x30] sm:$0xff]  ;;  %v723_v27 = vld [vmem:[%s1758_s4 + $0xc0] sm:$0xff] }
  0x1b   : > { %1272 = vmatprep.mubr.msk.f32.mxu0 %vm296_vm0, %v277_v38  ;;  %1312 = vmatprep.subr.bf16.mxu1 %v1311_v43  ;;  %v1335_v24 = vpack.c.bf16 %v722_v22, %v721_v21  ;;  %v706_v26 = vld [vmem:[%s1758_s4 + $0x38] sm:$0xff]  ;;  %v724_v28 = vld [vmem:[%s1758_s4 + $0xc8] sm:$0xff]  ;;  %v707_v31 = vld [vmem:[%s1758_s4 + $0x40] sm:$0xff] }
  0x1c   : > { %1326 = vmatpush3.bf16.msra.mxu0 %v1325_v11  ;;  %v1337_v29 = vpack.c.bf16 %v706_v26, %v705_v25  ;;  %v1339_v30 = vpack.c.bf16 %v724_v28, %v723_v27  ;;  %v708_v32 = vld [vmem:[%s1758_s4 + $0x48] sm:$0xff]  ;;  %v725_v33 = vld [vmem:[%s1758_s4 + $0xd0] sm:$0xff]  ;;  %v726_v34 = vld [vmem:[%s1758_s4 + $0xd8] sm:$0xff] }
  0x1d   : > { %1328 = vmatprep.subr.bf16.mxu0 %v1327_v12  ;;  %v1341_v35 = vpack.c.bf16 %v708_v32, %v707_v31  ;;  %v1343_v36 = vpack.c.bf16 %v726_v34, %v725_v33  ;;  %v709_v37 = vld [vmem:[%s1758_s4 + $0x50] sm:$0xff]  ;;  %v710_v38 = vld [vmem:[%s1758_s4 + $0x58] sm:$0xff]  ;;  %v727_v39 = vld [vmem:[%s1758_s4 + $0xe0] sm:$0xff] }
  0x1e   : > { %1273 = vmatmul.mubr.msk.f32.gmra.mrb[6].mxu0 %vm296_vm0, %v278_v42  ;;  %1314 = vmatpush1.bf16.msra.mxu1 %v1313_v49  ;;  %v728_v40 = vld [vmem:[%s1758_s4 + $0xe8] sm:$0xff]  ;;  %v1345_v41 = vpack.c.bf16 %v710_v38, %v709_v37  ;;  %v711_v43 = vld [vmem:[%s1758_s4 + $0x60] sm:$0xff]  ;;  %v729_v45 = vld [vmem:[%s1758_s4 + $0xf0] sm:$0xff] }
  0x1f   : > { %1275 = vmatprep.mubr.msk.f32.mxu0 %vm296_vm0, %v279_v46  ;;  %1316 = vmatprep.subr.bf16.mxu1 %v1315_v51  ;;  %v1347_v42 = vpack.c.bf16 %v728_v40, %v727_v39  ;;  %v712_v44 = vld [vmem:[%s1758_s4 + $0x68] sm:$0xff]  ;;  %v730_v46 = vld [vmem:[%s1758_s4 + $0xf8] sm:$0xff]  ;;  %v713_v49 = vld [vmem:[%s1758_s4 + $0x70] sm:$0xff] }
  0x20   : > { %1330 = vmatpush3.bf16.msra.mxu0 %v1329_v17  ;;  %v1349_v47 = vpack.c.bf16 %v712_v44, %v711_v43  ;;  %v1351_v48 = vpack.c.bf16 %v730_v46, %v729_v45  ;;  %v1658_v52 = vld [vmem:[%s1756_s2] ss:$0 sm:$0xff] }
  0x21   : > { %1332 = vmatprep.subr.bf16.mxu0 %v1331_v18 }
  0x22   : > { %1276 = vmatmul.mubr.msk.f32.gmra.mrb[8].mxu0 %vm296_vm0, %v280_v50  ;;  %1318 = vmatpush1.bf16.msra.mxu1 %v1317_v55  ;;  %v714_v50 = vld [vmem:[%s1758_s4 + $0x78] sm:$0xff] }
  0x23   : > { %1278 = vmatprep.mubr.msk.f32.mxu0 %vm296_vm0, %v281_v54  ;;  %1320 = vmatprep.subr.bf16.mxu1 %v1319_v63  ;;  %v1353_v51 = vpack.c.bf16 %v714_v50, %v713_v49 }
  0x24   : > { %1334 = vmatpush3.bf16.msra.mxu0 %v1333_v23 }
  0x25   : > { %1336 = vmatprep.subr.bf16.mxu0 %v1335_v24 }
  0x26   : > { %1279 = vmatmul.mubr.msk.f32.gmra.mrb[10].mxu0 %vm296_vm0, %v282_v56  ;;  %1322 = vmatpush1.bf16.msra.mxu1 %v1321_v2 }
  0x27   : > { %1281 = vmatprep.mubr.msk.f32.mxu0 %vm296_vm0, %v283_v57 }
  0x28   : > { %1338 = vmatpush3.bf16.msra.mxu0 %v1337_v29 }
  0x29   : > { %1340 = vmatprep.subr.bf16.mxu0 %v1339_v30 }
  0x2a   : > { %1282 = vmatmul.mubr.msk.f32.gmra.mrb[12].mxu0 %vm296_vm0, %v284_v58 }
  0x2b   : > { %1284 = vmatprep.mubr.msk.f32.mxu0 %vm296_vm0, %v285_v59 }
  0x2c   : > { %1342 = vmatpush3.bf16.msra.mxu0 %v1341_v35 }
  0x2d   : > { %1344 = vmatprep.subr.bf16.mxu0 %v1343_v36 }
  0x2e   : > { %1285 = vmatmul.mubr.msk.f32.gmra.mrb[14].mxu0 %vm296_vm0, %v286_v60 }
  0x30   : > { %1346 = vmatpush3.bf16.msra.mxu0 %v1345_v41 }
  0x31   : > { %1348 = vmatprep.subr.bf16.mxu0 %v1347_v42 }
  0x34   : > { %1350 = vmatpush3.bf16.msra.mxu0 %v1349_v47 }
  0x35   : > { %1352 = vmatprep.subr.bf16.mxu0 %v1351_v48 }
  0x38   : > { %1354 = vmatpush3.bf16.msra.mxu0 %v1353_v51 }
  0xe5   : > { %v1265_v53 = vpop.f32.mrb[0].mxu0 }
  0xe6   : > { %v411_v54 = vpop.f32.mrb[1].mxu0  ;;  %v417_v56 = vadd.f32 %v1265_v53, %v1658_v52 }
  0xe7   : > { %v412_v55 = vadd.f32 %v1658_v52, %v411_v54 }
  0xe8   : > { %v491_v61 = vmax.f32 %v417_v56, 0.0 }
  0xe9   : > { %v490_v57 = vmax.f32 %v412_v55, 0.0  ;;  %v1268_v58 = vpop.f32.mrb[2].mxu0 }
  0xea   : > { %v421_v59 = vpop.f32.mrb[3].mxu0  ;;  %v427_v1 = vadd.f32 %v1268_v58, %v1658_v52 }
  0xeb   : > { %603 = vmatmul.mubr.f32.vlgmr.msra.gmra.mrb[0].mxu1 %v490_v57  ;;  %v422_v60 = vadd.f32 %v1658_v52, %v421_v59 }
  0xec   : > { %608 = vmatprep.mubr.f32.mxu1 %v1372_v3  ;;  %v493_v6 = vmax.f32 %v427_v1, 0.0 }
  0xed   : > { %v1271_v62 = vpop.f32.mrb[4].mxu0  ;;  %v492_v0 = vmax.f32 %v422_v60, 0.0 }
  0xee   : > { %v431_v63 = vpop.f32.mrb[5].mxu0  ;;  %v437_v10 = vadd.f32 %v1271_v62, %v1658_v52 }
  0xef   : > { %609 = vmatmul.mubr.f32.gmra.mrb[2].mxu1 %v491_v61  ;;  %v432_v5 = vadd.f32 %v1658_v52, %v431_v63 }
  0xf0   : > { %614 = vmatprep.mubr.f32.mxu1 %v1372_v3  ;;  %v495_v14 = vmax.f32 %v437_v10, 0.0 }
  0xf1   : > { %v1274_v2 = vpop.f32.mrb[6].mxu0  ;;  %v494_v9 = vmax.f32 %v432_v5, 0.0 }
  0xf2   : > { %v441_v4 = vpop.f32.mrb[7].mxu0  ;;  %v447_v18 = vadd.f32 %v1274_v2, %v1658_v52 }
  0xf3   : > { %615 = vmatmul.mubr.f32.gmra.mrb[4].mxu1 %v492_v0  ;;  %v442_v13 = vadd.f32 %v1658_v52, %v441_v4 }
  0xf4   : > { %620 = vmatprep.mubr.f32.mxu1 %v1372_v3  ;;  %v497_v22 = vmax.f32 %v447_v18, 0.0 }
  0xf5   : > { %v1277_v7 = vpop.f32.mrb[8].mxu0  ;;  %v496_v17 = vmax.f32 %v442_v13, 0.0 }
  0xf6   : > { %v451_v8 = vpop.f32.mrb[9].mxu0  ;;  %v457_v24 = vadd.f32 %v1277_v7, %v1658_v52 }
  0xf7   : > { %621 = vmatmul.mubr.f32.gmra.mrb[6].mxu1 %v493_v6  ;;  %v452_v21 = vadd.f32 %v1658_v52, %v451_v8 }
  0xf8   : > { %626 = vmatprep.mubr.f32.mxu1 %v1372_v3  ;;  %v499_v26 = vmax.f32 %v457_v24, 0.0 }
  0xf9   : > { %v1280_v11 = vpop.f32.mrb[10].mxu0  ;;  %v498_v23 = vmax.f32 %v452_v21, 0.0 }
  0xfa   : > { %v461_v12 = vpop.f32.mrb[11].mxu0  ;;  %v467_v28 = vadd.f32 %v1280_v11, %v1658_v52 }
  0xfb   : > { %627 = vmatmul.mubr.f32.gmra.mrb[8].mxu1 %v494_v9  ;;  %v462_v25 = vadd.f32 %v1658_v52, %v461_v12 }
  0xfc   : > { %632 = vmatprep.mubr.f32.mxu1 %v1372_v3  ;;  %v501_v30 = vmax.f32 %v467_v28, 0.0 }
  0xfd   : > { %v1283_v15 = vpop.f32.mrb[12].mxu0  ;;  %v500_v27 = vmax.f32 %v462_v25, 0.0 }
  0xfe   : > { %v471_v16 = vpop.f32.mrb[13].mxu0  ;;  %v477_v32 = vadd.f32 %v1283_v15, %v1658_v52 }
  0xff   : > { %633 = vmatmul.mubr.f32.gmra.mrb[10].mxu1 %v495_v14  ;;  %v472_v29 = vadd.f32 %v1658_v52, %v471_v16 }
 0x100   : > { %638 = vmatprep.mubr.f32.mxu1 %v1372_v3  ;;  %v503_v34 = vmax.f32 %v477_v32, 0.0 }
 0x101   : > { %v1286_v19 = vpop.f32.mrb[14].mxu0  ;;  %v502_v31 = vmax.f32 %v472_v29, 0.0 }
 0x102   : > { %v481_v20 = vpop.f32.mrb[15].mxu0  ;;  %v487_v36 = vadd.f32 %v1286_v19, %v1658_v52 }
 0x103   : > { %639 = vmatmul.mubr.f32.gmra.mrb[12].mxu1 %v496_v17  ;;  %v482_v33 = vadd.f32 %v1658_v52, %v481_v20 }
 0x104   : > { %644 = vmatprep.mubr.f32.mxu1 %v1372_v3  ;;  %v505_v37 = vmax.f32 %v487_v36, 0.0 }
 0x105   : > { %v504_v35 = vmax.f32 %v482_v33, 0.0 }
 0x107   : > { %645 = vmatmul.mubr.f32.gmra.mrb[14].mxu1 %v497_v22 }
 0x108   : > { %650 = vmatprep.mubr.f32.mxu1 %v1372_v3 }
 0x10b   : > { %651 = vmatmul.mubr.f32.gmra.mrb[16].mxu1 %v498_v23 }
 0x10c   : > { %656 = vmatprep.mubr.f32.mxu1 %v1372_v3 }
 0x10f   : > { %657 = vmatmul.mubr.f32.gmra.mrb[18].mxu1 %v499_v26 }
 0x110   : > { %662 = vmatprep.mubr.f32.mxu1 %v1372_v3 }
 0x113   : > { %663 = vmatmul.mubr.f32.gmra.mrb[20].mxu1 %v500_v27 }
 0x114   : > { %668 = vmatprep.mubr.f32.mxu1 %v1372_v3 }
 0x117   : > { %669 = vmatmul.mubr.f32.gmra.mrb[22].mxu1 %v501_v30 }
 0x118   : > { %674 = vmatprep.mubr.f32.mxu1 %v1372_v3 }
 0x11b   : > { %675 = vmatmul.mubr.f32.gmra.mrb[24].mxu1 %v502_v31 }
 0x11c   : > { %680 = vmatprep.mubr.f32.mxu1 %v1372_v3 }
 0x11f   : > { %681 = vmatmul.mubr.f32.gmra.mrb[26].mxu1 %v503_v34 }
 0x120   : > { %686 = vmatprep.mubr.f32.mxu1 %v1372_v3 }
 0x123   : > { %687 = vmatmul.mubr.f32.gmra.mrb[28].mxu1 %v504_v35 }
 0x124   : > { %692 = vmatprep.mubr.f32.mxu1 %v1372_v3 }
 0x127   : > { %693 = vmatmul.mubr.f32.gmra.mrb[30].mxu1 %v505_v37 }
 0x1be   : > { %v604_v38 = vpop.f32.mrb[0].mxu1 }
 0x1bf   : > { %v606_v39 = vpop.f32.mrb[1].mxu1 }
 0x1c0   : > { %v1145_v40 = vpack.c.bf16 %v606_v39, %v604_v38  ;;  %795 = vmatprep.mubr.f32.mxu0 %v606_v39 }
 0x1c1   : > { %796 = vmatmul.mubr.f32.vlgmr.msra.gmra.mrb[16].mxu0 %v604_v38 }
 0x1c2   : > { %989 = vst [vmem:[%s1695_s8] sm:$0xff] %v1145_v40  ;;  %v610_v41 = vpop.f32.mrb[2].mxu1 }
 0x1c3   : > { %v612_v42 = vpop.f32.mrb[3].mxu1 }
 0x1c4   : > { %v1146_v3 = vpack.c.bf16 %v612_v42, %v610_v41  ;;  %800 = vmatprep.mubr.f32.mxu0 %v612_v42 }
 0x1c5   : > { %801 = vmatmul.mubr.f32.gmra.mrb[18].mxu0 %v610_v41 }
 0x1c6   : > { %990 = vst [vmem:[%s1695_s8 + $0x8] sm:$0xff] %v1146_v3  ;;  %v616_v43 = vpop.f32.mrb[4].mxu1 }
 0x1c7   : > { %v618_v44 = vpop.f32.mrb[5].mxu1 }
 0x1c8   : > { %v1147_v45 = vpack.c.bf16 %v618_v44, %v616_v43  ;;  %805 = vmatprep.mubr.f32.mxu0 %v618_v44 }
 0x1c9   : > { %806 = vmatmul.mubr.f32.gmra.mrb[20].mxu0 %v616_v43 }
 0x1ca   : > { %991 = vst [vmem:[%s1695_s8 + $0x10] sm:$0xff] %v1147_v45  ;;  %v622_v46 = vpop.f32.mrb[6].mxu1 }
 0x1cb   : > { %v624_v47 = vpop.f32.mrb[7].mxu1 }
 0x1cc   : > { %v1148_v48 = vpack.c.bf16 %v624_v47, %v622_v46  ;;  %810 = vmatprep.mubr.f32.mxu0 %v624_v47 }
 0x1cd   : > { %811 = vmatmul.mubr.f32.gmra.mrb[22].mxu0 %v622_v46 }
 0x1ce   : > { %992 = vst [vmem:[%s1695_s8 + $0x18] sm:$0xff] %v1148_v48  ;;  %v628_v49 = vpop.f32.mrb[8].mxu1 }
 0x1cf   : > { %v630_v50 = vpop.f32.mrb[9].mxu1 }
 0x1d0   : > { %v1149_v51 = vpack.c.bf16 %v630_v50, %v628_v49  ;;  %815 = vmatprep.mubr.f32.mxu0 %v630_v50 }
 0x1d1   : > { %816 = vmatmul.mubr.f32.gmra.mrb[24].mxu0 %v628_v49 }
 0x1d2   : > { %993 = vst [vmem:[%s1695_s8 + $0x20] sm:$0xff] %v1149_v51  ;;  %v634_v52 = vpop.f32.mrb[10].mxu1 }
 0x1d3   : > { %v636_v53 = vpop.f32.mrb[11].mxu1 }
 0x1d4   : > { %v1150_v54 = vpack.c.bf16 %v636_v53, %v634_v52  ;;  %820 = vmatprep.mubr.f32.mxu0 %v636_v53 }
 0x1d5   : > { %821 = vmatmul.mubr.f32.gmra.mrb[26].mxu0 %v634_v52 }
 0x1d6   : > { %994 = vst [vmem:[%s1695_s8 + $0x28] sm:$0xff] %v1150_v54  ;;  %v640_v55 = vpop.f32.mrb[12].mxu1 }
 0x1d7   : > { %v642_v56 = vpop.f32.mrb[13].mxu1 }
 0x1d8   : > { %v1151_v57 = vpack.c.bf16 %v642_v56, %v640_v55  ;;  %825 = vmatprep.mubr.f32.mxu0 %v642_v56 }
 0x1d9   : > { %826 = vmatmul.mubr.f32.gmra.mrb[28].mxu0 %v640_v55 }
 0x1da   : > { %995 = vst [vmem:[%s1695_s8 + $0x30] sm:$0xff] %v1151_v57  ;;  %v646_v58 = vpop.f32.mrb[14].mxu1 }
 0x1db   : > { %v648_v59 = vpop.f32.mrb[15].mxu1 }
 0x1dc   : > { %v1152_v60 = vpack.c.bf16 %v648_v59, %v646_v58  ;;  %830 = vmatprep.mubr.f32.mxu0 %v648_v59 }
 0x1dd   : > { %831 = vmatmul.mubr.f32.gmra.mrb[30].mxu0 %v646_v58 }
 0x1de   : > { %996 = vst [vmem:[%s1695_s8 + $0x38] sm:$0xff] %v1152_v60  ;;  %v652_v61 = vpop.f32.mrb[16].mxu1 }
 0x1df   : > { %v654_v62 = vpop.f32.mrb[17].mxu1 }
 0x1e0   : > { %v1153_v63 = vpack.c.bf16 %v654_v62, %v652_v61  ;;  %835 = vmatprep.mubr.f32.mxu0 %v654_v62 }
 0x1e1   : > { %836 = vmatmul.mubr.f32.gmra.mrb[32].mxu0 %v652_v61 }
 0x1e2   : > { %997 = vst [vmem:[%s1695_s8 + $0x40] sm:$0xff] %v1153_v63  ;;  %v658_v0 = vpop.f32.mrb[18].mxu1 }
 0x1e3   : > { %v660_v1 = vpop.f32.mrb[19].mxu1 }
 0x1e4   : > { %v1154_v2 = vpack.c.bf16 %v660_v1, %v658_v0  ;;  %840 = vmatprep.mubr.f32.mxu0 %v660_v1 }
 0x1e5   : > { %841 = vmatmul.mubr.f32.gmra.mrb[34].mxu0 %v658_v0 }
 0x1e6   : > { %998 = vst [vmem:[%s1695_s8 + $0x48] sm:$0xff] %v1154_v2  ;;  %v664_v4 = vpop.f32.mrb[20].mxu1 }
 0x1e7   : > { %v666_v5 = vpop.f32.mrb[21].mxu1 }
 0x1e8   : > { %v1155_v6 = vpack.c.bf16 %v666_v5, %v664_v4  ;;  %845 = vmatprep.mubr.f32.mxu0 %v666_v5 }
 0x1e9   : > { %846 = vmatmul.mubr.f32.gmra.mrb[36].mxu0 %v664_v4 }
 0x1ea   : > { %999 = vst [vmem:[%s1695_s8 + $0x50] sm:$0xff] %v1155_v6  ;;  %v670_v7 = vpop.f32.mrb[22].mxu1 }
 0x1eb   : > { %v672_v8 = vpop.f32.mrb[23].mxu1 }
 0x1ec   : > { %v1156_v9 = vpack.c.bf16 %v672_v8, %v670_v7  ;;  %850 = vmatprep.mubr.f32.mxu0 %v672_v8 }
 0x1ed   : > { %851 = vmatmul.mubr.f32.gmra.mrb[38].mxu0 %v670_v7 }
 0x1ee   : > { %1000 = vst [vmem:[%s1695_s8 + $0x58] sm:$0xff] %v1156_v9  ;;  %v676_v10 = vpop.f32.mrb[24].mxu1 }
 0x1ef   : > { %v678_v11 = vpop.f32.mrb[25].mxu1 }
 0x1f0   : > { %v1157_v12 = vpack.c.bf16 %v678_v11, %v676_v10  ;;  %855 = vmatprep.mubr.f32.mxu0 %v678_v11 }
 0x1f1   : > { %856 = vmatmul.mubr.f32.gmra.mrb[40].mxu0 %v676_v10 }
 0x1f2   : > { %1001 = vst [vmem:[%s1695_s8 + $0x60] sm:$0xff] %v1157_v12  ;;  %v682_v13 = vpop.f32.mrb[26].mxu1 }
 0x1f3   : > { %v684_v14 = vpop.f32.mrb[27].mxu1 }
 0x1f4   : > { %v1158_v15 = vpack.c.bf16 %v684_v14, %v682_v13  ;;  %860 = vmatprep.mubr.f32.mxu0 %v684_v14 }
 0x1f5   : > { %861 = vmatmul.mubr.f32.gmra.mrb[42].mxu0 %v682_v13 }
 0x1f6   : > { %1002 = vst [vmem:[%s1695_s8 + $0x68] sm:$0xff] %v1158_v15  ;;  %v688_v16 = vpop.f32.mrb[28].mxu1 }
 0x1f7   : > { %v690_v17 = vpop.f32.mrb[29].mxu1 }
 0x1f8   : > { %v1159_v18 = vpack.c.bf16 %v690_v17, %v688_v16  ;;  %865 = vmatprep.mubr.f32.mxu0 %v690_v17 }
 0x1f9   : > { %866 = vmatmul.mubr.f32.gmra.mrb[44].mxu0 %v688_v16 }
 0x1fa   : > { %1003 = vst [vmem:[%s1695_s8 + $0x70] sm:$0xff] %v1159_v18  ;;  %v694_v19 = vpop.f32.mrb[30].mxu1 }
 0x1fb   : > { %v696_v20 = vpop.f32.mrb[31].mxu1 }
 0x1fc   : > { %v1160_v21 = vpack.c.bf16 %v696_v20, %v694_v19  ;;  %870 = vmatprep.mubr.f32.mxu0 %v696_v20 }
 0x1fd   : > { %871 = vmatmul.mubr.f32.gmra.mrb[46].mxu0 %v694_v19 }
 0x1fe   : > { %1004 = vst [vmem:[%s1695_s8 + $0x78] sm:$0xff] %v1160_v21 }
 0x294   : > { %v1211_v22 = vpop.f32.mrb[16].mxu0 }
 0x295   : > { %v1212_v23 = vpop.f32.mrb[17].mxu0 }
 0x296   : > { %v1213_v24 = vadd.f32 %v1212_v23, %v1211_v22 }
 0x298   : > { %877 = vst.msk [vmem:[%s1717_s11] sm:$0xff] %vm876_vm1, %v1213_v24  ;;  %v1214_v25 = vpop.f32.mrb[18].mxu0 }
 0x299   : > { %v1215_v26 = vpop.f32.mrb[19].mxu0 }
 0x29a   : > { %v1216_v27 = vadd.f32 %v1215_v26, %v1214_v25 }
 0x29c   : > { %878 = vst.msk [vmem:[%s1717_s11 + $0x8] sm:$0xff] %vm876_vm1, %v1216_v27  ;;  %v1217_v28 = vpop.f32.mrb[20].mxu0 }
 0x29d   : > { %v1218_v29 = vpop.f32.mrb[21].mxu0 }
 0x29e   : > { %v1219_v30 = vadd.f32 %v1218_v29, %v1217_v28 }
 0x2a0   : > { %879 = vst.msk [vmem:[%s1717_s11 + $0x10] sm:$0xff] %vm876_vm1, %v1219_v30  ;;  %v1220_v31 = vpop.f32.mrb[22].mxu0 }
 0x2a1   : > { %v1221_v32 = vpop.f32.mrb[23].mxu0 }
 0x2a2   : > { %v1222_v33 = vadd.f32 %v1221_v32, %v1220_v31 }
 0x2a4   : > { %880 = vst.msk [vmem:[%s1717_s11 + $0x18] sm:$0xff] %vm876_vm1, %v1222_v33  ;;  %v1223_v34 = vpop.f32.mrb[24].mxu0 }
 0x2a5   : > { %v1224_v35 = vpop.f32.mrb[25].mxu0 }
 0x2a6   : > { %v1225_v36 = vadd.f32 %v1224_v35, %v1223_v34 }
 0x2a8   : > { %881 = vst.msk [vmem:[%s1717_s11 + $0x20] sm:$0xff] %vm876_vm1, %v1225_v36  ;;  %v1226_v37 = vpop.f32.mrb[26].mxu0 }
 0x2a9   : > { %v1227_v38 = vpop.f32.mrb[27].mxu0 }
 0x2aa   : > { %v1228_v39 = vadd.f32 %v1227_v38, %v1226_v37 }
 0x2ac   : > { %882 = vst.msk [vmem:[%s1717_s11 + $0x28] sm:$0xff] %vm876_vm1, %v1228_v39  ;;  %v1229_v40 = vpop.f32.mrb[28].mxu0 }
 0x2ad   : > { %v1230_v41 = vpop.f32.mrb[29].mxu0 }
 0x2ae   : > { %v1231_v42 = vadd.f32 %v1230_v41, %v1229_v40 }
 0x2b0   : > { %883 = vst.msk [vmem:[%s1717_s11 + $0x30] sm:$0xff] %vm876_vm1, %v1231_v42  ;;  %v1232_v3 = vpop.f32.mrb[30].mxu0 }
 0x2b1   : > { %v1233_v43 = vpop.f32.mrb[31].mxu0 }
 0x2b2   : > { %v1234_v44 = vadd.f32 %v1233_v43, %v1232_v3 }
 0x2b4   : > { %884 = vst.msk [vmem:[%s1717_s11 + $0x38] sm:$0xff] %vm876_vm1, %v1234_v44  ;;  %v1235_v45 = vpop.f32.mrb[32].mxu0 }
 0x2b5   : > { %v1236_v46 = vpop.f32.mrb[33].mxu0 }
 0x2b6   : > { %v1237_v47 = vadd.f32 %v1236_v46, %v1235_v45 }
 0x2b8   : > { %885 = vst.msk [vmem:[%s1717_s11 + $0x40] sm:$0xff] %vm876_vm1, %v1237_v47  ;;  %v1238_v48 = vpop.f32.mrb[34].mxu0 }
 0x2b9   : > { %v1239_v49 = vpop.f32.mrb[35].mxu0 }
 0x2ba   : > { %v1240_v50 = vadd.f32 %v1239_v49, %v1238_v48 }
 0x2bc   : > { %886 = vst.msk [vmem:[%s1717_s11 + $0x48] sm:$0xff] %vm876_vm1, %v1240_v50  ;;  %v1241_v51 = vpop.f32.mrb[36].mxu0 }
 0x2bd   : > { %v1242_v52 = vpop.f32.mrb[37].mxu0 }
 0x2be   : > { %v1243_v53 = vadd.f32 %v1242_v52, %v1241_v51 }
 0x2c0   : > { %887 = vst.msk [vmem:[%s1717_s11 + $0x50] sm:$0xff] %vm876_vm1, %v1243_v53  ;;  %v1244_v54 = vpop.f32.mrb[38].mxu0 }
 0x2c1   : > { %v1245_v55 = vpop.f32.mrb[39].mxu0 }
 0x2c2   : > { %v1246_v56 = vadd.f32 %v1245_v55, %v1244_v54 }
 0x2c4   : > { %888 = vst.msk [vmem:[%s1717_s11 + $0x58] sm:$0xff] %vm876_vm1, %v1246_v56  ;;  %v1247_v57 = vpop.f32.mrb[40].mxu0 }
 0x2c5   : > { %v1248_v58 = vpop.f32.mrb[41].mxu0 }
 0x2c6   : > { %v1249_v59 = vadd.f32 %v1248_v58, %v1247_v57 }
 0x2c8   : > { %889 = vst.msk [vmem:[%s1717_s11 + $0x60] sm:$0xff] %vm876_vm1, %v1249_v59  ;;  %v1250_v60 = vpop.f32.mrb[42].mxu0 }
 0x2c9   : > { %v1251_v61 = vpop.f32.mrb[43].mxu0 }
 0x2ca   : > { %v1252_v62 = vadd.f32 %v1251_v61, %v1250_v60 }
 0x2cc   : > { %890 = vst.msk [vmem:[%s1717_s11 + $0x68] sm:$0xff] %vm876_vm1, %v1252_v62  ;;  %v1253_v63 = vpop.f32.mrb[44].mxu0 }
 0x2cd   : > { %v1254_v0 = vpop.f32.mrb[45].mxu0 }
 0x2ce   : > { %v1255_v1 = vadd.f32 %v1254_v0, %v1253_v63 }
 0x2d0   : > { %891 = vst.msk [vmem:[%s1717_s11 + $0x70] sm:$0xff] %vm876_vm1, %v1255_v1  ;;  %v1256_v2 = vpop.f32.mrb[46].mxu0 }
 0x2d1   : > { %v1257_v4 = vpop.f32.mrb[47].mxu0 }
 0x2d2   : > { %v1258_v5 = vadd.f32 %v1257_v4, %v1256_v2 }
 0x2d4   : > { %892 = vst.msk [vmem:[%s1717_s11 + $0x78] sm:$0xff] %vm876_vm1, %v1258_v5 }
 0x2d5 PF: > { %s17_s21 = sadd.s32 1, %s1370_s21  }
 0x2d6   : > { %p14_p4 = scmp.ge.s32.totalorder %s17_s21, 4  }
 0x2d8   :  { %16 = sbr.rel (!%p14_p4) target bundleno = 1 (0x1), region = 82 }

// kernel: improved_gnn_forward.5
= control target key start
LH: loop header
LB: loop body
LE: loop exit
PB: predicated region body
PF: predicated region fallthrough
CT: control target
= control target key end

     0   :  { %s2279_s13 = smov 0   ;;  %s3173_s0 = inlined_call_operand.vmem [shape: bf16[256,256], index: 0, kind: input, shape index: {}]   ;;  %s3174_s1 = inlined_call_operand.vmem [shape: bf16[256,128], index: 1, kind: input, shape index: {}]   ;;  %s3175_s2 = inlined_call_operand.vmem [shape: f32[256,2], index: 2, kind: input, shape index: {}]   ;;  %s3176_s3 = inlined_call_operand.vmem [shape: f32[1,256], index: 3, kind: input, shape index: {}]   ;;  %s3177_s4 = inlined_call_operand.vmem [shape: f32[1,128], index: 4, kind: input, shape index: {}]   ;;  %s3178_s5 = inlined_call_operand.vmem [shape: f32[1,128], index: 5, kind: input, shape index: {}]   ;;  %s3179_s6 = inlined_call_operand.vmem [shape: f32[128,64], index: 6, kind: input, shape index: {}]   ;;  %s3180_s7 = inlined_call_operand.vmem [shape: f32[1,64], index: 7, kind: input, shape index: {}]   ;;  %s3181_s8 = inlined_call_operand.vmem [shape: f32[64,128], index: 8, kind: input, shape index: {}]   ;;  %s3182_s9 = inlined_call_operand.vmem [shape: f32[1,128], index: 9, kind: input, shape index: {}]   ;;  %s3183_s10 = inlined_call_operand.vmem [shape: f32[256,128], index: 10, kind: output, shape index: {}]  }
   0x1 LB: > { %s1775_s14 = sadd.s32 4294967295, %s2220_s13   ;;  %p1779_p0 = scmp.ge.s32.totalorder %s2220_s13, 1  ;;  %s2220_s13 = sphi %s2279_s13, %s20_s13  }
   0x2   : > { %p325_p1 = scmp.lt.s32.totalorder %s2220_s13, 3 }
   0x4   : > { %p326_p2 = pnand %p1779_p0, %p325_p1 }
   0x6   : > { %329 = sbr.rel (%p326_p2) target bundleno = 1045 (0x415), region = 60 }
   0xd   : > { %s1780_s15 = sshll.u32 %s1775_s14, 4  ;;  %v2222_v0 = vmov 1   ;;  %v2102_v17 = vld [vmem:[%s3174_s1 + $0x40] sm:$0xff]   ;;  %v2104_v19 = vld [vmem:[%s3174_s1 + $0x48] sm:$0xff]   ;;  %v2106_v21 = vld [vmem:[%s3174_s1 + $0x50] sm:$0xff]   ;;  %v553_v23 = vlaneseq  ;;  %v2223_v34 = vmov 0  }
   0xe   : > { %2101 = vset.pattern.permute.xlu1 %v2222_v0  ;;  %2100 = vset.pattern.permute.xlu0 %v2222_v0  ;;  %p370_p3 = scmp.lt.s32.totalorder %s1780_s15, 31  ;;  %v2103_v18 = vld [vmem:[%s3174_s1] sm:$0xff]   ;;  %v2105_v20 = vld [vmem:[%s3174_s1 + $0x8] sm:$0xff]   ;;  %v2107_v22 = vld [vmem:[%s3174_s1 + $0x10] sm:$0xff]  }
   0xf   : > { %1826 = vmatprep.subr.bf16.mxu0 %v2102_v17  ;;  %v554_v24 = vshrl.u32 %v553_v23, 7  ;;  %v439_v32 = vld [vmem:[%s3176_s3] sm:$0x3] }
  0x10   : > { %s3267_s15 = smov (!%p370_p3, %s1780_s15), 31  ;;  %1827 = vmatpush3.bf16.msra.mxu0 %v2103_v18 }
  0x11   : > { %s2287_s16 = sshll.u32 %s3267_s15, 3  ;;  %1828 = vmatprep.subr.bf16.mxu0 %v2104_v19  ;;  %v555_v29 = vsub.s32 0, %v554_v24  ;;  %v559_v30 = vsub.s32 1, %v554_v24 }
  0x12   : > { %s380_s19 = scalar_lea.vmem %s3175_s2, %s2287_s16  ;;  %s2315_s15 = scalar_lea.vmem %s3173_s0, %s2287_s16 }
  0x13   : > { %v425_v1 = vld [vmem:[%s380_s19 + $0x10] sm:$0xff]  ;;  %v423_v2 = vld [vmem:[%s380_s19] sm:$0xff]  ;;  %v426_v3 = vld [vmem:[%s380_s19 + $0x18] sm:$0xff]  ;;  %v2332_v39 = vrot.slane %v439_v32, %v555_v29  ;;  %v2334_v40 = vrot.slane %v439_v32, %v559_v30  ;;  %s3152_s25 = scalar_lea.vmem %s3183_s10, %s2287_s16 }
  0x14   : > { %484 = vperm.xlu1 %2101, %v425_v1   ;;  %474 = vperm.xlu0 %2100, %v423_v2   ;;  %v424_v4 = vld [vmem:[%s380_s19 + $0x8] sm:$0xff]  ;;  %v427_v6 = vld [vmem:[%s380_s19 + $0x20] sm:$0xff]  ;;  %v430_v7 = vld [vmem:[%s380_s19 + $0x38] sm:$0xff] }
  0x15   : > { %v428_v5 = vld [vmem:[%s380_s19 + $0x28] sm:$0xff]  ;;  %v429_v8 = vld [vmem:[%s380_s19 + $0x30] sm:$0xff]  ;;  %v431_v10 = vld [vmem:[%s380_s19 + $0x40] sm:$0xff]  ;;  %1829 = vmatpush3.bf16.msra.mxu0 %v2105_v20 }
  0x16   : > { %v432_v9 = vld [vmem:[%s380_s19 + $0x48] sm:$0xff]  ;;  %v434_v11 = vld [vmem:[%s380_s19 + $0x58] sm:$0xff]  ;;  %v433_v12 = vld [vmem:[%s380_s19 + $0x50] sm:$0xff]  ;;  %1830 = vmatprep.subr.bf16.mxu0 %v2106_v21 }
  0x17   : > { %v436_v13 = vld [vmem:[%s380_s19 + $0x68] sm:$0xff]  ;;  %v435_v14 = vld [vmem:[%s380_s19 + $0x60] sm:$0xff]  ;;  %v438_v15 = vld [vmem:[%s380_s19 + $0x78] sm:$0xff] }
  0x18   : > { %489 = vperm.xlu1 %2101, %v426_v3   ;;  %479 = vperm.xlu0 %2100, %v424_v4   ;;  %v437_v16 = vld [vmem:[%s380_s19 + $0x70] sm:$0xff]  ;;  %v391_v25 = vld [vmem:[%s2315_s15] sm:$0xff]  ;;  %v392_v26 = vld [vmem:[%s2315_s15 + $0x8] sm:$0xff] }
  0x19   : > { %1831 = vmatpush3.bf16.msra.mxu0 %v2107_v22  ;;  %v393_v27 = vld [vmem:[%s2315_s15 + $0x10] sm:$0xff]  ;;  %vm407_vm0 = vcmp.gt.bf16.partialorder %v391_v25, 0  ;;  %v395_v28 = vld [vmem:[%s2315_s15 + $0x20] sm:$0xff]  ;;  %vm408_vm1 = vcmp.gt.bf16.partialorder %v392_v26, 0  ;;  %v394_v31 = vld [vmem:[%s2315_s15 + $0x18] sm:$0xff] }
  0x1a   : > { %vm409_vm2 = vcmp.gt.bf16.partialorder %v393_v27, 0  ;;  %v397_v33 = vld [vmem:[%s2315_s15 + $0x30] sm:$0xff]  ;;  %v691_v35 = vsel %vm407_vm0, 65537, %v2223_v34  ;;  %vm411_vm3 = vcmp.gt.bf16.partialorder %v395_v28, 0  ;;  %v396_v36 = vld [vmem:[%s2315_s15 + $0x28] sm:$0xff]  ;;  %v2329_v37 = vsel %vm408_vm1, 65537, %v2223_v34 }
  0x1b   : > { %vm410_vm4 = vcmp.gt.bf16.partialorder %v394_v31, 0  ;;  %v398_v38 = vld [vmem:[%s2315_s15 + $0x38] sm:$0xff]  ;;  %v2337_v41 = vsel %vm409_vm2, 65537, %v2223_v34  ;;  %vm413_vm5 = vcmp.gt.bf16.partialorder %v397_v33, 0  ;;  %v399_v42 = vld [vmem:[%s2315_s15 + $0x40] sm:$0xff]  ;;  %v707_v43 = vunpack.c.l.b16 %v691_v35  ;;  %v401_v46 = vld [vmem:[%s2315_s15 + $0x50] sm:$0xff] }
  0x1c   : > { %499 = vperm.xlu1 %2101, %v428_v5   ;;  %494 = vperm.xlu0 %2100, %v427_v6   ;;  %v708_v44 = vunpack.c.h.b16 %v691_v35  ;;  %v2341_v45 = vsel %vm411_vm3, 65537, %v2223_v34  ;;  %vm412_vm6 = vcmp.gt.bf16.partialorder %v396_v36, 0  ;;  %v400_v47 = vld [vmem:[%s2315_s15 + $0x48] sm:$0xff]  ;;  %v709_v48 = vunpack.c.l.b16 %v2329_v37  ;;  %v403_v54 = vld [vmem:[%s2315_s15 + $0x60] sm:$0xff]  ;;  %v402_v55 = vld [vmem:[%s2315_s15 + $0x58] sm:$0xff] }
  0x1d   : > { %v710_v49 = vunpack.c.h.b16 %v2329_v37  ;;  %v2348_v50 = vsel %vm410_vm4, 65537, %v2223_v34  ;;  %vm414_vm7 = vcmp.gt.bf16.partialorder %v398_v38, 0  ;;  %v711_v51 = vunpack.c.l.b16 %v2337_v41  ;;  %v405_v62 = vld [vmem:[%s2315_s15 + $0x70] sm:$0xff]  ;;  %v404_v63 = vld [vmem:[%s2315_s15 + $0x68] sm:$0xff]  ;;  %v2108_v26 = vld [vmem:[%s3174_s1 + $0x58] sm:$0xff]  }
  0x1e   : > { %v712_v52 = vunpack.c.h.b16 %v2337_v41  ;;  %v2353_v53 = vsel %vm413_vm5, 65537, %v2223_v34  ;;  %vm415_vm8 = vcmp.gt.bf16.partialorder %v399_v42, 0  ;;  %v715_v56 = vunpack.c.l.b16 %v2341_v45  ;;  %1832 = vmatprep.subr.bf16.mxu0 %v2108_v26 }
  0x1f   : > { %v2359_v57 = vsel %vm412_vm6, 65537, %v2223_v34  ;;  %vm417_vm9 = vcmp.gt.bf16.partialorder %v401_v46, 0  ;;  %vm416_vm10 = vcmp.gt.bf16.partialorder %v400_v47, 0  ;;  %v716_v58 = vunpack.c.h.b16 %v2341_v45 }
  0x20   : > { %509 = vperm.xlu1 %2101, %v430_v7   ;;  %504 = vperm.xlu0 %2100, %v429_v8   ;;  %v713_v59 = vunpack.c.l.b16 %v2348_v50  ;;  %v714_v60 = vunpack.c.h.b16 %v2348_v50  ;;  %v2365_v61 = vsel %vm414_vm7, 65537, %v2223_v34  ;;  %v719_v0 = vunpack.c.l.b16 %v2353_v53  ;;  %v406_v8 = vld [vmem:[%s2315_s15 + $0x78] sm:$0xff] }
  0x21   : > { %v2371_v1 = vsel %vm415_vm8, 65537, %v2223_v34  ;;  %vm419_vm11 = vcmp.gt.bf16.partialorder %v403_v54, 0  ;;  %vm418_vm12 = vcmp.gt.bf16.partialorder %v402_v55, 0  ;;  %v720_v2 = vunpack.c.h.b16 %v2353_v53 }
  0x22   : > { %v717_v3 = vunpack.c.l.b16 %v2359_v57  ;;  %v2376_v4 = vsel %vm417_vm9, 65537, %v2223_v34  ;;  %v2379_v5 = vsel %vm416_vm10, 65537, %v2223_v34  ;;  %v718_v6 = vunpack.c.h.b16 %v2359_v57 }
  0x23   : > { %v721_v7 = vunpack.c.l.b16 %v2365_v61  ;;  %vm421_vm13 = vcmp.gt.bf16.partialorder %v405_v62, 0  ;;  %vm420_vm14 = vcmp.gt.bf16.partialorder %v404_v63, 0  ;;  %vm2384_vm15 = vcmp.ne.s32.totalorder %v707_v43, 0 }
  0x24   : > { %519 = vperm.xlu1 %2101, %v432_v9   ;;  %514 = vperm.xlu0 %2100, %v431_v10   ;;  %vm2388_vm0 = vcmp.ne.s32.totalorder %v708_v44, 0  ;;  %v725_v17 = vunpack.c.l.b16 %v2379_v5  ;;  %vm2404_vm1 = vcmp.ne.s32.totalorder %v711_v51, 0  ;;  %v728_v20 = vunpack.c.h.b16 %v2376_v4 }
  0x25   : > { %v2410_v21 = vsel %vm421_vm13, 65537, %v2223_v34  ;;  %v2413_v22 = vsel %vm420_vm14, 65537, %v2223_v34  ;;  %vm422_vm2 = vcmp.gt.bf16.partialorder %v406_v8, 0  ;;  %vm2423_vm3 = vcmp.ne.s32.totalorder %v709_v48, 0 }
  0x26   : > { %vm2427_vm4 = vcmp.ne.s32.totalorder %v712_v52, 0  ;;  %v2436_v42 = vsel %vm422_vm2, 65537, %v2223_v34  ;;  %vm2440_vm5 = vcmp.ne.s32.totalorder %v710_v49, 0  ;;  %vm2462_vm10 = vcmp.ne.s32.totalorder %v715_v56, 0 }
  0x28   : > { %529 = vperm.xlu1 %2101, %v434_v11   ;;  %524 = vperm.xlu0 %2100, %v433_v12   ;;  %v723_v11 = vunpack.c.l.b16 %v2371_v1  ;;  %v722_v12 = vunpack.c.h.b16 %v2365_v61 }
  0x2c   : > { %539 = vperm.xlu1 %2101, %v436_v13   ;;  %534 = vperm.xlu0 %2100, %v435_v14   ;;  %v2395_v13 = vsel %vm419_vm11, 65537, %v2223_v34  ;;  %v2398_v14 = vsel %vm418_vm12, 65537, %v2223_v34  ;;  %vm2468_vm11 = vcmp.ne.s32.totalorder %v716_v58, 0  ;;  %vm2490_vm12 = vcmp.ne.s32.totalorder %v713_v59, 0 }
  0x30   : > { %549 = vperm.xlu1 %2101, %v438_v15   ;;  %544 = vperm.xlu0 %2100, %v437_v16   ;;  %v724_v15 = vunpack.c.h.b16 %v2371_v1  ;;  %v727_v16 = vunpack.c.l.b16 %v2376_v4 }
  0x93   : > { %v485_v23 = vpop.permute.xlu1 %484  ;;  %v475_v24 = vpop.permute.xlu0 %474 }
  0x94   : > { %v567_v29 = vadd.f32 %v2332_v39, %v485_v23  ;;  %v568_v30 = vadd.f32 %v2334_v40, %v485_v23  ;;  %v563_v31 = vadd.f32 %v2332_v39, %v475_v24  ;;  %v564_v32 = vadd.f32 %v2334_v40, %v475_v24 }
  0x96   : > { %v631_v43 = vmul.f32 0.2, %v567_v29  ;;  %v632_v44 = vmul.f32 0.2, %v568_v30  ;;  %v627_v46 = vmul.f32 0.2, %v563_v31 }
  0x97   : > { %v628_v51 = vmul.f32 0.2, %v564_v32  ;;  %v490_v52 = vpop.permute.xlu1 %489  ;;  %v480_v54 = vpop.permute.xlu0 %479  ;;  %vm595_vm6 = vcmp.ge.f32.partialorder %v563_v31, 0.0  ;;  %vm596_vm7 = vcmp.ge.f32.partialorder %v564_v32, 0.0  ;;  %vm599_vm8 = vcmp.ge.f32.partialorder %v567_v29, 0.0 }
  0x98   : > { %v2446_v34 = vadd.f32 %v2332_v39, %v490_v52  ;;  %v2449_v55 = vadd.f32 %v2334_v40, %v490_v52  ;;  %v565_v37 = vadd.f32 %v2332_v39, %v480_v54  ;;  %v566_v49 = vadd.f32 %v2334_v40, %v480_v54 }
  0x99   : > { %v659_v62 = vsel %vm595_vm6, %v563_v31, %v627_v46  ;;  %v660_v63 = vsel %vm596_vm7, %v564_v32, %v628_v51  ;;  %vm600_vm9 = vcmp.ge.f32.partialorder %v568_v30, 0.0  ;;  %v663_v38 = vsel %vm599_vm8, %v567_v29, %v631_v43 }
  0x9a   : > { %v2455_v23 = vmul.f32 0.2, %v2446_v34  ;;  %v2458_v24 = vmul.f32 0.2, %v2449_v55  ;;  %v629_v41 = vmul.f32 0.2, %v565_v37  ;;  %v664_v56 = vsel %vm600_vm9, %v568_v30, %v632_v44 }
  0x9b   : > { %v630_v32 = vmul.f32 0.2, %v566_v49  ;;  %v500_v46 = vpop.permute.xlu1 %499  ;;  %v495_v51 = vpop.permute.xlu0 %494  ;;  %v2474_v54 = vsel %vm2384_vm15, %v659_v62, -1e+30  ;;  %v2478_v29 = vsel %vm2388_vm0, %v660_v63, -1e+30 }
  0x9c   : > { %v2481_v43 = vadd.f32 %v2332_v39, %v500_v46  ;;  %v2484_v45 = vadd.f32 %v2334_v40, %v500_v46  ;;  %v571_v58 = vadd.f32 %v2332_v39, %v495_v51  ;;  %v572_v8 = vadd.f32 %v2334_v40, %v495_v51 }
  0x9d   : > { %v803_v10 = vmax.f32 %v2474_v54, %v2478_v29  ;;  %vm597_vm13 = vcmp.ge.f32.partialorder %v565_v37, 0.0  ;;  %vm598_vm14 = vcmp.ge.f32.partialorder %v566_v49, 0.0  ;;  %v2498_v30 = vsel %vm2404_vm1, %v663_v38, -1e+30 }
  0x9e   : > { %vm2502_vm15 = vcmp.ne.s32.totalorder %v714_v60, 0  ;;  %v2507_v59 = vmul.f32 0.2, %v2481_v43  ;;  %v2510_v62 = vmul.f32 0.2, %v2484_v45  ;;  %v661_v46 = vsel %vm597_vm13, %v565_v37, %v629_v41 }
  0x9f   : > { %v635_v63 = vmul.f32 0.2, %v571_v58  ;;  %v636_v51 = vmul.f32 0.2, %v572_v8  ;;  %804 = vmax.xlane.f32.xlu0 %v803_v10  ;;  %v510_v48 = vpop.permute.xlu1 %509  ;;  %v505_v19 = vpop.permute.xlu0 %504  ;;  %v662_v38 = vsel %vm598_vm14, %v566_v49, %v630_v32  ;;  %v2514_v50 = vsel %vm2423_vm3, %v661_v46, -1e+30 }
  0xa0   : > { %v2518_v60 = vsel %vm2427_vm4, %v664_v56, -1e+30  ;;  %v2521_v36 = vadd.f32 %v2332_v39, %v510_v48  ;;  %v2524_v28 = vadd.f32 %v2334_v40, %v510_v48  ;;  %v575_v41 = vadd.f32 %v2332_v39, %v505_v19 }
  0xa1   : > { %v576_v37 = vadd.f32 %v2334_v40, %v505_v19  ;;  %vm2530_vm0 = vcmp.ne.s32.totalorder %v719_v0, 0  ;;  %vm2536_vm1 = vcmp.ne.s32.totalorder %v720_v2, 0  ;;  %v2542_v48 = vsel %vm2440_vm5, %v662_v38, -1e+30 }
  0xa2   : > { %v809_v49 = vmax.f32 %v2498_v30, %v2518_v60  ;;  %vm603_vm2 = vcmp.ge.f32.partialorder %v571_v58, 0.0  ;;  %vm604_vm3 = vcmp.ge.f32.partialorder %v572_v8, 0.0  ;;  %v2547_v0 = vmul.f32 0.2, %v2521_v36 }
  0xa3   : > { %v2550_v32 = vmul.f32 0.2, %v2524_v28  ;;  %v639_v53 = vmul.f32 0.2, %v575_v41  ;;  %v806_v2 = vmax.f32 %v2514_v50, %v2542_v48  ;;  %v640_v56 = vmul.f32 0.2, %v576_v37  ;;  %v520_v47 = vpop.permute.xlu1 %519  ;;  %v515_v10 = vpop.permute.xlu0 %514 }
  0xa4   : > { %810 = vmax.xlane.f32.xlu0 %v809_v49  ;;  %v667_v46 = vsel %vm603_vm2, %v571_v58, %v635_v63  ;;  %v668_v19 = vsel %vm604_vm3, %v572_v8, %v636_v51  ;;  %vm601_vm4 = vcmp.ge.f32.partialorder %v2446_v34, 0.0  ;;  %vm2557_vm5 = vcmp.ne.s32.totalorder %v717_v3, 0 }
  0xa5   : > { %vm2563_vm6 = vcmp.ne.s32.totalorder %v718_v6, 0  ;;  %807 = vmax.xlane.f32.xlu1 %v806_v2  ;;  %v2568_v49 = vadd.f32 %v2332_v39, %v520_v47  ;;  %v2571_v8 = vadd.f32 %v2334_v40, %v520_v47  ;;  %v2574_v58 = vadd.f32 %v2332_v39, %v515_v10 }
  0xa6   : > { %v2577_v3 = vadd.f32 %v2334_v40, %v515_v10  ;;  %v2581_v57 = vsel %vm2462_vm10, %v667_v46, -1e+30  ;;  %v2585_v6 = vsel %vm2468_vm11, %v668_v19, -1e+30  ;;  %vm602_vm7 = vcmp.ge.f32.partialorder %v2449_v55, 0.0 }
  0xa7   : > { %v665_v63 = vsel %vm601_vm4, %v2446_v34, %v2455_v23  ;;  %v2591_v51 = vmul.f32 0.2, %v2568_v49  ;;  %v2594_v2 = vmul.f32 0.2, %v2571_v8  ;;  %v643_v47 = vmul.f32 0.2, %v2574_v58  ;;  %v530_v46 = vpop.permute.xlu1 %529  ;;  %v525_v19 = vpop.permute.xlu0 %524 }
  0xa8   : > { %v815_v52 = vmax.f32 %v2581_v57, %v2585_v6  ;;  %vm2601_vm8 = vcmp.ne.s32.totalorder %v723_v11, 0  ;;  %v644_v10 = vmul.f32 0.2, %v2577_v3  ;;  %v666_v34 = vsel %vm602_vm7, %v2449_v55, %v2458_v24 }
  0xa9   : > { %v2610_v23 = vsel %vm2490_vm12, %v665_v63, -1e+30  ;;  %vm607_vm9 = vcmp.ge.f32.partialorder %v575_v41, 0.0  ;;  %vm2614_vm10 = vcmp.ne.s32.totalorder %v724_v15, 0  ;;  %vm2620_vm11 = vcmp.ne.s32.totalorder %v721_v7, 0 }
  0xaa   : > { %816 = vmax.xlane.f32.xlu1 %v815_v52  ;;  %v2626_v55 = vsel %vm2502_vm15, %v666_v34, -1e+30  ;;  %v2629_v24 = vadd.f32 %v2332_v39, %v530_v46  ;;  %v2632_v1 = vadd.f32 %v2334_v40, %v530_v46  ;;  %v2635_v15 = vadd.f32 %v2332_v39, %v525_v19 }
  0xab   : > { %vm2639_vm12 = vcmp.ne.s32.totalorder %v722_v12, 0  ;;  %v812_v9 = vmax.f32 %v2610_v23, %v2626_v55  ;;  %v2646_v44 = vadd.f32 %v2334_v40, %v525_v19  ;;  %vm608_vm13 = vcmp.ge.f32.partialorder %v576_v37, 0.0  ;;  %v535_v25 = vpop.permute.xlu0 %534 }
  0xac   : > { %v671_v63 = vsel %vm607_vm9, %v575_v41, %v639_v53  ;;  %v2649_v52 = vmul.f32 0.2, %v2629_v24  ;;  %v2652_v34 = vmul.f32 0.2, %v2632_v1  ;;  %v2655_v61 = vmul.f32 0.2, %v2635_v15  ;;  %v540_v53 = vpop.permute.xlu1 %539 }
  0xad   : > { %v672_v12 = vsel %vm608_vm13, %v576_v37, %v640_v56  ;;  %813 = vmax.xlane.f32.xlu0 %v812_v9  ;;  %v2658_v46 = vmul.f32 0.2, %v2646_v44  ;;  %v2662_v19 = vsel %vm2530_vm0, %v671_v63, -1e+30  ;;  %vm2670_vm14 = vcmp.ne.s32.totalorder %v727_v16, 0 }
  0xae   : > { %v2666_v41 = vsel %vm2536_vm1, %v672_v12, -1e+30  ;;  %vm605_vm15 = vcmp.ge.f32.partialorder %v2481_v43, 0.0  ;;  %vm606_vm0 = vcmp.ge.f32.partialorder %v2484_v45, 0.0  ;;  %v2680_v33 = vadd.f32 %v2332_v39, %v540_v53 }
  0xaf   : > { %3223 = vst [vmem:[#allocation2_spill] sm:$0xff] %v2666_v41  ;;  %v821_v56 = vmax.f32 %v2662_v19, %v2666_v41  ;;  %vm2684_vm1 = vcmp.ne.s32.totalorder %v728_v20, 0  ;;  %v669_v16 = vsel %vm605_vm15, %v2481_v43, %v2507_v59  ;;  %v670_v9 = vsel %vm606_vm0, %v2484_v45, %v2510_v62  ;;  %v2112_v41 = vld [vmem:[%s3174_s1 + $0x68] sm:$0xff]  }
  0xb0   : > { %v2693_v63 = vadd.f32 %v2334_v40, %v540_v53  ;;  %v2696_v12 = vadd.f32 %v2332_v39, %v535_v25  ;;  %vm2700_vm2 = vcmp.ne.s32.totalorder %v725_v17, 0  ;;  %v2706_v20 = vsel %vm2557_vm5, %v669_v16, -1e+30 }
  0xb1   : > { %822 = vmax.xlane.f32.xlu1 %v821_v56  ;;  %3230 = vst [vmem:[#allocation3_spill] sm:$0xff] %v2706_v20  ;;  %v2710_v43 = vsel %vm2563_vm6, %v670_v9, -1e+30  ;;  %v2713_v45 = vmul.f32 0.2, %v2680_v33  ;;  %v2716_v59 = vadd.f32 %v2334_v40, %v535_v25  ;;  %v3232_v17 = vunpack.c.h.b16 %v2379_v5  ;;  %v550_v56 = vpop.permute.xlu1 %549 }
  0xb2   : > { %3231 = vst [vmem:[#allocation4_spill] sm:$0xff] %v2710_v43  ;;  %v818_v38 = vmax.f32 %v2706_v20, %v2710_v43  ;;  %v2727_v53 = vmul.f32 0.2, %v2693_v63  ;;  %v651_v27 = vmul.f32 0.2, %v2696_v12  ;;  %vm611_vm4 = vcmp.ge.f32.partialorder %v2574_v58, 0.0  ;;  %v545_v43 = vpop.permute.xlu0 %544 }
  0xb3   : > { %vm2720_vm3 = vcmp.ne.s32.totalorder %v3232_v17, 0  ;;  %v3235_v25 = vunpack.c.l.b16 %v2395_v13  ;;  %v3238_v5 = vunpack.c.h.b16 %v2395_v13  ;;  %v652_v17 = vmul.f32 0.2, %v2716_v59 }
  0xb4   : > { %vm612_vm7 = vcmp.ge.f32.partialorder %v2577_v3, 0.0  ;;  %v675_v37 = vsel %vm611_vm4, %v2574_v58, %v643_v47  ;;  %vm609_vm9 = vcmp.ge.f32.partialorder %v2521_v36, 0.0  ;;  %819 = vmax.xlane.f32.xlu0 %v818_v38  ;;  %vm610_vm13 = vcmp.ge.f32.partialorder %v2524_v28, 0.0  ;;  %v2113_v47 = vld [vmem:[%s3174_s1 + $0x28] sm:$0xff]  }
  0xb5   : > { %vm2733_vm5 = vcmp.ne.s32.totalorder %v3235_v25, 0  ;;  %vm2739_vm6 = vcmp.ne.s32.totalorder %v3238_v5, 0  ;;  %v676_v25 = vsel %vm612_vm7, %v2577_v3, %v644_v10  ;;  %v2750_v20 = vsel %vm2601_vm8, %v675_v37, -1e+30 }
  0xb6   : > { %v673_v13 = vsel %vm609_vm9, %v2521_v36, %v2547_v0  ;;  %v3241_v5 = vunpack.c.l.b16 %v2398_v14  ;;  %v3244_v58 = vunpack.c.h.b16 %v2398_v14  ;;  %v2769_v3 = vsel %vm2614_vm10, %v676_v25, -1e+30 }
  0xb7   : > { %v674_v31 = vsel %vm610_vm13, %v2524_v28, %v2550_v32  ;;  %v2775_v36 = vsel %vm2620_vm11, %v673_v13, -1e+30  ;;  %v2778_v0 = vadd.f32 %v2332_v39, %v550_v56  ;;  %v3247_v14 = vunpack.c.l.b16 %v2410_v21  ;;  %v2109_v28 = vld [vmem:[%s3174_s1 + $0x18] sm:$0xff]  }
  0xb8   : > { %vm2757_vm15 = vcmp.ne.s32.totalorder %v3241_v5, 0  ;;  %vm2763_vm0 = vcmp.ne.s32.totalorder %v3244_v58, 0  ;;  %v827_v32 = vmax.f32 %v2750_v20, %v2769_v3  ;;  %v2796_v11 = vsel %vm2639_vm12, %v674_v31, -1e+30  ;;  %1833 = vmatpush3.bf16.msra.mxu0 %v2109_v28 }
  0xb9   : > { %vm2782_vm8 = vcmp.ne.s32.totalorder %v3247_v14, 0  ;;  %v2799_v37 = vadd.f32 %v2334_v40, %v550_v56  ;;  %v591_v38 = vadd.f32 %v2332_v39, %v545_v43  ;;  %v3250_v25 = vunpack.c.h.b16 %v2410_v21 }
  0xba   : > { %v824_v5 = vmax.f32 %v2775_v36, %v2796_v11  ;;  %v2811_v58 = vmul.f32 0.2, %v2778_v0  ;;  %v592_v7 = vadd.f32 %v2334_v40, %v545_v43  ;;  %vm615_vm11 = vcmp.ge.f32.partialorder %v2635_v15, 0.0  ;;  %828 = vmax.xlane.f32.xlu1 %v827_v32 }
  0xbb   : > { %vm2804_vm10 = vcmp.ne.s32.totalorder %v3250_v25, 0  ;;  %v3253_v56 = vunpack.c.l.b16 %v2413_v22  ;;  %v658_v21 = vmul.f32 0.2, %v2799_v37  ;;  %v655_v31 = vmul.f32 0.2, %v591_v38 }
  0xbc   : > { %vm616_vm4 = vcmp.ge.f32.partialorder %v2646_v44, 0.0  ;;  %v679_v14 = vsel %vm615_vm11, %v2635_v15, %v2655_v61  ;;  %v3256_v40 = vunpack.c.h.b16 %v2413_v22  ;;  %825 = vmax.xlane.f32.xlu0 %v824_v5  ;;  %v656_v25 = vmul.f32 0.2, %v592_v7 }
  0xbd   : > { %vm2817_vm12 = vcmp.ne.s32.totalorder %v3253_v56, 0  ;;  %v680_v26 = vsel %vm616_vm4, %v2646_v44, %v2658_v46  ;;  %v2835_v32 = vsel %vm2670_vm14, %v679_v14, -1e+30  ;;  %vm613_vm9 = vcmp.ge.f32.partialorder %v2568_v49, 0.0 }
  0xbe   : > { %vm2827_vm7 = vcmp.ne.s32.totalorder %v3256_v40, 0  ;;  %v2840_v15 = vsel %vm2684_vm1, %v680_v26, -1e+30  ;;  %vm614_vm13 = vcmp.ge.f32.partialorder %v2571_v8, 0.0  ;;  %v677_v22 = vsel %vm613_vm9, %v2568_v49, %v2591_v51  ;;  %v2110_v49 = vld [vmem:[%s3174_s1 + $0x60] sm:$0xff]  }
  0xbf   : > { %vm619_vm11 = vcmp.ge.f32.partialorder %v2696_v12, 0.0  ;;  %v833_v44 = vmax.f32 %v2835_v32, %v2840_v15  ;;  %v678_v18 = vsel %vm614_vm13, %v2571_v8, %v2594_v2  ;;  %v2852_v61 = vsel %vm2700_vm2, %v677_v22, -1e+30  ;;  %v2111_v8 = vld [vmem:[%s3174_s1 + $0x20] sm:$0xff]   ;;  %1834 = vmatprep.subr.bf16.mxu0 %v2110_v49 }
  0xc0   : > { %vm620_vm14 = vcmp.ge.f32.partialorder %v2716_v59, 0.0  ;;  %v3259_v46 = vunpack.c.l.b16 %v2436_v42  ;;  %v2869_v51 = vsel %vm2720_vm3, %v678_v18, -1e+30  ;;  %v683_v2 = vsel %vm619_vm11, %v2696_v12, %v651_v27  ;;  %1835 = vmatpush3.bf16.msra.mxu0 %v2111_v8 }
  0xc1   : > { %v684_v4 = vsel %vm620_vm14, %v2716_v59, %v652_v17  ;;  %vm617_vm2 = vcmp.ge.f32.partialorder %v2629_v24, 0.0  ;;  %834 = vmax.xlane.f32.xlu1 %v833_v44  ;;  %v830_v28 = vmax.f32 %v2852_v61, %v2869_v51  ;;  %v2878_v5 = vsel %vm2733_vm5, %v683_v2, -1e+30  ;;  %1836 = vmatprep.subr.bf16.mxu0 %v2112_v41  ;;  %v3263_v41 = vld [vmem:[#allocation2_spill] sm:$0xff] }
  0xc2   : > { %vm2857_vm1 = vcmp.ne.s32.totalorder %v3259_v46, 0  ;;  %v2882_v56 = vsel %vm2739_vm6, %v684_v4, -1e+30  ;;  %vm618_vm3 = vcmp.ge.f32.partialorder %v2632_v1, 0.0  ;;  %v681_v59 = vsel %vm617_vm2, %v2629_v24, %v2649_v52 }
  0xc3   : > { %v839_v12 = vmax.f32 %v2878_v5, %v2882_v56  ;;  %v682_v62 = vsel %vm618_vm3, %v2632_v1, %v2652_v34  ;;  %vm623_vm4 = vcmp.ge.f32.partialorder %v591_v38, 0.0  ;;  %831 = vmax.xlane.f32.xlu0 %v830_v28  ;;  %v2893_v27 = vsel %vm2757_vm15, %v681_v59, -1e+30 }
  0xc4   : > { %v2897_v16 = vsel %vm2763_vm0, %v682_v62, -1e+30  ;;  %vm624_vm5 = vcmp.ge.f32.partialorder %v592_v7, 0.0  ;;  %v687_v9 = vsel %vm623_vm4, %v591_v38, %v655_v31  ;;  %vm621_vm6 = vcmp.ge.f32.partialorder %v2680_v33, 0.0  ;;  %1837 = vmatpush3.bf16.msra.mxu0 %v2113_v47 }
  0xc5   : > { %v836_v17 = vmax.f32 %v2893_v27, %v2897_v16  ;;  %v688_v24 = vsel %vm624_vm5, %v592_v7, %v656_v25  ;;  %v2903_v1 = vsel %vm2782_vm8, %v687_v9, -1e+30  ;;  %840 = vmax.xlane.f32.xlu1 %v839_v12  ;;  %vm622_vm15 = vcmp.ge.f32.partialorder %v2693_v63, 0.0 }
  0xc6   : > { %v2908_v52 = vsel %vm2804_vm10, %v688_v24, -1e+30  ;;  %v685_v34 = vsel %vm621_vm6, %v2680_v33, %v2713_v45  ;;  %vm625_vm0 = vcmp.ge.f32.partialorder %v2778_v0, 0.0  ;;  %v686_v38 = vsel %vm622_vm15, %v2693_v63, %v2727_v53 }
  0xc7   : > { %v845_v10 = vmax.f32 %v2903_v1, %v2908_v52  ;;  %v2926_v13 = vsel %vm2817_vm12, %v685_v34, -1e+30  ;;  %vm626_vm8 = vcmp.ge.f32.partialorder %v2799_v37, 0.0  ;;  %837 = vmax.xlane.f32.xlu0 %v836_v17  ;;  %v2931_v33 = vsel %vm2827_vm7, %v686_v38, -1e+30 }
  0xc8   : > { %v689_v45 = vsel %vm625_vm0, %v2778_v0, %v2811_v58  ;;  %v690_v7 = vsel %vm626_vm8, %v2799_v37, %v658_v21  ;;  %v3262_v31 = vunpack.c.h.b16 %v2436_v42  ;;  %v842_v63 = vmax.f32 %v2926_v13, %v2931_v33  ;;  %v2114_v0 = vld [vmem:[%s3174_s1 + $0x70] sm:$0xff]   ;;  %v2116_v58 = vld [vmem:[%s3174_s1 + $0x78] sm:$0xff]  }
  0xc9   : > { %846 = vmax.xlane.f32.xlu1 %v845_v10  ;;  %v2942_v53 = vsel %vm2857_vm1, %v689_v45, -1e+30  ;;  %v2115_v42 = vld [vmem:[%s3174_s1 + $0x30] sm:$0xff]   ;;  %1838 = vmatprep.subr.bf16.mxu0 %v2114_v0  ;;  %v2117_v21 = vld [vmem:[%s3174_s1 + $0x38] sm:$0xff]   ;;  %vm1497_vm12 = vcmask 523264  }
  0xca   : > { %vm770_vm10 = vcmp.ne.s32.totalorder %v3262_v31, 0  ;;  %1839 = vmatpush3.bf16.msra.mxu0 %v2115_v42  ;;  %v3265_v31 = vld [vmem:[#allocation4_spill] sm:$0xff] }
  0xcb   : > { %v2944_v39 = vsel %vm770_vm10, %v690_v7, -1e+30  ;;  %843 = vmax.xlane.f32.xlu0 %v842_v63  ;;  %1840 = vmatprep.subr.bf16.mxu0 %v2116_v58 }
  0xcc   : > { %v848_v37 = vmax.f32 %v2942_v53, %v2944_v39 }
  0xce   : > { %1841 = vmatpush3.bf16.msra.mxu0 %v2117_v21 }
  0xcf   : > { %849 = vmax.xlane.f32.xlu0 %v848_v37 }
 0x12c   : > { %v805_v14 = vpop.xlane.xlu0 %804 }
 0x12d   : > { %v851_v40 = vsub.f32 %v2474_v54, %v805_v14  ;;  %v852_v43 = vsub.f32 %v2478_v29, %v805_v14 }
 0x12f   : > { %v883_v25 = vmul.f32 1.442695, %v851_v40  ;;  %v885_v26 = vmul.f32 1.442695, %v852_v43 }
 0x131   : > { %v811_v22 = vpop.xlane.xlu0 %810  ;;  %2118 = vpow2.f32 %v883_v25 }
 0x132   : > { %v808_v44 = vpop.xlane.xlu1 %807  ;;  %v855_v18 = vsub.f32 %v2498_v30, %v811_v22  ;;  %v856_v46 = vsub.f32 %v2518_v60, %v811_v22  ;;  %2120 = vpow2.f32 %v885_v26 }
 0x133   : > { %v853_v35 = vsub.f32 %v2514_v50, %v808_v44  ;;  %v854_v49 = vsub.f32 %v2542_v48, %v808_v44 }
 0x134   : > { %v891_v8 = vmul.f32 1.442695, %v855_v18  ;;  %v893_v54 = vmul.f32 1.442695, %v856_v46 }
 0x135   : > { %v887_v2 = vmul.f32 1.442695, %v853_v35  ;;  %v889_v4 = vmul.f32 1.442695, %v854_v49 }
 0x136   : > { %2122 = vpow2.f32 %v891_v8 }
 0x137   : > { %v817_v29 = vpop.xlane.xlu1 %816  ;;  %2124 = vpow2.f32 %v887_v2 }
 0x138   : > { %v859_v28 = vsub.f32 %v2581_v57, %v817_v29  ;;  %v860_v12 = vsub.f32 %v2585_v6, %v817_v29  ;;  %2126 = vpow2.f32 %v889_v4 }
 0x139   : > { %2128 = vpow2.f32 %v893_v54 }
 0x13a   : > { %v899_v30 = vmul.f32 1.442695, %v859_v28  ;;  %v901_v60 = vmul.f32 1.442695, %v860_v12  ;;  %v814_v59 = vpop.xlane.xlu0 %813 }
 0x13b   : > { %v857_v50 = vsub.f32 %v2610_v23, %v814_v59  ;;  %v858_v48 = vsub.f32 %v2626_v55, %v814_v59  ;;  %v2119_v62 = vpop.eup %2118  ;;  %v3264_v55 = vld [vmem:[#allocation3_spill] sm:$0xff] }
 0x13c   : > { %2130 = vpow2.f32 %v899_v30  ;;  %v2121_v34 = vpop.eup %2120 }
 0x13d   : > { %2132 = vpow2.f32 %v901_v60  ;;  %v895_v9 = vmul.f32 1.442695, %v857_v50  ;;  %v897_v17 = vmul.f32 1.442695, %v858_v48  ;;  %v947_v47 = vadd.f32 %v2121_v34, %v2119_v62 }
 0x13e   : > { %v823_v24 = vpop.xlane.xlu1 %822 }
 0x13f   : > { %v863_v57 = vsub.f32 %v2662_v19, %v823_v24  ;;  %v864_v6 = vsub.f32 %v3263_v41, %v823_v24  ;;  %2134 = vpow2.f32 %v895_v9  ;;  %948 = vadd.xlane.f32.xlu1 %v947_v47 }
 0x140   : > { %2136 = vpow2.f32 %v897_v17  ;;  %v2972_v23 = vpop.eup %2122 }
 0x141   : > { %v907_v10 = vmul.f32 1.442695, %v863_v57  ;;  %v909_v38 = vmul.f32 1.442695, %v864_v6  ;;  %v820_v45 = vpop.xlane.xlu0 %819  ;;  %v2125_v0 = vpop.eup %2124 }
 0x142   : > { %v861_v7 = vsub.f32 %v3264_v55, %v820_v45  ;;  %v862_v63 = vsub.f32 %v3265_v31, %v820_v45  ;;  %v2127_v42 = vpop.eup %2126  ;;  %v995_v58 = vpack.c.bf16 %v2125_v0, %v2119_v62 }
 0x143   : > { %2138 = vpow2.f32 %v907_v10  ;;  %v2129_v21 = vpop.eup %2128  ;;  %v950_v40 = vadd.f32 %v2127_v42, %v2125_v0  ;;  %v996_v43 = vpack.c.bf16 %v2127_v42, %v2121_v34 }
 0x144   : > { %2140 = vpow2.f32 %v909_v38  ;;  %v903_v19 = vmul.f32 1.442695, %v861_v7  ;;  %v905_v37 = vmul.f32 1.442695, %v862_v63  ;;  %v953_v44 = vadd.f32 %v2129_v21, %v2972_v23 }
 0x145   : > { %951 = vadd.xlane.f32.xlu0 %v950_v40  ;;  %1139 = vmatprep.mubr.bf16.mxu0 %v996_v43 }
 0x146   : > { %2142 = vpow2.f32 %v903_v19  ;;  %v2979_v18 = vpop.eup %2130  ;;  %954 = vadd.xlane.f32.xlu1 %v953_v44  ;;  %1140 = vmatmul.mubr.bf16.vlgmr.msra.gmra.mrb[0].mxu0 %v995_v58 }
 0x147   : > { %v829_v14 = vpop.xlane.xlu1 %828  ;;  %2144 = vpow2.f32 %v905_v37  ;;  %v2133_v49 = vpop.eup %2132 }
 0x148   : > { %v867_v25 = vsub.f32 %v2750_v20, %v829_v14  ;;  %v868_v26 = vsub.f32 %v2769_v3, %v829_v14  ;;  %v959_v3 = vadd.f32 %v2133_v49, %v2979_v18 }
 0x149   : > { %v826_v22 = vpop.xlane.xlu0 %825  ;;  %v2135_v54 = vpop.eup %2134 }
 0x14a   : > { %v865_v46 = vsub.f32 %v2775_v36, %v826_v22  ;;  %v866_v35 = vsub.f32 %v2796_v11, %v826_v22  ;;  %v915_v8 = vmul.f32 1.442695, %v867_v25  ;;  %v917_v2 = vmul.f32 1.442695, %v868_v26  ;;  %v2137_v28 = vpop.eup %2136  ;;  %960 = vadd.xlane.f32.xlu1 %v959_v3 }
 0x14b   : > { %v998_v30 = vpack.c.bf16 %v2137_v28, %v2129_v21  ;;  %v956_v60 = vadd.f32 %v2137_v28, %v2135_v54 }
 0x14c   : > { %v911_v20 = vmul.f32 1.442695, %v865_v46  ;;  %v913_v4 = vmul.f32 1.442695, %v866_v35  ;;  %2146 = vpow2.f32 %v915_v8 }
 0x14d   : > { %2148 = vpow2.f32 %v917_v2  ;;  %v2986_v59 = vpop.eup %2138  ;;  %1147 = vmatprep.mubr.bf16.mxu0 %v998_v30  ;;  %957 = vadd.xlane.f32.xlu0 %v956_v60 }
 0x14e   : > { %v835_v29 = vpop.xlane.xlu1 %834  ;;  %2150 = vpow2.f32 %v911_v20  ;;  %v2989_v9 = vpop.eup %2140 }
 0x14f   : > { %v871_v36 = vsub.f32 %v2835_v32, %v835_v29  ;;  %v872_v11 = vsub.f32 %v2840_v15, %v835_v29  ;;  %2152 = vpow2.f32 %v913_v4  ;;  %v997_v32 = vpack.c.bf16 %v2135_v54, %v2972_v23 }
 0x150   : > { %v832_v12 = vpop.xlane.xlu0 %831  ;;  %v2143_v41 = vpop.eup %2142 }
 0x151   : > { %v923_v50 = vmul.f32 1.442695, %v871_v36  ;;  %v925_v48 = vmul.f32 1.442695, %v872_v11  ;;  %v869_v62 = vsub.f32 %v2852_v61, %v832_v12  ;;  %v870_v17 = vsub.f32 %v2869_v51, %v832_v12  ;;  %1148 = vmatmul.mubr.bf16.gmra.mrb[4].mxu0 %v997_v32  ;;  %v2145_v51 = vpop.eup %2144 }
 0x152   : > { %v841_v24 = vpop.xlane.xlu1 %840  ;;  %v965_v61 = vadd.f32 %v2989_v9, %v2986_v59  ;;  %v1000_v55 = vpack.c.bf16 %v2145_v51, %v2133_v49 }
 0x153   : > { %2154 = vpow2.f32 %v923_v50  ;;  %v919_v15 = vmul.f32 1.442695, %v869_v62  ;;  %v875_v34 = vsub.f32 %v2878_v5, %v841_v24  ;;  %v876_v57 = vsub.f32 %v2882_v56, %v841_v24 }
 0x154   : > { %2156 = vpow2.f32 %v925_v48  ;;  %v921_v6 = vmul.f32 1.442695, %v870_v17  ;;  %v838_v47 = vpop.xlane.xlu0 %837  ;;  %966 = vadd.xlane.f32.xlu1 %v965_v61  ;;  %v962_v56 = vadd.f32 %v2145_v51, %v2143_v41  ;;  %1155 = vmatprep.mubr.bf16.mxu0 %v1000_v55  ;;  %v1300_v61 = vld [vmem:[%s3179_s6 + $0x10] sm:$0xff] }
 0x155   : > { %2158 = vpow2.f32 %v919_v15  ;;  %v931_v10 = vmul.f32 1.442695, %v875_v34  ;;  %v933_v38 = vmul.f32 1.442695, %v876_v57  ;;  %v873_v45 = vsub.f32 %v2893_v27, %v838_v47  ;;  %v1304_v55 = vld [vmem:[%s3179_s6 + $0x30] sm:$0xff] }
 0x156   : > { %2160 = vpow2.f32 %v921_v6  ;;  %v874_v23 = vsub.f32 %v2897_v16, %v838_v47  ;;  %v847_v5 = vpop.xlane.xlu1 %846  ;;  %v3001_v0 = vpop.eup %2146  ;;  %963 = vadd.xlane.f32.xlu0 %v962_v56  ;;  %v1298_v6 = vld [vmem:[%s3179_s6] sm:$0xff]  ;;  %v1299_v47 = vld [vmem:[%s3179_s6 + $0x8] sm:$0xff] }
 0x157   : > { %2162 = vpow2.f32 %v931_v10  ;;  %v927_v7 = vmul.f32 1.442695, %v873_v45  ;;  %v879_v31 = vsub.f32 %v2903_v1, %v847_v5  ;;  %v880_v63 = vsub.f32 %v2908_v52, %v847_v5  ;;  %v2149_v27 = vpop.eup %2148  ;;  %v1301_v10 = vld [vmem:[%s3179_s6 + $0x18] sm:$0xff]  ;;  %v1302_v45 = vld [vmem:[%s3179_s6 + $0x20] sm:$0xff] }
 0x158   : > { %2164 = vpow2.f32 %v933_v38  ;;  %v929_v42 = vmul.f32 1.442695, %v874_v23  ;;  %v844_v19 = vpop.xlane.xlu0 %843  ;;  %v2151_v21 = vpop.eup %2150  ;;  %v971_v1 = vadd.f32 %v2149_v27, %v3001_v0  ;;  %v999_v52 = vpack.c.bf16 %v2143_v41, %v2979_v18  ;;  %v1303_v23 = vld [vmem:[%s3179_s6 + $0x28] sm:$0xff] }
 0x159   : > { %2166 = vpow2.f32 %v927_v7  ;;  %v939_v16 = vmul.f32 1.442695, %v879_v31  ;;  %v941_v37 = vmul.f32 1.442695, %v880_v63  ;;  %v877_v58 = vsub.f32 %v2926_v13, %v844_v19  ;;  %v2153_v40 = vpop.eup %2152  ;;  %v1305_v7 = vld [vmem:[%s3179_s6 + $0x38] sm:$0xff]  ;;  %v1306_v63 = vld [vmem:[%s3179_s6 + $0x40] sm:$0xff] }
 0x15a   : > { %2168 = vpow2.f32 %v929_v42  ;;  %v878_v14 = vsub.f32 %v2931_v33, %v844_v19  ;;  %972 = vadd.xlane.f32.xlu1 %v971_v1  ;;  %v968_v22 = vadd.f32 %v2153_v40, %v2151_v21  ;;  %1156 = vmatmul.mubr.bf16.gmra.mrb[8].mxu0 %v999_v52  ;;  %v1002_v44 = vpack.c.bf16 %v2153_v40, %v2989_v9  ;;  %v1308_v19 = vld [vmem:[%s3179_s6 + $0x50] sm:$0xff]  ;;  %v1313_v1 = vld [vmem:[%s3179_s6 + $0x78] sm:$0xff]  ;;  %v1482_v40 = vld [vmem:[%s3181_s8] sm:$0xff] }
 0x15b   : > { %2170 = vpow2.f32 %v939_v16  ;;  %v935_v43 = vmul.f32 1.442695, %v877_v58  ;;  %v1001_v29 = vpack.c.bf16 %v2151_v21, %v2986_v59  ;;  %v2042_v51 = vpack.c.bf16 %v1299_v47, %v1298_v6  ;;  %v1311_v58 = vld [vmem:[%s3179_s6 + $0x68] sm:$0xff]  ;;  %v1486_v6 = vld [vmem:[%s3181_s8 + $0x20] sm:$0xff] }
 0x15c   : > { %2172 = vpow2.f32 %v941_v37  ;;  %v937_v25 = vmul.f32 1.442695, %v878_v14  ;;  %v850_v26 = vpop.xlane.xlu0 %849  ;;  %969 = vadd.xlane.f32.xlu0 %v968_v22  ;;  %1163 = vmatprep.mubr.bf16.mxu0 %v1002_v44  ;;  %v2046_v38 = vpack.c.bf16 %v1301_v10, %v1300_v61  ;;  %v2050_v56 = vpack.c.bf16 %v1303_v23, %v1302_v45  ;;  %v1310_v37 = vld [vmem:[%s3179_s6 + $0x60] sm:$0xff]  ;;  %v1312_v14 = vld [vmem:[%s3179_s6 + $0x70] sm:$0xff]  ;;  %v1487_v47 = vld [vmem:[%s3181_s8 + $0x28] sm:$0xff] }
 0x15d   : > { %v2155_v13 = vpop.eup %2154  ;;  %2174 = vpow2.f32 %v935_v43  ;;  %v881_v46 = vsub.f32 %v2942_v53, %v850_v26  ;;  %v882_v33 = vsub.f32 %v2944_v39, %v850_v26  ;;  %2043 = vmatprep.subr.bf16.mxu1 %v2042_v51  ;;  %v2054_v31 = vpack.c.bf16 %v1305_v7, %v1304_v55  ;;  %v1483_v43 = vld [vmem:[%s3181_s8 + $0x8] sm:$0xff] }
 0x15e   : > { %v2157_v35 = vpop.eup %2156  ;;  %2176 = vpow2.f32 %v937_v25  ;;  %2045 = vmatpush3.bf16.msra.mxu1 %v2042_v51  ;;  %v2066_v21 = vpack.c.bf16 %v1311_v58, %v1310_v37  ;;  %v2070_v52 = vpack.c.bf16 %v1313_v1, %v1312_v14  ;;  %v2074_v25 = vpack.c.bf16 %v1483_v43, %v1482_v40 }
 0x15f   : > { %v2159_v18 = vpop.eup %2158  ;;  %v943_v49 = vmul.f32 1.442695, %v881_v46  ;;  %v945_v8 = vmul.f32 1.442695, %v882_v33  ;;  %v977_v2 = vadd.f32 %v2157_v35, %v2155_v13  ;;  %2047 = vmatprep.subr.bf16.mxu1 %v2046_v38 }
 0x160   : > { %v2161_v20 = vpop.eup %2160  ;;  %v1003_v9 = vpack.c.bf16 %v2159_v18, %v3001_v0  ;;  %v1307_v0 = vld [vmem:[%s3179_s6 + $0x48] sm:$0xff] }
 0x161   : > { %v2163_v4 = vpop.eup %2162  ;;  %2178 = vpow2.f32 %v943_v49  ;;  %978 = vadd.xlane.f32.xlu1 %v977_v2  ;;  %v974_v3 = vadd.f32 %v2161_v20, %v2159_v18  ;;  %v1004_v28 = vpack.c.bf16 %v2161_v20, %v2149_v27  ;;  %v2058_v42 = vpack.c.bf16 %v1307_v0, %v1306_v63  ;;  %v1309_v27 = vld [vmem:[%s3179_s6 + $0x58] sm:$0xff]  ;;  %v3069_v2 = vld [vmem:[%s3177_s4] ss:$0 sm:$0xff] }
 0x162   : > { %v2165_v54 = vpop.eup %2164  ;;  %2180 = vpow2.f32 %v945_v8  ;;  %1164 = vmatmul.mubr.bf16.gmra.mrb[12].mxu0 %v1001_v29  ;;  %2049 = vmatpush3.bf16.msra.mxu1 %v2046_v38  ;;  %v2062_v16 = vpack.c.bf16 %v1309_v27, %v1308_v19 }
 0x163   : > { %v2167_v53 = vpop.eup %2166  ;;  %975 = vadd.xlane.f32.xlu0 %v974_v3  ;;  %v983_v39 = vadd.f32 %v2165_v54, %v2163_v4  ;;  %1171 = vmatprep.mubr.bf16.mxu0 %v1004_v28 }
 0x164   : > { %v2169_v36 = vpop.eup %2168  ;;  %v1005_v15 = vpack.c.bf16 %v2167_v53, %v2155_v13  ;;  %2051 = vmatprep.subr.bf16.mxu1 %v2050_v56 }
 0x165   : > { %v2171_v11 = vpop.eup %2170  ;;  %984 = vadd.xlane.f32.xlu1 %v983_v39  ;;  %v980_v12 = vadd.f32 %v2169_v36, %v2167_v53  ;;  %v1006_v17 = vpack.c.bf16 %v2169_v36, %v2157_v35 }
 0x166   : > { %v2173_v30 = vpop.eup %2172  ;;  %2053 = vmatpush3.bf16.msra.mxu1 %v2050_v56  ;;  %v2082_v56 = vpack.c.bf16 %v1487_v47, %v1486_v6 }
 0x167   : > { %v2175_v60 = vpop.eup %2174  ;;  %981 = vadd.xlane.f32.xlu0 %v980_v12  ;;  %v989_v50 = vadd.f32 %v2173_v30, %v2171_v11  ;;  %2055 = vmatprep.subr.bf16.mxu1 %v2054_v31 }
 0x168   : > { %v2177_v48 = vpop.eup %2176  ;;  %v1007_v57 = vpack.c.bf16 %v2175_v60, %v2163_v4 }
 0x169   : > { %990 = vadd.xlane.f32.xlu1 %v989_v50  ;;  %v986_v62 = vadd.f32 %v2177_v48, %v2175_v60  ;;  %v1008_v34 = vpack.c.bf16 %v2177_v48, %v2165_v54  ;;  %v3074_v54 = vld [vmem:[%s3178_s5] ss:$0 sm:$0xff]  ;;  %v1484_v60 = vld [vmem:[%s3181_s8 + $0x10] sm:$0xff]  ;;  %v1485_v50 = vld [vmem:[%s3181_s8 + $0x18] sm:$0xff] }
 0x16a   : > { %1172 = vmatmul.mubr.bf16.gmra.mrb[16].mxu0 %v1003_v9  ;;  %2057 = vmatpush3.bf16.msra.mxu1 %v2054_v31 }
 0x16b   : > { %v2179_v59 = vpop.eup %2178  ;;  %987 = vadd.xlane.f32.xlu0 %v986_v62  ;;  %1179 = vmatprep.mubr.bf16.mxu0 %v1006_v17 }
 0x16c   : > { %v2181_v24 = vpop.eup %2180  ;;  %v1009_v5 = vpack.c.bf16 %v2179_v59, %v2171_v11  ;;  %2059 = vmatprep.subr.bf16.mxu1 %v2058_v42 }
 0x16d   : > { %v992_v32 = vadd.f32 %v2181_v24, %v2179_v59  ;;  %v1010_v41 = vpack.c.bf16 %v2181_v24, %v2173_v30 }
 0x16e   : > { %2061 = vmatpush3.bf16.msra.mxu1 %v2058_v42 }
 0x16f   : > { %993 = vadd.xlane.f32.xlu0 %v992_v32  ;;  %2063 = vmatprep.subr.bf16.mxu1 %v2062_v16 }
 0x172   : > { %1180 = vmatmul.mubr.bf16.gmra.mrb[20].mxu0 %v1005_v15  ;;  %2065 = vmatpush3.bf16.msra.mxu1 %v2062_v16 }
 0x173   : > { %1187 = vmatprep.mubr.bf16.mxu0 %v1008_v34  ;;  %2067 = vmatprep.subr.bf16.mxu1 %v2066_v21 }
 0x176   : > { %2069 = vmatpush3.bf16.msra.mxu1 %v2066_v21 }
 0x177   : > { %2071 = vmatprep.subr.bf16.mxu1 %v2070_v52 }
 0x17a   : > { %1188 = vmatmul.mubr.bf16.gmra.mrb[24].mxu0 %v1007_v57  ;;  %2073 = vmatpush3.bf16.msra.mxu1 %v2070_v52  ;;  %v2078_v57 = vpack.c.bf16 %v1485_v50, %v1484_v60 }
 0x17b   : > { %1195 = vmatprep.mubr.bf16.mxu0 %v1010_v41  ;;  %2075 = vmatprep.subr.bf16.mxu1 %v2074_v25 }
 0x182   : > { %1196 = vmatmul.mubr.bf16.gmra.mrb[28].mxu0 %v1009_v5 }
 0x1cc   : > { %v949_v26 = vpop.xlane.xlu1 %948 }
 0x1cd   : > { %2182 = vrcp.f32 %v949_v26 }
 0x1d2   : > { %v952_v22 = vpop.xlane.xlu0 %951 }
 0x1d3   : > { %2184 = vrcp.f32 %v952_v22  ;;  %v955_v44 = vpop.xlane.xlu1 %954 }
 0x1d4   : > { %2186 = vrcp.f32 %v955_v44 }
 0x1d7   : > { %v2183_v49 = vpop.eup %2182  ;;  %v961_v29 = vpop.xlane.xlu1 %960 }
 0x1da   : > { %v958_v13 = vpop.xlane.xlu0 %957 }
 0x1db   : > { %2188 = vrcp.f32 %v958_v13 }
 0x1dc   : > { %2190 = vrcp.f32 %v961_v29 }
 0x1dd   : > { %v2185_v3 = vpop.eup %2184 }
 0x1de   : > { %v2187_v17 = vpop.eup %2186 }
 0x1e1   : > { %v967_v61 = vpop.xlane.xlu1 %966 }
 0x1e3   : > { %v964_v28 = vpop.xlane.xlu0 %963 }
 0x1e4   : > { %2192 = vrcp.f32 %v964_v28 }
 0x1e5   : > { %v2189_v41 = vpop.eup %2188  ;;  %2194 = vrcp.f32 %v967_v61 }
 0x1e6   : > { %v2191_v42 = vpop.eup %2190 }
 0x1e7   : > { %v973_v21 = vpop.xlane.xlu1 %972 }
 0x1e9   : > { %v970_v38 = vpop.xlane.xlu0 %969 }
 0x1ea   : > { %2196 = vrcp.f32 %v970_v38 }
 0x1eb   : > { %2198 = vrcp.f32 %v973_v21 }
 0x1ee   : > { %v2193_v58 = vpop.eup %2192 }
 0x1f0   : > { %v976_v52 = vpop.xlane.xlu0 %975 }
 0x1f1   : > { %2200 = vrcp.f32 %v976_v52 }
 0x219   : > { %v1842_v46 = vpop.f32.mrb[0].mxu0 }
 0x21a   : > { %v1843_v33 = vpop.f32.mrb[1].mxu0 }
 0x21b   : > { %v1844_v35 = vadd.f32 %v1843_v33, %v1842_v46  ;;  %v1845_v18 = vpop.f32.mrb[2].mxu0  ;;  %v2195_v33 = vpop.eup %2194 }
 0x21c   : > { %v1846_v8 = vpop.f32.mrb[3].mxu0 }
 0x21d   : > { %v1220_v20 = vmul.f32 %v2183_v49, %v1844_v35  ;;  %v1847_v4 = vadd.f32 %v1846_v8, %v1845_v18 }
 0x21f   : > { %v1221_v53 = vmul.f32 %v2185_v3, %v1847_v4  ;;  %v1243_v39 = vmul.f32 %v3069_v2, %v1220_v20  ;;  %v2197_v20 = vpop.eup %2196  ;;  %v979_v4 = vpop.xlane.xlu1 %978 }
 0x220   : > { %2202 = vrcp.f32 %v979_v4 }
 0x221   : > { %v1244_v36 = vmul.f32 %v3069_v2, %v1221_v53  ;;  %v1266_v12 = vadd.f32 %v3074_v54, %v1243_v39  ;;  %v982_v53 = vpop.xlane.xlu0 %981 }
 0x222   : > { %2204 = vrcp.f32 %v982_v53 }
 0x223   : > { %v1282_v9 = vmax.f32 %v1266_v12, 0.0  ;;  %v1267_v59 = vadd.f32 %v3074_v54, %v1244_v36 }
 0x224   : > { %v1848_v11 = vpop.f32.mrb[4].mxu0 }
 0x225   : > { %v1849_v30 = vpop.f32.mrb[5].mxu0  ;;  %1978 = vmatprep.mubr.f32.mxu1 %v1282_v9  ;;  %v1283_v34 = vmax.f32 %v1267_v59, 0.0 }
 0x226   : > { %v1850_v48 = vadd.f32 %v1849_v30, %v1848_v11  ;;  %v1851_v62 = vpop.f32.mrb[6].mxu0 }
 0x227   : > { %v1852_v24 = vpop.f32.mrb[7].mxu0  ;;  %1979 = vmatmul.mubr.f32.vlgmr.msra.gmra.mrb[0].mxu1 %v1283_v34 }
 0x228   : > { %v1222_v32 = vmul.f32 %v2187_v17, %v1850_v48  ;;  %v1853_v15 = vadd.f32 %v1852_v24, %v1851_v62  ;;  %2077 = vmatpush3.bf16.msra.mxu1 %v2074_v25  ;;  %v2199_v48 = vpop.eup %2198 }
 0x229   : > { %2079 = vmatprep.subr.bf16.mxu1 %v2078_v57  ;;  %v2201_v24 = vpop.eup %2200 }
 0x22a   : > { %v1245_v51 = vmul.f32 %v3069_v2, %v1222_v32  ;;  %v1223_v10 = vmul.f32 %v2189_v41, %v1853_v15  ;;  %v985_v32 = vpop.xlane.xlu1 %984 }
 0x22b   : > { %2206 = vrcp.f32 %v985_v32 }
 0x22c   : > { %v1246_v45 = vmul.f32 %v3069_v2, %v1223_v10  ;;  %v1268_v5 = vadd.f32 %v3074_v54, %v1245_v51  ;;  %2081 = vmatpush3.bf16.msra.mxu1 %v2078_v57  ;;  %v988_v57 = vpop.xlane.xlu0 %987 }
 0x22d   : > { %v1854_v23 = vpop.f32.mrb[8].mxu0  ;;  %2083 = vmatprep.subr.bf16.mxu1 %v2082_v56  ;;  %2208 = vrcp.f32 %v988_v57 }
 0x22e   : > { %v1855_v55 = vpop.f32.mrb[9].mxu0  ;;  %v1284_v63 = vmax.f32 %v1268_v5, 0.0  ;;  %v1269_v0 = vadd.f32 %v3074_v54, %v1246_v45 }
 0x22f   : > { %v1856_v7 = vadd.f32 %v1855_v55, %v1854_v23  ;;  %v1857_v31 = vpop.f32.mrb[10].mxu0  ;;  %v2203_v23 = vpop.eup %2202 }
 0x230   : > { %v1858_v19 = vpop.f32.mrb[11].mxu0  ;;  %1981 = vmatprep.mubr.f32.mxu1 %v1284_v63  ;;  %v1285_v37 = vmax.f32 %v1269_v0, 0.0  ;;  %2085 = vmatpush3.bf16.msra.mxu1 %v2082_v56  ;;  %v991_v63 = vpop.xlane.xlu1 %990 }
 0x231   : > { %v1224_v27 = vmul.f32 %v2191_v42, %v1856_v7  ;;  %v1859_v16 = vadd.f32 %v1858_v19, %v1857_v31  ;;  %v2205_v31 = vpop.eup %2204  ;;  %v994_v19 = vpop.xlane.xlu0 %993  ;;  %2210 = vrcp.f32 %v991_v63 }
 0x232   : > { %1982 = vmatmul.mubr.f32.gmra.mrb[2].mxu1 %v1285_v37  ;;  %2212 = vrcp.f32 %v994_v19 }
 0x233   : > { %v1247_v14 = vmul.f32 %v3069_v2, %v1224_v27  ;;  %v1225_v1 = vmul.f32 %v2193_v58, %v1859_v16 }
 0x235   : > { %v1248_v40 = vmul.f32 %v3069_v2, %v1225_v1  ;;  %v1860_v43 = vpop.f32.mrb[12].mxu0  ;;  %v1270_v25 = vadd.f32 %v3074_v54, %v1247_v14 }
 0x236   : > { %v1861_v26 = vpop.f32.mrb[13].mxu0 }
 0x237   : > { %v1862_v22 = vadd.f32 %v1861_v26, %v1860_v43  ;;  %v1863_v44 = vpop.f32.mrb[14].mxu0  ;;  %v1286_v13 = vmax.f32 %v1270_v25, 0.0  ;;  %v1271_v46 = vadd.f32 %v3074_v54, %v1248_v40  ;;  %v2207_v40 = vpop.eup %2206 }
 0x238   : > { %v1864_v35 = vpop.f32.mrb[15].mxu0 }
 0x239   : > { %v1226_v18 = vmul.f32 %v2195_v33, %v1862_v22  ;;  %v1865_v49 = vadd.f32 %v1864_v35, %v1863_v44  ;;  %1984 = vmatprep.mubr.f32.mxu1 %v1286_v13  ;;  %v1287_v8 = vmax.f32 %v1271_v46, 0.0  ;;  %v2209_v44 = vpop.eup %2208 }
 0x23b   : > { %v1249_v3 = vmul.f32 %v3069_v2, %v1226_v18  ;;  %v1227_v29 = vmul.f32 %v2197_v20, %v1865_v49  ;;  %1985 = vmatmul.mubr.f32.gmra.mrb[4].mxu1 %v1287_v8 }
 0x23d   : > { %v1250_v39 = vmul.f32 %v3069_v2, %v1227_v29  ;;  %v1866_v28 = vpop.f32.mrb[16].mxu0  ;;  %v1272_v36 = vadd.f32 %v3074_v54, %v1249_v3  ;;  %v2211_v29 = vpop.eup %2210 }
 0x23e   : > { %v1867_v11 = vpop.f32.mrb[17].mxu0 }
 0x23f   : > { %v1868_v12 = vadd.f32 %v1867_v11, %v1866_v28  ;;  %v1869_v30 = vpop.f32.mrb[18].mxu0  ;;  %v1288_v60 = vmax.f32 %v1272_v36, 0.0  ;;  %v1273_v50 = vadd.f32 %v3074_v54, %v1250_v39  ;;  %v2213_v11 = vpop.eup %2212 }
 0x240   : > { %v1870_v62 = vpop.f32.mrb[19].mxu0 }
 0x241   : > { %v1228_v9 = vmul.f32 %v2199_v48, %v1868_v12  ;;  %v1871_v59 = vadd.f32 %v1870_v62, %v1869_v30  ;;  %1987 = vmatprep.mubr.f32.mxu1 %v1288_v60  ;;  %v1289_v17 = vmax.f32 %v1273_v50, 0.0 }
 0x243   : > { %v1251_v15 = vmul.f32 %v3069_v2, %v1228_v9  ;;  %v1229_v34 = vmul.f32 %v2201_v24, %v1871_v59  ;;  %1988 = vmatmul.mubr.f32.gmra.mrb[6].mxu1 %v1289_v17  ;;  %v1488_v59 = vld [vmem:[%s3181_s8 + $0x30] sm:$0xff]  ;;  %v1489_v17 = vld [vmem:[%s3181_s8 + $0x38] sm:$0xff] }
 0x244   : > { %v2086_v24 = vpack.c.bf16 %v1489_v17, %v1488_v59 }
 0x245   : > { %v1252_v41 = vmul.f32 %v3069_v2, %v1229_v34  ;;  %v1872_v6 = vpop.f32.mrb[20].mxu0  ;;  %v1274_v47 = vadd.f32 %v3074_v54, %v1251_v15 }
 0x246   : > { %v1873_v61 = vpop.f32.mrb[21].mxu0  ;;  %2087 = vmatprep.subr.bf16.mxu1 %v2086_v24 }
 0x247   : > { %v1874_v51 = vadd.f32 %v1873_v61, %v1872_v6  ;;  %v1875_v10 = vpop.f32.mrb[22].mxu0  ;;  %v1290_v38 = vmax.f32 %v1274_v47, 0.0  ;;  %v1275_v45 = vadd.f32 %v3074_v54, %v1252_v41  ;;  %2089 = vmatpush3.bf16.msra.mxu1 %v2086_v24 }
 0x248   : > { %v1876_v5 = vpop.f32.mrb[23].mxu0 }
 0x249   : > { %v1230_v56 = vmul.f32 %v2203_v23, %v1874_v51  ;;  %v1877_v55 = vadd.f32 %v1876_v5, %v1875_v10  ;;  %1990 = vmatprep.mubr.f32.mxu1 %v1290_v38  ;;  %v1291_v7 = vmax.f32 %v1275_v45, 0.0 }
 0x24b   : > { %v1253_v0 = vmul.f32 %v3069_v2, %v1230_v56  ;;  %v1231_v42 = vmul.f32 %v2205_v31, %v1877_v55  ;;  %1991 = vmatmul.mubr.f32.gmra.mrb[8].mxu1 %v1291_v7 }
 0x24d   : > { %v1254_v27 = vmul.f32 %v3069_v2, %v1231_v42  ;;  %v1878_v16 = vpop.f32.mrb[24].mxu0  ;;  %v1276_v37 = vadd.f32 %v3074_v54, %v1253_v0 }
 0x24e   : > { %v1879_v58 = vpop.f32.mrb[25].mxu0 }
 0x24f   : > { %v1880_v21 = vadd.f32 %v1879_v58, %v1878_v16  ;;  %v1881_v14 = vpop.f32.mrb[26].mxu0  ;;  %v1292_v1 = vmax.f32 %v1276_v37, 0.0  ;;  %v1277_v52 = vadd.f32 %v3074_v54, %v1254_v27 }
 0x250   : > { %v1882_v43 = vpop.f32.mrb[27].mxu0 }
 0x251   : > { %v1232_v25 = vmul.f32 %v2207_v40, %v1880_v21  ;;  %v1883_v26 = vadd.f32 %v1882_v43, %v1881_v14  ;;  %1993 = vmatprep.mubr.f32.mxu1 %v1292_v1  ;;  %v1293_v22 = vmax.f32 %v1277_v52, 0.0 }
 0x253   : > { %v1255_v13 = vmul.f32 %v3069_v2, %v1232_v25  ;;  %v1233_v46 = vmul.f32 %v2209_v44, %v1883_v26  ;;  %1994 = vmatmul.mubr.f32.gmra.mrb[10].mxu1 %v1293_v22 }
 0x255   : > { %v1256_v33 = vmul.f32 %v3069_v2, %v1233_v46  ;;  %v1884_v35 = vpop.f32.mrb[28].mxu0  ;;  %v1278_v18 = vadd.f32 %v3074_v54, %v1255_v13 }
 0x256   : > { %v1885_v49 = vpop.f32.mrb[29].mxu0 }
 0x257   : > { %v1886_v8 = vadd.f32 %v1885_v49, %v1884_v35  ;;  %v1887_v20 = vpop.f32.mrb[30].mxu0  ;;  %v1294_v4 = vmax.f32 %v1278_v18, 0.0  ;;  %v1279_v3 = vadd.f32 %v3074_v54, %v1256_v33 }
 0x258   : > { %v1888_v53 = vpop.f32.mrb[31].mxu0 }
 0x259   : > { %v1234_v39 = vmul.f32 %v2211_v29, %v1886_v8  ;;  %v1889_v28 = vadd.f32 %v1888_v53, %v1887_v20  ;;  %1996 = vmatprep.mubr.f32.mxu1 %v1294_v4  ;;  %v1295_v36 = vmax.f32 %v1279_v3, 0.0  ;;  %v1806_v53 = vld [vmem:[%s3182_s9] ss:$0 sm:$0xff] }
 0x25b   : > { %v1257_v12 = vmul.f32 %v3069_v2, %v1234_v39  ;;  %v1235_v30 = vmul.f32 %v2213_v11, %v1889_v28  ;;  %1997 = vmatmul.mubr.f32.gmra.mrb[12].mxu1 %v1295_v36 }
 0x25d   : > { %v1258_v60 = vmul.f32 %v3069_v2, %v1235_v30  ;;  %v1280_v50 = vadd.f32 %v3074_v54, %v1257_v12  ;;  %v1805_v2 = vld [vmem:[%s3180_s7] ss:$0 sm:$0xff] }
 0x25f   : > { %v1296_v48 = vmax.f32 %v1280_v50, 0.0  ;;  %v1281_v62 = vadd.f32 %v3074_v54, %v1258_v60 }
 0x261   : > { %1999 = vmatprep.mubr.f32.mxu1 %v1296_v48  ;;  %v1297_v9 = vmax.f32 %v1281_v62, 0.0 }
 0x263   : > { %2000 = vmatmul.mubr.f32.gmra.mrb[14].mxu1 %v1297_v9 }
 0x2fa   : > { %v1980_v32 = vpop.f32.mrb[0].mxu1 }
 0x2fb   : > { %v1393_v54 = vadd.f32 %v1980_v32, %v1805_v2  ;;  %v1387_v15 = vpop.f32.mrb[1].mxu1 }
 0x2fc   : > { %v1388_v34 = vadd.f32 %v1805_v2, %v1387_v15 }
 0x2fd   : > { %v1467_v41 = vmax.f32 %v1393_v54, 0.0 }
 0x2fe   : > { %v1466_v57 = vmax.f32 %v1388_v34, 0.0 }
 0x300   : > { %2018 = vmatprep.mubr.msk.f32.mxu1 %vm1497_vm12, %v1466_v57 }
 0x301   : > { %2019 = vmatmul.mubr.msk.f32.vlgmr.msra.gmra.mrb[16].mxu1 %vm1497_vm12, %v1467_v41 }
 0x305   : > { %v1983_v6 = vpop.f32.mrb[2].mxu1 }
 0x306   : > { %v1403_v47 = vadd.f32 %v1983_v6, %v1805_v2  ;;  %v1397_v61 = vpop.f32.mrb[3].mxu1 }
 0x307   : > { %v1398_v51 = vadd.f32 %v1805_v2, %v1397_v61 }
 0x308   : > { %v1469_v38 = vmax.f32 %v1403_v47, 0.0 }
 0x309   : > { %v1468_v10 = vmax.f32 %v1398_v51, 0.0 }
 0x30b   : > { %2021 = vmatprep.mubr.msk.f32.mxu1 %vm1497_vm12, %v1468_v10 }
 0x30c   : > { %2022 = vmatmul.mubr.msk.f32.gmra.mrb[18].mxu1 %vm1497_vm12, %v1469_v38 }
 0x30e   : > { %v1986_v45 = vpop.f32.mrb[4].mxu1 }
 0x30f   : > { %v1413_v23 = vadd.f32 %v1986_v45, %v1805_v2  ;;  %v1407_v5 = vpop.f32.mrb[5].mxu1 }
 0x310   : > { %v1408_v56 = vadd.f32 %v1805_v2, %v1407_v5 }
 0x311   : > { %v1471_v7 = vmax.f32 %v1413_v23, 0.0 }
 0x312   : > { %v1470_v55 = vmax.f32 %v1408_v56, 0.0 }
 0x314   : > { %2024 = vmatprep.mubr.msk.f32.mxu1 %vm1497_vm12, %v1470_v55 }
 0x315   : > { %2025 = vmatmul.mubr.msk.f32.gmra.mrb[20].mxu1 %vm1497_vm12, %v1471_v7 }
 0x316   : > { %v1989_v31 = vpop.f32.mrb[6].mxu1 }
 0x317   : > { %v1423_v63 = vadd.f32 %v1989_v31, %v1805_v2  ;;  %v1417_v0 = vpop.f32.mrb[7].mxu1 }
 0x318   : > { %v1418_v42 = vadd.f32 %v1805_v2, %v1417_v0 }
 0x319   : > { %v1473_v27 = vmax.f32 %v1423_v63, 0.0 }
 0x31a   : > { %v1472_v19 = vmax.f32 %v1418_v42, 0.0 }
 0x31c   : > { %2027 = vmatprep.mubr.msk.f32.mxu1 %vm1497_vm12, %v1472_v19 }
 0x31d   : > { %2028 = vmatmul.mubr.msk.f32.gmra.mrb[22].mxu1 %vm1497_vm12, %v1473_v27 }
 0x31e   : > { %v1992_v16 = vpop.f32.mrb[8].mxu1 }
 0x31f   : > { %v1433_v37 = vadd.f32 %v1992_v16, %v1805_v2  ;;  %v1427_v58 = vpop.f32.mrb[9].mxu1 }
 0x320   : > { %v1428_v21 = vadd.f32 %v1805_v2, %v1427_v58 }
 0x321   : > { %v1475_v1 = vmax.f32 %v1433_v37, 0.0 }
 0x322   : > { %v1474_v14 = vmax.f32 %v1428_v21, 0.0 }
 0x324   : > { %2030 = vmatprep.mubr.msk.f32.mxu1 %vm1497_vm12, %v1474_v14 }
 0x325   : > { %2031 = vmatmul.mubr.msk.f32.gmra.mrb[24].mxu1 %vm1497_vm12, %v1475_v1 }
 0x326   : > { %v1995_v52 = vpop.f32.mrb[10].mxu1 }
 0x327   : > { %v1443_v40 = vadd.f32 %v1995_v52, %v1805_v2  ;;  %v1437_v43 = vpop.f32.mrb[11].mxu1 }
 0x328   : > { %v1438_v25 = vadd.f32 %v1805_v2, %v1437_v43 }
 0x329   : > { %v1477_v22 = vmax.f32 %v1443_v40, 0.0 }
 0x32a   : > { %v1476_v26 = vmax.f32 %v1438_v25, 0.0 }
 0x32c   : > { %2033 = vmatprep.mubr.msk.f32.mxu1 %vm1497_vm12, %v1476_v26 }
 0x32d   : > { %2034 = vmatmul.mubr.msk.f32.gmra.mrb[26].mxu1 %vm1497_vm12, %v1477_v22 }
 0x32e   : > { %v1998_v44 = vpop.f32.mrb[12].mxu1 }
 0x32f   : > { %v1453_v13 = vadd.f32 %v1998_v44, %v1805_v2  ;;  %v1447_v46 = vpop.f32.mrb[13].mxu1 }
 0x330   : > { %v1448_v33 = vadd.f32 %v1805_v2, %v1447_v46 }
 0x331   : > { %v1479_v18 = vmax.f32 %v1453_v13, 0.0 }
 0x332   : > { %v1478_v35 = vmax.f32 %v1448_v33, 0.0 }
 0x334   : > { %2036 = vmatprep.mubr.msk.f32.mxu1 %vm1497_vm12, %v1478_v35 }
 0x335   : > { %2037 = vmatmul.mubr.msk.f32.gmra.mrb[28].mxu1 %vm1497_vm12, %v1479_v18 }
 0x336   : > { %v2001_v49 = vpop.f32.mrb[14].mxu1 }
 0x337   : > { %v1463_v8 = vadd.f32 %v2001_v49, %v1805_v2  ;;  %v1457_v20 = vpop.f32.mrb[15].mxu1 }
 0x338   : > { %v1458_v4 = vadd.f32 %v1805_v2, %v1457_v20 }
 0x339   : > { %v1481_v29 = vmax.f32 %v1463_v8, 0.0 }
 0x33a   : > { %v1480_v3 = vmax.f32 %v1458_v4, 0.0 }
 0x33c   : > { %2039 = vmatprep.mubr.msk.f32.mxu1 %vm1497_vm12, %v1480_v3 }
 0x33d   : > { %2040 = vmatmul.mubr.msk.f32.gmra.mrb[30].mxu1 %vm1497_vm12, %v1481_v29 }
 0x3d4   : > { %v2020_v39 = vpop.f32.mrb[16].mxu1 }
 0x3d5   : > { %v1618_v28 = vadd.f32 %v2020_v39, %v1806_v53  ;;  %v1612_v36 = vpop.f32.mrb[17].mxu1 }
 0x3d6   : > { %v1613_v11 = vadd.f32 %v1806_v53, %v1612_v36 }
 0x3d7   : > { %1692 = vst [vmem:[%s3152_s25 + $0x8] sm:$0xff] %v1618_v28 }
 0x3d8   : > { %1691 = vst [vmem:[%s3152_s25] sm:$0xff] %v1613_v11 }
 0x3df   : > { %v2023_v12 = vpop.f32.mrb[18].mxu1 }
 0x3e0   : > { %v1628_v30 = vadd.f32 %v2023_v12, %v1806_v53  ;;  %v1622_v60 = vpop.f32.mrb[19].mxu1 }
 0x3e1   : > { %v1623_v50 = vadd.f32 %v1806_v53, %v1622_v60 }
 0x3e2   : > { %1694 = vst [vmem:[%s3152_s25 + $0x18] sm:$0xff] %v1628_v30 }
 0x3e3   : > { %1693 = vst [vmem:[%s3152_s25 + $0x10] sm:$0xff] %v1623_v50 }
 0x3e8   : > { %v2026_v48 = vpop.f32.mrb[20].mxu1 }
 0x3e9   : > { %v1638_v62 = vadd.f32 %v2026_v48, %v1806_v53  ;;  %v1632_v9 = vpop.f32.mrb[21].mxu1 }
 0x3ea   : > { %v1633_v59 = vadd.f32 %v1806_v53, %v1632_v9 }
 0x3eb   : > { %1696 = vst [vmem:[%s3152_s25 + $0x28] sm:$0xff] %v1638_v62 }
 0x3ec   : > { %1695 = vst [vmem:[%s3152_s25 + $0x20] sm:$0xff] %v1633_v59 }
 0x3f0   : > { %v2029_v17 = vpop.f32.mrb[22].mxu1 }
 0x3f1   : > { %v1648_v24 = vadd.f32 %v2029_v17, %v1806_v53  ;;  %v1642_v2 = vpop.f32.mrb[23].mxu1 }
 0x3f2   : > { %v1643_v32 = vadd.f32 %v1806_v53, %v1642_v2 }
 0x3f3   : > { %1698 = vst [vmem:[%s3152_s25 + $0x38] sm:$0xff] %v1648_v24 }
 0x3f4   : > { %1697 = vst [vmem:[%s3152_s25 + $0x30] sm:$0xff] %v1643_v32 }
 0x3f8   : > { %v2032_v54 = vpop.f32.mrb[24].mxu1 }
 0x3f9   : > { %v1658_v15 = vadd.f32 %v2032_v54, %v1806_v53  ;;  %v1652_v34 = vpop.f32.mrb[25].mxu1 }
 0x3fa   : > { %v1653_v57 = vadd.f32 %v1806_v53, %v1652_v34 }
 0x3fb   : > { %1700 = vst [vmem:[%s3152_s25 + $0x48] sm:$0xff] %v1658_v15 }
 0x3fc   : > { %1699 = vst [vmem:[%s3152_s25 + $0x40] sm:$0xff] %v1653_v57 }
 0x400   : > { %v2035_v41 = vpop.f32.mrb[26].mxu1 }
 0x401   : > { %v1668_v6 = vadd.f32 %v2035_v41, %v1806_v53  ;;  %v1662_v47 = vpop.f32.mrb[27].mxu1 }
 0x402   : > { %v1663_v61 = vadd.f32 %v1806_v53, %v1662_v47 }
 0x403   : > { %1702 = vst [vmem:[%s3152_s25 + $0x58] sm:$0xff] %v1668_v6 }
 0x404   : > { %1701 = vst [vmem:[%s3152_s25 + $0x50] sm:$0xff] %v1663_v61 }
 0x408   : > { %v2038_v51 = vpop.f32.mrb[28].mxu1 }
 0x409   : > { %v1678_v10 = vadd.f32 %v2038_v51, %v1806_v53  ;;  %v1672_v38 = vpop.f32.mrb[29].mxu1 }
 0x40a   : > { %v1673_v45 = vadd.f32 %v1806_v53, %v1672_v38 }
 0x40b   : > { %1704 = vst [vmem:[%s3152_s25 + $0x68] sm:$0xff] %v1678_v10 }
 0x40c   : > { %1703 = vst [vmem:[%s3152_s25 + $0x60] sm:$0xff] %v1673_v45 }
 0x410   : > { %v2041_v23 = vpop.f32.mrb[30].mxu1 }
 0x411   : > { %v1688_v5 = vadd.f32 %v2041_v23, %v1806_v53  ;;  %v1682_v56 = vpop.f32.mrb[31].mxu1 }
 0x412   : > { %v1683_v55 = vadd.f32 %v1806_v53, %v1682_v56 }
 0x413   : > { %1706 = vst [vmem:[%s3152_s25 + $0x78] sm:$0xff] %v1688_v5 }
 0x414   : > { %1705 = vst [vmem:[%s3152_s25 + $0x70] sm:$0xff] %v1683_v55 }
 0x415 PF: > { %s20_s13 = sadd.s32 1, %s2220_s13  }
 0x416   : > { %p17_p4 = scmp.ge.s32.totalorder %s20_s13, 4  }
 0x418   :  { %19 = sbr.rel (!%p17_p4) target bundleno = 1 (0x1), region = 93 }

// kernel: improved_gnn_forward.4
= control target key start
LH: loop header
LB: loop body
LE: loop exit
PB: predicated region body
PF: predicated region fallthrough
CT: control target
= control target key end

     0   :  { %s3351_s30 = smov 0   ;;  %s4766_s0 = inlined_call_operand.vmem [shape: bf16[256,256], index: 0, kind: input, shape index: {}]   ;;  %s4767_s1 = inlined_call_operand.vmem [shape: bf16[256,256], index: 1, kind: input, shape index: {}]   ;;  %s4768_s2 = inlined_call_operand.vmem [shape: f32[256,4], index: 2, kind: input, shape index: {}]   ;;  %s4769_s3 = inlined_call_operand.vmem [shape: f32[2,256], index: 3, kind: input, shape index: {}]   ;;  %s4770_s4 = inlined_call_operand.vmem [shape: f32[1,256], index: 4, kind: input, shape index: {}]   ;;  %s4771_s5 = inlined_call_operand.vmem [shape: f32[1,256], index: 5, kind: input, shape index: {}]   ;;  %s4772_s6 = inlined_call_operand.vmem [shape: f32[256,128], index: 6, kind: input, shape index: {}]   ;;  %s4773_s7 = inlined_call_operand.vmem [shape: f32[128,2], index: 7, kind: input, shape index: {}]   ;;  %s4774_s8 = inlined_call_operand.vmem [shape: bf16[256,128], index: 8, kind: output, shape index: {0}]   ;;  %s4775_s9 = inlined_call_operand.vmem [shape: f32[256,2], index: 9, kind: output, shape index: {1}]  }
   0x1 LB: > { %s2531_s10 = sadd.s32 4294967295, %s3296_s30   ;;  %p2535_p0 = scmp.ge.s32.totalorder %s3296_s30, 1  ;;  %s3296_s30 = sphi %s3351_s30, %s20_s30  }
   0x2   : > { %p303_p1 = scmp.lt.s32.totalorder %s3296_s30, 3 }
   0x4   : > { %p304_p2 = pnand %p2535_p0, %p303_p1 }
   0x6   : > { %307 = sbr.rel (%p304_p2) target bundleno = 1070 (0x42e), region = 52 }
   0xd   : > { %s2536_s11 = sshll.u32 %s2531_s10, 4  ;;  %v3298_v0 = vmov 3   ;;  %v3299_v1 = vmov 2   ;;  %v3050_v18 = vld [vmem:[%s4767_s1 + $0x84] ss:$8 sps:$4 sm:$0xff]   ;;  %v540_v20 = vlaneseq  ;;  %v3300_v37 = vmov 0  }
   0xe   : > { %3030 = vset.pattern.permute.xlu0 %v3298_v0  ;;  %3031 = vset.pattern.permute.xlu1 %v3299_v1  ;;  %p351_p3 = scmp.lt.s32.totalorder %s2536_s11, 31  ;;  %v3052_v19 = vld [vmem:[%s4767_s1 + $0x4] ss:$8 sps:$4 sm:$0xff]   ;;  %v458_v23 = vld [vmem:[%s4769_s3] sm:$0xf] }
   0xf   : > { %2723 = vmatprep.subr.bf16.mxu1 %v3050_v18  ;;  %v541_v21 = vshrl.u32 %v540_v20, 7 }
  0x10   : > { %s4955_s11 = smov (!%p351_p3, %s2536_s11), 31  ;;  %2724 = vmatpush3.bf16.msra.mxu1 %v3052_v19 }
  0x11   : > { %s3364_s12 = sshll.u32 %s4955_s11, 3  ;;  %v3418_v22 = vsub.s32 0, %v541_v21  ;;  %v546_v24 = vsub.s32 2, %v541_v21  ;;  %v3423_v25 = vsub.s32 1, %v541_v21  ;;  %v1301_v27 = vsub.s32 3, %v541_v21  ;;  %s2542_s23 = sshll.u32 %s4955_s11, 2 }
  0x12   : > { %s3370_s15 = scalar_lea.vmem %s4768_s2, %s3364_s12  ;;  %s3416_s22 = scalar_lea.vmem %s4766_s0, %s3364_s12 }
  0x13   : > { %v442_v2 = vld [vmem:[%s3370_s15] sm:$0xff]  ;;  %v443_v3 = vld [vmem:[%s3370_s15 + $0x8] sm:$0xff]  ;;  %v444_v4 = vld [vmem:[%s3370_s15 + $0x10] sm:$0xff]  ;;  %4809 = vst [vmem:[#allocation2_spill] sm:$0xff] %v3418_v22  ;;  %v543_v30 = vrot.slane %v458_v23, %v3418_v22  ;;  %v547_v32 = vrot.slane %v458_v23, %v546_v24  ;;  %v1298_v33 = vrot.slane %v458_v23, %v3423_v25  ;;  %v1302_v35 = vrot.slane %v458_v23, %v1301_v27  ;;  %s4715_s26 = scalar_lea.vmem %s4774_s8, %s2542_s23  ;;  %s4729_s28 = scalar_lea.vmem %s4775_s9, %s3364_s12 }
  0x14   : > { %461 = vperm.xlu1 %3031, %v442_v2   ;;  %1232 = vperm.xlu0 %3030, %v442_v2   ;;  %v445_v5 = vld [vmem:[%s3370_s15 + $0x18] sm:$0xff]  ;;  %v447_v6 = vld [vmem:[%s3370_s15 + $0x28] sm:$0xff]  ;;  %v446_v7 = vld [vmem:[%s3370_s15 + $0x20] sm:$0xff]  ;;  %4810 = vst [vmem:[#allocation3_spill] sm:$0xff] %v3423_v25 }
  0x15   : > { %v448_v8 = vld [vmem:[%s3370_s15 + $0x30] sm:$0xff]  ;;  %v451_v9 = vld [vmem:[%s3370_s15 + $0x48] sm:$0xff]  ;;  %v449_v11 = vld [vmem:[%s3370_s15 + $0x38] sm:$0xff]  ;;  %v3436_v40 = vrot.slane %v543_v30, %v3418_v22  ;;  %v3442_v42 = vrot.slane %v547_v32, %v3418_v22  ;;  %v3445_v43 = vrot.slane %v1298_v33, %v3423_v25  ;;  %v3452_v46 = vrot.slane %v1302_v35, %v3423_v25 }
  0x16   : > { %v452_v10 = vld [vmem:[%s3370_s15 + $0x50] sm:$0xff]  ;;  %v455_v12 = vld [vmem:[%s3370_s15 + $0x68] sm:$0xff]  ;;  %v450_v14 = vld [vmem:[%s3370_s15 + $0x40] sm:$0xff] }
  0x17   : > { %v456_v13 = vld [vmem:[%s3370_s15 + $0x70] sm:$0xff]  ;;  %v453_v15 = vld [vmem:[%s3370_s15 + $0x58] sm:$0xff]  ;;  %v454_v16 = vld [vmem:[%s3370_s15 + $0x60] sm:$0xff] }
  0x18   : > { %466 = vperm.xlu1 %3031, %v443_v3   ;;  %3033 = vset.pattern.permute.xlu0 %v3299_v1  ;;  %v457_v17 = vld [vmem:[%s3370_s15 + $0x78] sm:$0xff]  ;;  %v378_v26 = vld [vmem:[%s3416_s22] sm:$0xff]  ;;  %v379_v28 = vld [vmem:[%s3416_s22 + $0x8] sm:$0xff] }
  0x19   : > { %471 = vperm.xlu0 %3033, %v444_v4   ;;  %v381_v29 = vld [vmem:[%s3416_s22 + $0x18] sm:$0xff]  ;;  %vm394_vm0 = vcmp.gt.bf16.partialorder %v378_v26, 0  ;;  %v380_v31 = vld [vmem:[%s3416_s22 + $0x10] sm:$0xff]  ;;  %vm395_vm1 = vcmp.gt.bf16.partialorder %v379_v28, 0  ;;  %v383_v34 = vld [vmem:[%s3416_s22 + $0x28] sm:$0xff] }
  0x1a   : > { %vm397_vm2 = vcmp.gt.bf16.partialorder %v381_v29, 0  ;;  %v382_v36 = vld [vmem:[%s3416_s22 + $0x20] sm:$0xff]  ;;  %v686_v38 = vsel %vm394_vm0, 65537, %v3300_v37  ;;  %vm396_vm3 = vcmp.gt.bf16.partialorder %v380_v31, 0  ;;  %v384_v39 = vld [vmem:[%s3416_s22 + $0x30] sm:$0xff]  ;;  %v3439_v41 = vsel %vm395_vm1, 65537, %v3300_v37 }
  0x1b   : > { %vm399_vm4 = vcmp.gt.bf16.partialorder %v383_v34, 0  ;;  %v3448_v44 = vsel %vm397_vm2, 65537, %v3300_v37  ;;  %vm398_vm5 = vcmp.gt.bf16.partialorder %v382_v36, 0  ;;  %v385_v45 = vld [vmem:[%s3416_s22 + $0x38] sm:$0xff]  ;;  %v702_v47 = vunpack.c.l.b16 %v686_v38  ;;  %v387_v49 = vld [vmem:[%s3416_s22 + $0x48] sm:$0xff]  ;;  %v388_v50 = vld [vmem:[%s3416_s22 + $0x50] sm:$0xff] }
  0x1c   : > { %3032 = vset.pattern.permute.xlu1 %v3298_v0  ;;  %v3455_v48 = vsel %vm396_vm3, 65537, %v3300_v37  ;;  %vm400_vm6 = vcmp.gt.bf16.partialorder %v384_v39, 0  ;;  %v703_v51 = vunpack.c.h.b16 %v686_v38  ;;  %v704_v52 = vunpack.c.l.b16 %v3439_v41  ;;  %v386_v55 = vld [vmem:[%s3416_s22 + $0x40] sm:$0xff]  ;;  %v389_v59 = vld [vmem:[%s3416_s22 + $0x58] sm:$0xff]  ;;  %v391_v60 = vld [vmem:[%s3416_s22 + $0x68] sm:$0xff] }
  0x1d   : > { %1244 = vperm.xlu1 %3032, %v445_v5   ;;  %3034 = vset.pattern.permute.xlu0 %v3298_v0  ;;  %v705_v53 = vunpack.c.h.b16 %v3439_v41  ;;  %v3462_v54 = vsel %vm399_vm4, 65537, %v3300_v37  ;;  %v708_v56 = vunpack.c.l.b16 %v3448_v44  ;;  %v709_v57 = vunpack.c.h.b16 %v3448_v44  ;;  %v390_v2 = vld [vmem:[%s3416_s22 + $0x60] sm:$0xff]  ;;  %v393_v29 = vld [vmem:[%s3416_s22 + $0x78] sm:$0xff] }
  0x1e   : > { %1236 = vperm.xlu0 %3034, %v443_v3   ;;  %v3468_v58 = vsel %vm398_vm5, 65537, %v3300_v37  ;;  %vm401_vm7 = vcmp.gt.bf16.partialorder %v385_v45, 0  ;;  %v706_v61 = vunpack.c.l.b16 %v3455_v48  ;;  %v3474_v62 = vsel %vm400_vm6, 65537, %v3300_v37  ;;  %v392_v3 = vld [vmem:[%s3416_s22 + $0x70] sm:$0xff]  ;;  %v3057_v23 = vld [vmem:[%s4767_s1] ss:$8 sps:$4 sm:$0xff]  }
  0x1f   : > { %vm403_vm8 = vcmp.gt.bf16.partialorder %v387_v49, 0  ;;  %vm404_vm9 = vcmp.gt.bf16.partialorder %v388_v50, 0  ;;  %v712_v63 = vunpack.c.l.b16 %v3462_v54  ;;  %vm402_vm10 = vcmp.gt.bf16.partialorder %v386_v55, 0  ;;  %v3055_v25 = vld [vmem:[%s4767_s1 + $0x94] ss:$8 sps:$4 sm:$0xff]  }
  0x20   : > { %vm405_vm11 = vcmp.gt.bf16.partialorder %v389_v59, 0  ;;  %vm407_vm12 = vcmp.gt.bf16.partialorder %v391_v60, 0  ;;  %vm3485_vm13 = vcmp.ne.s32.totalorder %v702_v47, 0  ;;  %vm3489_vm14 = vcmp.ne.s32.totalorder %v703_v51, 0  ;;  %2725 = vmatprep.subr.bf16.mxu1 %v3055_v25 }
  0x21   : > { %3035 = vset.pattern.permute.xlu1 %v3299_v1  ;;  %vm406_vm15 = vcmp.gt.bf16.partialorder %v390_v2, 0  ;;  %vm408_vm0 = vcmp.gt.bf16.partialorder %v392_v3, 0  ;;  %vm3519_vm1 = vcmp.ne.s32.totalorder %v704_v52, 0  ;;  %vm3532_vm2 = vcmp.ne.s32.totalorder %v705_v53, 0 }
  0x22   : > { %476 = vperm.xlu1 %3035, %v445_v5   ;;  %1240 = vperm.xlu0 %3034, %v444_v4   ;;  %v710_v4 = vunpack.c.l.b16 %v3468_v58  ;;  %v3483_v5 = vsel %vm401_vm7, 65537, %v3300_v37  ;;  %v3526_v27 = vsel %vm406_vm15, 65537, %v3300_v37  ;;  %v3529_v28 = vsel %vm408_vm0, 65537, %v3300_v37 }
  0x23   : > { %vm409_vm3 = vcmp.gt.bf16.partialorder %v393_v29, 0 }
  0x26   : > { %3036 = vset.pattern.permute.xlu1 %v3298_v0  ;;  %1252 = vperm.xlu0 %3034, %v447_v6  }
  0x27   : > { %1248 = vperm.xlu1 %3036, %v446_v7  }
  0x2a   : > { %1256 = vperm.xlu0 %3034, %v448_v8  }
  0x2b   : > { %3037 = vset.pattern.permute.xlu1 %v3299_v1 }
  0x2c   : > { %481 = vperm.xlu1 %3037, %v446_v7  }
  0x2e   : > { %1268 = vperm.xlu0 %3034, %v451_v9  }
  0x30   : > { %486 = vperm.xlu1 %3037, %v447_v6  }
  0x32   : > { %1272 = vperm.xlu0 %3034, %v452_v10  }
  0x34   : > { %3038 = vset.pattern.permute.xlu1 %v3298_v0 }
  0x35   : > { %1260 = vperm.xlu1 %3038, %v449_v11  }
  0x36   : > { %1284 = vperm.xlu0 %3034, %v455_v12  }
  0x39   : > { %3039 = vset.pattern.permute.xlu1 %v3299_v1 }
  0x3a   : > { %496 = vperm.xlu1 %3039, %v449_v11   ;;  %1288 = vperm.xlu0 %3034, %v456_v13   ;;  %v3501_v11 = vsel %vm404_vm9, 65537, %v3300_v37  ;;  %vm3557_vm9 = vcmp.ne.s32.totalorder %v709_v57, 0 }
  0x3e   : > { %3040 = vset.pattern.permute.xlu1 %v3298_v0  ;;  %3046 = vset.pattern.permute.xlu0 %v3299_v1 }
  0x3f   : > { %1264 = vperm.xlu1 %3040, %v450_v14   ;;  %491 = vperm.xlu0 %3046, %v448_v8   ;;  %v711_v8 = vunpack.c.h.b16 %v3468_v58 }
  0x43   : > { %3041 = vset.pattern.permute.xlu1 %v3299_v1  ;;  %511 = vperm.xlu0 %3046, %v452_v10   ;;  %v3497_v10 = vsel %vm403_vm8, 65537, %v3300_v37  ;;  %vm3551_vm8 = vcmp.ne.s32.totalorder %v708_v56, 0 }
  0x44   : > { %501 = vperm.xlu1 %3041, %v450_v14  }
  0x47   : > { %531 = vperm.xlu0 %3046, %v456_v13   ;;  %v3505_v13 = vsel %vm402_vm10, 65537, %v3300_v37 }
  0x48   : > { %506 = vperm.xlu1 %3041, %v451_v9  }
  0x4b   : > { %3049 = vset.pattern.permute.xlu0 %v3298_v0 }
  0x4c   : > { %3042 = vset.pattern.permute.xlu1 %v3298_v0 }
  0x4d   : > { %1276 = vperm.xlu1 %3042, %v453_v15  }
  0x51   : > { %3043 = vset.pattern.permute.xlu1 %v3299_v1 }
  0x52   : > { %516 = vperm.xlu1 %3043, %v453_v15  }
  0x56   : > { %3044 = vset.pattern.permute.xlu1 %v3298_v0 }
  0x57   : > { %1280 = vperm.xlu1 %3044, %v454_v16  }
  0x5b   : > { %3045 = vset.pattern.permute.xlu1 %v3299_v1 }
  0x5c   : > { %521 = vperm.xlu1 %3045, %v454_v16   ;;  %v3510_v16 = vsel %vm405_vm11, 65537, %v3300_v37 }
  0x60   : > { %526 = vperm.xlu1 %3045, %v455_v12  }
  0x64   : > { %3047 = vset.pattern.permute.xlu1 %v3298_v0  ;;  %v713_v0 = vunpack.c.h.b16 %v3462_v54 }
  0x65   : > { %1292 = vperm.xlu1 %3047, %v457_v17  }
  0x69   : > { %3048 = vset.pattern.permute.xlu1 %v3299_v1  ;;  %v707_v1 = vunpack.c.h.b16 %v3455_v48 }
  0x6a   : > { %536 = vperm.xlu1 %3048, %v457_v17   ;;  %v3513_v17 = vsel %vm407_vm12, 65537, %v3300_v37 }
  0x93   : > { %v462_v30 = vpop.permute.xlu1 %461  ;;  %v1233_v31 = vpop.permute.xlu0 %1232 }
  0x94   : > { %v558_v38 = vadd.f32 %v3436_v40, %v462_v30  ;;  %v559_v39 = vadd.f32 %v3442_v42, %v462_v30  ;;  %v1313_v41 = vadd.f32 %v3445_v43, %v1233_v31  ;;  %v1314_v45 = vadd.f32 %v3452_v46, %v1233_v31 }
  0x96   : > { %v1377_v51 = vmul.f32 0.2, %v1313_v41  ;;  %v1378_v52 = vmul.f32 0.2, %v1314_v45  ;;  %vm1345_vm4 = vcmp.ge.f32.partialorder %v1313_v41, 0.0  ;;  %vm1346_vm5 = vcmp.ge.f32.partialorder %v1314_v45, 0.0 }
  0x97   : > { %v467_v53 = vpop.permute.xlu1 %466  ;;  %vm590_vm6 = vcmp.ge.f32.partialorder %v558_v38, 0.0  ;;  %vm591_vm7 = vcmp.ge.f32.partialorder %v559_v39, 0.0  ;;  %v622_v55 = vmul.f32 0.2, %v558_v38  ;;  %v623_v59 = vmul.f32 0.2, %v559_v39 }
  0x98   : > { %v560_v60 = vadd.f32 %v3436_v40, %v467_v53  ;;  %v561_v2 = vadd.f32 %v3442_v42, %v467_v53  ;;  %v472_v3 = vpop.permute.xlu0 %471  ;;  %v1409_v30 = vsel %vm1345_vm4, %v1313_v41, %v1377_v51  ;;  %v1410_v31 = vsel %vm1346_vm5, %v1314_v45, %v1378_v52 }
  0x99   : > { %v3562_v47 = vadd.f32 %v3436_v40, %v472_v3  ;;  %v3565_v53 = vadd.f32 %v3442_v42, %v472_v3  ;;  %v3569_v41 = vsel %vm3485_vm13, %v1409_v30, -1e+30  ;;  %v3573_v56 = vsel %vm3489_vm14, %v1410_v31, -1e+30 }
  0x9a   : > { %v1473_v44 = vmax.f32 %v3569_v41, %v3573_v56  ;;  %vm592_vm10 = vcmp.ge.f32.partialorder %v560_v60, 0.0  ;;  %vm593_vm11 = vcmp.ge.f32.partialorder %v561_v2, 0.0  ;;  %v624_v57 = vmul.f32 0.2, %v560_v60 }
  0x9b   : > { %v3578_v45 = vmul.f32 0.2, %v3562_v47  ;;  %v625_v51 = vmul.f32 0.2, %v561_v2  ;;  %v654_v52 = vsel %vm590_vm6, %v558_v38, %v622_v55  ;;  %v3583_v3 = vsel %vm409_vm3, 65537, %v3300_v37 }
  0x9c   : > { %v3586_v30 = vmul.f32 0.2, %v3565_v53  ;;  %v1245_v31 = vpop.permute.xlu1 %1244  ;;  %1474 = vmax.xlane.f32.xlu1 %v1473_v44  ;;  %v656_v36 = vsel %vm592_vm10, %v560_v60, %v624_v57  ;;  %v655_v35 = vsel %vm591_vm7, %v559_v39, %v623_v59  ;;  %v3591_v34 = vsel %vm3485_vm13, %v654_v52, -1e+30 }
  0x9d   : > { %4823 = vst [vmem:[#allocation4_spill] sm:$0xff] %v3591_v34  ;;  %v1319_v33 = vadd.f32 %v3445_v43, %v1245_v31  ;;  %v1320_v38 = vadd.f32 %v3452_v46, %v1245_v31  ;;  %v1237_v55 = vpop.permute.xlu0 %1236  ;;  %v657_v29 = vsel %vm593_vm11, %v561_v2, %v625_v51  ;;  %v3597_v37 = vsel %vm3519_vm1, %v656_v36, -1e+30 }
  0x9e   : > { %v1315_v21 = vadd.f32 %v3445_v43, %v1237_v55  ;;  %v1316_v60 = vadd.f32 %v3452_v46, %v1237_v55  ;;  %v3603_v39 = vsel %vm3532_vm2, %v657_v29, -1e+30  ;;  %vm594_vm12 = vcmp.ge.f32.partialorder %v3562_v47, 0.0 }
  0x9f   : > { %4824 = vst [vmem:[#allocation5_spill] sm:$0xff] %v3603_v39  ;;  %v1383_v6 = vmul.f32 0.2, %v1319_v33  ;;  %v1384_v59 = vmul.f32 0.2, %v1320_v38  ;;  %v801_v44 = vmax.f32 %v3597_v37, %v3603_v39  ;;  %vm1351_vm13 = vcmp.ge.f32.partialorder %v1319_v33, 0.0 }
  0xa0   : > { %v1379_v2 = vmul.f32 0.2, %v1315_v21  ;;  %v1380_v57 = vmul.f32 0.2, %v1316_v60  ;;  %vm1352_vm15 = vcmp.ge.f32.partialorder %v1320_v38, 0.0  ;;  %vm1347_vm0 = vcmp.ge.f32.partialorder %v1315_v21, 0.0 }
  0xa1   : > { %802 = vmax.xlane.f32.xlu1 %v801_v44  ;;  %v477_v36 = vpop.permute.xlu1 %476  ;;  %v1241_v51 = vpop.permute.xlu0 %1240  ;;  %v1415_v52 = vsel %vm1351_vm13, %v1319_v33, %v1383_v6  ;;  %v1416_v31 = vsel %vm1352_vm15, %v1320_v38, %v1384_v59  ;;  %vm1348_vm3 = vcmp.ge.f32.partialorder %v1316_v60, 0.0  ;;  %v3610_v55 = vsel %vm3489_vm14, %v655_v35, -1e+30 }
  0xa2   : > { %4825 = vst [vmem:[#allocation6_spill] sm:$0xff] %v3610_v55  ;;  %v564_v29 = vadd.f32 %v3436_v40, %v477_v36  ;;  %v565_v20 = vadd.f32 %v3442_v42, %v477_v36  ;;  %v1317_v26 = vadd.f32 %v3445_v43, %v1241_v51  ;;  %v1318_v24 = vadd.f32 %v3452_v46, %v1241_v51 }
  0xa3   : > { %vm3618_vm4 = vcmp.ne.s32.totalorder %v712_v63, 0  ;;  %v3624_v33 = vsel %vm3551_vm8, %v1415_v52, -1e+30  ;;  %v3628_v7 = vsel %vm3557_vm9, %v1416_v31, -1e+30  ;;  %v1411_v35 = vsel %vm1347_vm0, %v1315_v21, %v1379_v2 }
  0xa4   : > { %4828 = vst [vmem:[#allocation7_spill] sm:$0xff] %v3624_v33  ;;  %4829 = vst [vmem:[#allocation8_spill] sm:$0xff] %v3628_v7  ;;  %v1412_v38 = vsel %vm1348_vm3, %v1316_v60, %v1380_v57  ;;  %v628_v6 = vmul.f32 0.2, %v564_v29  ;;  %v629_v59 = vmul.f32 0.2, %v565_v20  ;;  %v1482_v51 = vmax.f32 %v3624_v33, %v3628_v7 }
  0xa5   : > { %v1381_v36 = vmul.f32 0.2, %v1317_v26  ;;  %vm3634_vm14 = vcmp.ne.s32.totalorder %v713_v0, 0  ;;  %v1382_v52 = vmul.f32 0.2, %v1318_v24  ;;  %v1253_v19 = vpop.permute.xlu0 %1252  ;;  %v798_v60 = vmax.f32 %v3591_v34, %v3610_v55 }
  0xa6   : > { %v3640_v31 = vsel %vm3519_vm1, %v1411_v35, -1e+30  ;;  %v3644_v21 = vsel %vm3532_vm2, %v1412_v38, -1e+30  ;;  %v1323_v2 = vadd.f32 %v3445_v43, %v1253_v19  ;;  %v1324_v54 = vadd.f32 %v3452_v46, %v1253_v19  ;;  %1483 = vmax.xlane.f32.xlu1 %v1482_v51  ;;  %v1249_v0 = vpop.permute.xlu1 %1248  ;;  %v3067_v63 = vld [vmem:[%s4767_s1 + $0xb4] ss:$8 sps:$4 sm:$0xff]  }
  0xa7   : > { %4832 = vst [vmem:[#allocation9_spill] sm:$0xff] %v3640_v31  ;;  %4833 = vst [vmem:[#allocation10_spill] sm:$0xff] %v3644_v21  ;;  %v1476_v57 = vmax.f32 %v3640_v31, %v3644_v21  ;;  %vm596_vm5 = vcmp.ge.f32.partialorder %v564_v29, 0.0  ;;  %vm3654_vm1 = vcmp.ne.s32.totalorder %v706_v61, 0  ;;  %vm3660_vm2 = vcmp.ne.s32.totalorder %v707_v1, 0 }
  0xa8   : > { %v3665_v19 = vadd.f32 %v3445_v43, %v1249_v0  ;;  %v3668_v35 = vadd.f32 %v3452_v46, %v1249_v0  ;;  %vm597_vm6 = vcmp.ge.f32.partialorder %v565_v20, 0.0  ;;  %v660_v38 = vsel %vm596_vm5, %v564_v29, %v628_v6 }
  0xa9   : > { %v1387_v51 = vmul.f32 0.2, %v1323_v2  ;;  %v1388_v18 = vmul.f32 0.2, %v1324_v54  ;;  %1477 = vmax.xlane.f32.xlu0 %v1476_v57  ;;  %v661_v61 = vsel %vm597_vm6, %v565_v20, %v629_v59  ;;  %v3672_v12 = vsel %vm3551_vm8, %v660_v38, -1e+30  ;;  %v1257_v9 = vpop.permute.xlu0 %1256 }
  0xaa   : > { %4838 = vst [vmem:[#allocation11_spill] sm:$0xff] %v3672_v12  ;;  %v1385_v48 = vmul.f32 0.2, %v3665_v19  ;;  %v3676_v1 = vmul.f32 0.2, %v3668_v35  ;;  %v658_v29 = vsel %vm594_vm12, %v3562_v47, %v3578_v45  ;;  %v3687_v20 = vadd.f32 %v3445_v43, %v1257_v9 }
  0xab   : > { %v3680_v0 = vsel %vm3557_vm9, %v661_v61, -1e+30  ;;  %v3690_v50 = vadd.f32 %v3452_v46, %v1257_v9  ;;  %vm1355_vm7 = vcmp.ge.f32.partialorder %v1323_v2, 0.0  ;;  %vm3696_vm8 = vcmp.ne.s32.totalorder %v710_v4, 0  ;;  %v482_v59 = vpop.permute.xlu1 %481 }
  0xac   : > { %4839 = vst [vmem:[#allocation12_spill] sm:$0xff] %v3680_v0  ;;  %v807_v6 = vmax.f32 %v3672_v12, %v3680_v0  ;;  %vm1356_vm9 = vcmp.ge.f32.partialorder %v1324_v54, 0.0  ;;  %v1419_v57 = vsel %vm1355_vm7, %v1323_v2, %v1387_v51  ;;  %vm1349_vm10 = vcmp.ge.f32.partialorder %v1317_v26, 0.0 }
  0xad   : > { %vm1350_vm11 = vcmp.ge.f32.partialorder %v1318_v24, 0.0  ;;  %vm3702_vm12 = vcmp.ne.s32.totalorder %v711_v8, 0  ;;  %v3707_v47 = vmul.f32 0.2, %v3687_v20  ;;  %v3710_v45 = vmul.f32 0.2, %v3690_v50  ;;  %799 = vmax.xlane.f32.xlu0 %v798_v60  ;;  %v1269_v38 = vpop.permute.xlu0 %1268 }
  0xae   : > { %808 = vmax.xlane.f32.xlu1 %v807_v6  ;;  %v3713_v4 = vadd.f32 %v3436_v40, %v482_v59  ;;  %v3716_v2 = vadd.f32 %v3442_v42, %v482_v59  ;;  %v1420_v58 = vsel %vm1356_vm9, %v1324_v54, %v1388_v18  ;;  %v3720_v8 = vsel %vm3618_vm4, %v1419_v57, -1e+30 }
  0xaf   : > { %4844 = vst [vmem:[#allocation13_spill] sm:$0xff] %v3720_v8  ;;  %v1413_v51 = vsel %vm1349_vm10, %v1317_v26, %v1381_v36  ;;  %v1414_v61 = vsel %vm1350_vm11, %v1318_v24, %v1382_v52  ;;  %v3729_v60 = vadd.f32 %v3445_v43, %v1269_v38  ;;  %v3732_v59 = vadd.f32 %v3452_v46, %v1269_v38  ;;  %v487_v36 = vpop.permute.xlu1 %486 }
  0xb0   : > { %v3723_v15 = vmul.f32 0.2, %v3713_v4  ;;  %v3726_v6 = vmul.f32 0.2, %v3716_v2  ;;  %v3736_v18 = vsel %vm3634_vm14, %v1420_v58, -1e+30  ;;  %v569_v52 = vadd.f32 %v3442_v42, %v487_v36 }
  0xb1   : > { %4845 = vst [vmem:[#allocation14_spill] sm:$0xff] %v3736_v18  ;;  %v3740_v26 = vsel %vm3654_vm1, %v1413_v51, -1e+30  ;;  %v3744_v24 = vsel %vm3660_vm2, %v1414_v61, -1e+30  ;;  %v1488_v38 = vmax.f32 %v3720_v8, %v3736_v18  ;;  %v568_v61 = vadd.f32 %v3436_v40, %v487_v36  ;;  %v1273_v14 = vpop.permute.xlu0 %1272 }
  0xb2   : > { %4846 = vst [vmem:[#allocation15_spill] sm:$0xff] %v3740_v26  ;;  %4847 = vst [vmem:[#allocation16_spill] sm:$0xff] %v3744_v24  ;;  %v3748_v54 = vmul.f32 0.2, %v3729_v60  ;;  %v3751_v57 = vmul.f32 0.2, %v3732_v59  ;;  %v1479_v58 = vmax.f32 %v3740_v26, %v3744_v24  ;;  %v3771_v8 = vadd.f32 %v3445_v43, %v1273_v14 }
  0xb3   : > { %v3054_v51 = vld [vmem:[%s4767_s1 + $0x80] ss:$8 sps:$4 sm:$0xff]   ;;  %vm595_vm13 = vcmp.ge.f32.partialorder %v3565_v53, 0.0  ;;  %v3765_v22 = vsel %vm3654_vm1, %v658_v29, -1e+30  ;;  %1489 = vmax.xlane.f32.xlu1 %v1488_v38  ;;  %v3774_v18 = vadd.f32 %v3452_v46, %v1273_v14  ;;  %vm1353_vm15 = vcmp.ge.f32.partialorder %v3665_v19, 0.0 }
  0xb4   : > { %4848 = vst [vmem:[#allocation17_spill] sm:$0xff] %v3765_v22  ;;  %1480 = vmax.xlane.f32.xlu0 %v1479_v58  ;;  %v659_v36 = vsel %vm595_vm13, %v3565_v53, %v3586_v30  ;;  %v3058_v29 = vld [vmem:[%s4767_s1 + $0x14] ss:$8 sps:$4 sm:$0xff]   ;;  %v632_v38 = vmul.f32 0.2, %v568_v61  ;;  %v1417_v14 = vsel %vm1353_vm15, %v3665_v19, %v1385_v48  ;;  %v4850_v53 = vunpack.c.l.b16 %v3483_v5  ;;  %2659 = vmatprep.subr.bf16.mxu0 %v3054_v51 }
  0xb5   : > { %v633_v58 = vmul.f32 0.2, %v569_v52  ;;  %v3787_v24 = vsel %vm3660_vm2, %v659_v36, -1e+30  ;;  %v3797_v26 = vmul.f32 0.2, %v3771_v8  ;;  %v1261_v36 = vpop.permute.xlu1 %1260  ;;  %2660 = vmatpush3.bf16.msra.mxu0 %v3057_v23  ;;  %2726 = vmatpush3.bf16.msra.mxu1 %v3058_v29  ;;  %v1285_v25 = vpop.permute.xlu0 %1284  ;;  %v4858_v12 = vunpack.c.l.b16 %v3474_v62 }
  0xb6   : > { %4849 = vst [vmem:[#allocation18_spill] sm:$0xff] %v3787_v24  ;;  %vm3792_vm0 = vcmp.ne.s32.totalorder %v4850_v53, 0  ;;  %v3800_v0 = vmul.f32 0.2, %v3774_v18  ;;  %v804_v32 = vmax.f32 %v3765_v22, %v3787_v24  ;;  %vm1354_vm3 = vcmp.ge.f32.partialorder %v3668_v35, 0.0 }
  0xb7   : > { %v1327_v19 = vadd.f32 %v3445_v43, %v1261_v36  ;;  %v3807_v48 = vadd.f32 %v3452_v46, %v1261_v36  ;;  %v1418_v51 = vsel %vm1354_vm3, %v3668_v35, %v3676_v1  ;;  %v3813_v53 = vsel %vm3696_vm8, %v1417_v14, -1e+30  ;;  %v3060_v23 = vld [vmem:[%s4767_s1 + $0x90] ss:$8 sps:$4 sm:$0xff]   ;;  %v3061_v29 = vld [vmem:[%s4767_s1 + $0xa4] ss:$8 sps:$4 sm:$0xff]  }
  0xb8   : > { %4853 = vst [vmem:[#allocation19_spill] sm:$0xff] %v3813_v53  ;;  %v4854_v24 = vunpack.c.h.b16 %v3483_v5  ;;  %805 = vmax.xlane.f32.xlu0 %v804_v32  ;;  %v3828_v35 = vadd.f32 %v3445_v43, %v1285_v25  ;;  %v3831_v1 = vadd.f32 %v3452_v46, %v1285_v25  ;;  %v3835_v5 = vsel %vm3702_vm12, %v1418_v51, -1e+30  ;;  %2661 = vmatprep.subr.bf16.mxu0 %v3060_v23 }
  0xb9   : > { %4857 = vst [vmem:[#allocation20_spill] sm:$0xff] %v3835_v5  ;;  %vm600_vm1 = vcmp.ge.f32.partialorder %v568_v61, 0.0  ;;  %v1391_v14 = vmul.f32 0.2, %v1327_v19  ;;  %v1392_v36 = vmul.f32 0.2, %v3807_v48  ;;  %v1485_v32 = vmax.f32 %v3813_v53, %v3835_v5  ;;  %2727 = vmatprep.subr.bf16.mxu1 %v3061_v29 }
  0xba   : > { %vm3817_vm5 = vcmp.ne.s32.totalorder %v4854_v24, 0  ;;  %v3063_v24 = vld [vmem:[%s4767_s1 + $0x10] ss:$8 sps:$4 sm:$0xff]   ;;  %vm601_vm2 = vcmp.ge.f32.partialorder %v569_v52, 0.0  ;;  %vm3845_vm6 = vcmp.ne.s32.totalorder %v4858_v12, 0  ;;  %v664_v7 = vsel %vm600_vm1, %v568_v61, %v632_v38  ;;  %v1289_v61 = vpop.permute.xlu0 %1288 }
  0xbb   : > { %v3850_v51 = vmul.f32 0.2, %v3828_v35  ;;  %v3853_v55 = vmul.f32 0.2, %v3831_v1  ;;  %v665_v34 = vsel %vm601_vm2, %v569_v52, %v633_v58  ;;  %v4861_v33 = vunpack.c.h.b16 %v3474_v62  ;;  %2662 = vmatpush3.bf16.msra.mxu0 %v3063_v24  ;;  %v3064_v12 = vld [vmem:[%s4767_s1 + $0x24] ss:$8 sps:$4 sm:$0xff]   ;;  %v497_v52 = vpop.permute.xlu1 %496 }
  0xbc   : > { %v3866_v23 = vsel %vm3618_vm4, %v664_v7, -1e+30  ;;  %v3870_v29 = vsel %vm3634_vm14, %v665_v34, -1e+30  ;;  %vm598_vm9 = vcmp.ge.f32.partialorder %v3713_v4, 0.0  ;;  %vm599_vm10 = vcmp.ge.f32.partialorder %v3716_v2, 0.0  ;;  %1486 = vmax.xlane.f32.xlu0 %v1485_v32  ;;  %2728 = vmatpush3.bf16.msra.mxu1 %v3064_v12 }
  0xbd   : > { %vm3857_vm7 = vcmp.ne.s32.totalorder %v4861_v33, 0  ;;  %4864 = vst [vmem:[#allocation21_spill] sm:$0xff] %v3866_v23  ;;  %4865 = vst [vmem:[#allocation22_spill] sm:$0xff] %v3870_v29  ;;  %v813_v62 = vmax.f32 %v3866_v23, %v3870_v29  ;;  %v572_v33 = vadd.f32 %v3436_v40, %v497_v52  ;;  %v3878_v44 = vadd.f32 %v3442_v42, %v497_v52  ;;  %v3066_v34 = vld [vmem:[%s4767_s1 + $0xa0] ss:$8 sps:$4 sm:$0xff]  }
  0xbe   : > { %v3881_v7 = vadd.f32 %v3445_v43, %v1289_v61  ;;  %v3069_v38 = vld [vmem:[%s4767_s1 + $0x20] ss:$8 sps:$4 sm:$0xff]   ;;  %v3893_v58 = vadd.f32 %v3452_v46, %v1289_v61  ;;  %v662_v24 = vsel %vm598_vm9, %v3713_v4, %v3723_v15  ;;  %v663_v32 = vsel %vm599_vm10, %v3716_v2, %v3726_v6  ;;  %v3070_v52 = vld [vmem:[%s4767_s1 + $0x34] ss:$8 sps:$4 sm:$0xff]   ;;  %v3072_v29 = vld [vmem:[%s4767_s1 + $0xb0] ss:$8 sps:$4 sm:$0xff]   ;;  %2663 = vmatprep.subr.bf16.mxu0 %v3066_v34 }
  0xbf   : > { %vm1359_vm4 = vcmp.ge.f32.partialorder %v1327_v19, 0.0  ;;  %814 = vmax.xlane.f32.xlu1 %v813_v62  ;;  %v636_v23 = vmul.f32 0.2, %v572_v33  ;;  %v637_v61 = vmul.f32 0.2, %v3878_v44  ;;  %v4868_v12 = vunpack.c.l.b16 %v3497_v10  ;;  %2729 = vmatprep.subr.bf16.mxu1 %v3067_v63 }
  0xc0   : > { %v3907_v53 = vmul.f32 0.2, %v3881_v7  ;;  %v1423_v15 = vsel %vm1359_vm4, %v1327_v19, %v1391_v14  ;;  %v3910_v4 = vmul.f32 0.2, %v3893_v58  ;;  %v3914_v2 = vsel %vm3696_vm8, %v662_v24, -1e+30  ;;  %2664 = vmatpush3.bf16.msra.mxu0 %v3069_v38  ;;  %v1265_v24 = vpop.permute.xlu1 %1264  ;;  %2730 = vmatpush3.bf16.msra.mxu1 %v3070_v52 }
  0xc1   : > { %4866 = vst [vmem:[#allocation23_spill] sm:$0xff] %v3914_v2  ;;  %v3918_v6 = vsel %vm3702_vm12, %v663_v32, -1e+30  ;;  %vm3922_vm14 = vcmp.ne.s32.totalorder %v4868_v12, 0  ;;  %v4871_v19 = vunpack.c.h.b16 %v3497_v10  ;;  %vm1360_vm8 = vcmp.ge.f32.partialorder %v3807_v48, 0.0  ;;  %v492_v32 = vpop.permute.xlu0 %491  ;;  %2665 = vmatprep.subr.bf16.mxu0 %v3072_v29 }
  0xc2   : > { %4867 = vst [vmem:[#allocation24_spill] sm:$0xff] %v3918_v6  ;;  %v810_v9 = vmax.f32 %v3914_v2, %v3918_v6  ;;  %v3938_v34 = vsel %vm3792_vm0, %v1423_v15, -1e+30  ;;  %vm1357_vm12 = vcmp.ge.f32.partialorder %v3687_v20, 0.0  ;;  %v3073_v10 = vld [vmem:[%s4767_s1 + $0xc4] ss:$8 sps:$4 sm:$0xff]   ;;  %v1424_v63 = vsel %vm1360_vm8, %v3807_v48, %v1392_v36 }
  0xc3   : > { %vm3928_vm11 = vcmp.ne.s32.totalorder %v4871_v19, 0  ;;  %4874 = vst [vmem:[#allocation25_spill] sm:$0xff] %v3938_v34  ;;  %v3946_v38 = vadd.f32 %v3445_v43, %v1265_v24  ;;  %v3949_v12 = vadd.f32 %v3452_v46, %v1265_v24  ;;  %v3952_v15 = vadd.f32 %v3436_v40, %v492_v32  ;;  %v3075_v29 = vld [vmem:[%s4767_s1 + $0x30] ss:$8 sps:$4 sm:$0xff]   ;;  %v3076_v19 = vld [vmem:[%s4767_s1 + $0x44] ss:$8 sps:$4 sm:$0xff]   ;;  %2731 = vmatprep.subr.bf16.mxu1 %v3073_v10 }
  0xc4   : > { %811 = vmax.xlane.f32.xlu0 %v810_v9  ;;  %v3962_v48 = vsel %vm3817_vm5, %v1424_v63, -1e+30  ;;  %v3965_v36 = vadd.f32 %v3442_v42, %v492_v32  ;;  %vm1358_vm13 = vcmp.ge.f32.partialorder %v3690_v50, 0.0  ;;  %v1421_v52 = vsel %vm1357_vm12, %v3687_v20, %v3707_v47  ;;  %2666 = vmatpush3.bf16.msra.mxu0 %v3075_v29 }
  0xc5   : > { %4875 = vst [vmem:[#allocation26_spill] sm:$0xff] %v3962_v48  ;;  %v1494_v24 = vmax.f32 %v3938_v34, %v3962_v48  ;;  %v3973_v49 = vmul.f32 0.2, %v3946_v38  ;;  %v3976_v9 = vmul.f32 0.2, %v3949_v12  ;;  %v1422_v6 = vsel %vm1358_vm13, %v3690_v50, %v3710_v45  ;;  %v512_v47 = vpop.permute.xlu0 %511  ;;  %v502_v48 = vpop.permute.xlu1 %501  ;;  %2732 = vmatpush3.bf16.msra.mxu1 %v3076_v19 }
  0xc6   : > { %v634_v63 = vmul.f32 0.2, %v3952_v15  ;;  %v3980_v32 = vmul.f32 0.2, %v3965_v36  ;;  %v3986_v20 = vsel %vm3845_vm6, %v1421_v52, -1e+30  ;;  %v3994_v34 = vadd.f32 %v3436_v40, %v512_v47 }
  0xc7   : > { %4876 = vst [vmem:[#allocation27_spill] sm:$0xff] %v3986_v20  ;;  %vm604_vm15 = vcmp.ge.f32.partialorder %v572_v33, 0.0  ;;  %1495 = vmax.xlane.f32.xlu1 %v1494_v24  ;;  %v3990_v10 = vsel %vm3857_vm7, %v1422_v6, -1e+30  ;;  %vm605_vm3 = vcmp.ge.f32.partialorder %v3878_v44, 0.0  ;;  %v4878_v50 = vunpack.c.l.b16 %v3505_v13 }
  0xc8   : > { %4877 = vst [vmem:[#allocation28_spill] sm:$0xff] %v3990_v10  ;;  %v668_v29 = vsel %vm604_vm15, %v572_v33, %v636_v23  ;;  %v4881_v52 = vunpack.c.h.b16 %v3505_v13  ;;  %v3078_v23 = vld [vmem:[%s4767_s1 + $0xc0] ss:$8 sps:$4 sm:$0xff]   ;;  %v1491_v33 = vmax.f32 %v3986_v20, %v3990_v10  ;;  %v669_v6 = vsel %vm605_vm3, %v3878_v44, %v637_v61  ;;  %v3079_v19 = vld [vmem:[%s4767_s1 + $0xd4] ss:$8 sps:$4 sm:$0xff]  }
  0xc9   : > { %vm3998_vm1 = vcmp.ne.s32.totalorder %v4878_v50, 0  ;;  %v4016_v50 = vsel %vm3792_vm0, %v668_v29, -1e+30  ;;  %v4019_v13 = vadd.f32 %v3436_v40, %v502_v48  ;;  %v4029_v10 = vsel %vm3817_vm5, %v669_v6, -1e+30  ;;  %2667 = vmatprep.subr.bf16.mxu0 %v3078_v23  ;;  %2733 = vmatprep.subr.bf16.mxu1 %v3079_v19 }
  0xca   : > { %vm4004_vm2 = vcmp.ne.s32.totalorder %v4881_v52, 0  ;;  %4884 = vst [vmem:[#allocation29_spill] sm:$0xff] %v4016_v50  ;;  %v3081_v52 = vld [vmem:[%s4767_s1 + $0x40] ss:$8 sps:$4 sm:$0xff]   ;;  %4885 = vst [vmem:[#allocation30_spill] sm:$0xff] %v4029_v10  ;;  %v4032_v44 = vadd.f32 %v3442_v42, %v502_v48  ;;  %v4035_v30 = vadd.f32 %v3442_v42, %v512_v47  ;;  %1492 = vmax.xlane.f32.xlu0 %v1491_v33  ;;  %vm1363_vm0 = vcmp.ge.f32.partialorder %v3729_v60, 0.0  ;;  %v532_v48 = vpop.permute.xlu0 %531 }
  0xcb   : > { %v4038_v61 = vmul.f32 0.2, %v3994_v34  ;;  %v3082_v29 = vld [vmem:[%s4767_s1 + $0x54] ss:$8 sps:$4 sm:$0xff]   ;;  %v819_v22 = vmax.f32 %v4016_v50, %v4029_v10  ;;  %v638_v6 = vmul.f32 0.2, %v4019_v13  ;;  %v1427_v20 = vsel %vm1363_vm0, %v3729_v60, %v3748_v54  ;;  %v507_v10 = vpop.permute.xlu1 %506  ;;  %2668 = vmatpush3.bf16.msra.mxu0 %v3081_v52 }
  0xcc   : > { %vm1364_vm5 = vcmp.ge.f32.partialorder %v3732_v59, 0.0  ;;  %v639_v47 = vmul.f32 0.2, %v4032_v44  ;;  %v4050_v23 = vmul.f32 0.2, %v4035_v30  ;;  %2734 = vmatpush3.bf16.msra.mxu1 %v3082_v29  ;;  %v4068_v60 = vadd.f32 %v3436_v40, %v507_v10 }
  0xcd   : > { %v1428_v33 = vsel %vm1364_vm5, %v3732_v59, %v3751_v57  ;;  %v3084_v50 = vld [vmem:[%s4767_s1 + $0xd0] ss:$8 sps:$4 sm:$0xff]   ;;  %820 = vmax.xlane.f32.xlu1 %v819_v22  ;;  %v4061_v19 = vsel %vm3922_vm14, %v1427_v20, -1e+30  ;;  %v4071_v59 = vadd.f32 %v3442_v42, %v507_v10  ;;  %v3085_v54 = vld [vmem:[%s4767_s1 + $0xe4] ss:$8 sps:$4 sm:$0xff]   ;;  %v4079_v20 = vadd.f32 %v3436_v40, %v532_v48 }
  0xce   : > { %4886 = vst [vmem:[#allocation31_spill] sm:$0xff] %v4061_v19  ;;  %v4065_v2 = vsel %vm3928_vm11, %v1428_v33, -1e+30  ;;  %v4082_v52 = vadd.f32 %v3442_v42, %v532_v48  ;;  %vm602_vm9 = vcmp.ge.f32.partialorder %v3952_v15, 0.0  ;;  %2669 = vmatprep.subr.bf16.mxu0 %v3084_v50  ;;  %v3087_v10 = vld [vmem:[%s4767_s1 + $0x50] ss:$8 sps:$4 sm:$0xff]   ;;  %2735 = vmatprep.subr.bf16.mxu1 %v3085_v54  ;;  %v4912_v21 = vunpack.c.l.b16 %v3529_v28 }
  0xcf   : > { %4887 = vst [vmem:[#allocation32_spill] sm:$0xff] %v4065_v2  ;;  %v1500_v57 = vmax.f32 %v4061_v19, %v4065_v2  ;;  %v3088_v29 = vld [vmem:[%s4767_s1 + $0x64] ss:$8 sps:$4 sm:$0xff]   ;;  %v640_v22 = vmul.f32 0.2, %v4068_v60  ;;  %vm603_vm10 = vcmp.ge.f32.partialorder %v3965_v36, 0.0  ;;  %v666_v48 = vsel %vm602_vm9, %v3952_v15, %v634_v63  ;;  %2670 = vmatpush3.bf16.msra.mxu0 %v3087_v10  ;;  %v1277_v63 = vpop.permute.xlu1 %1276 }
  0xd0   : > { %v641_v33 = vmul.f32 0.2, %v4071_v59  ;;  %v4888_v2 = vunpack.c.l.b16 %v3501_v11  ;;  %v4891_v19 = vunpack.c.h.b16 %v3501_v11  ;;  %v4108_v31 = vmul.f32 0.2, %v4079_v20  ;;  %2736 = vmatpush3.bf16.msra.mxu1 %v3088_v29  ;;  %v3090_v29 = vld [vmem:[%s4767_s1 + $0xe0] ss:$8 sps:$4 sm:$0xff]  }
  0xd1   : > { %v4111_v39 = vmul.f32 0.2, %v4082_v52  ;;  %v667_v15 = vsel %vm603_vm10, %v3965_v36, %v3980_v32  ;;  %1501 = vmax.xlane.f32.xlu1 %v1500_v57  ;;  %vm1361_vm12 = vcmp.ge.f32.partialorder %v3946_v38, 0.0  ;;  %vm1362_vm13 = vcmp.ge.f32.partialorder %v3949_v12, 0.0  ;;  %2671 = vmatprep.subr.bf16.mxu0 %v3090_v29  ;;  %v3097_v45 = vld [vmem:[%s4767_s1 + $0x70] ss:$8 sps:$4 sm:$0xff]  }
  0xd2   : > { %vm4097_vm4 = vcmp.ne.s32.totalorder %v4888_v2, 0  ;;  %vm4103_vm8 = vcmp.ne.s32.totalorder %v4891_v19, 0  ;;  %v4117_v2 = vsel %vm3845_vm6, %v666_v48, -1e+30  ;;  %v4121_v11 = vsel %vm3857_vm7, %v667_v15, -1e+30 }
  0xd3   : > { %vm606_vm15 = vcmp.ge.f32.partialorder %v4019_v13, 0.0  ;;  %v4894_v36 = vunpack.c.l.b16 %v3510_v16  ;;  %v4897_v32 = vunpack.c.h.b16 %v3510_v16  ;;  %v816_v5 = vmax.f32 %v4117_v2, %v4121_v11  ;;  %v3091_v16 = vld [vmem:[%s4767_s1 + $0xf4] ss:$8 sps:$4 sm:$0xff]   ;;  %v3093_v48 = vld [vmem:[%s4767_s1 + $0x60] ss:$8 sps:$4 sm:$0xff]  }
  0xd4   : > { %v1425_v54 = vsel %vm1361_vm12, %v3946_v38, %v3973_v49  ;;  %v1426_v57 = vsel %vm1362_vm13, %v3949_v12, %v3976_v9  ;;  %v1335_v10 = vadd.f32 %v3445_v43, %v1277_v63  ;;  %v1336_v12 = vadd.f32 %v3452_v46, %v1277_v63  ;;  %v3096_v63 = vld [vmem:[%s4767_s1 + $0xf0] ss:$8 sps:$4 sm:$0xff]   ;;  %2737 = vmatprep.subr.bf16.mxu1 %v3091_v16 }
  0xd5   : > { %vm4128_vm3 = vcmp.ne.s32.totalorder %v4894_v36, 0  ;;  %vm4134_vm6 = vcmp.ne.s32.totalorder %v4897_v32, 0  ;;  %v4156_v49 = vsel %vm3998_vm1, %v1425_v54, -1e+30  ;;  %v4160_v38 = vsel %vm4004_vm2, %v1426_v57, -1e+30  ;;  %817 = vmax.xlane.f32.xlu0 %v816_v5  ;;  %2672 = vmatpush3.bf16.msra.mxu0 %v3093_v48 }
  0xd6   : > { %vm607_vm7 = vcmp.ge.f32.partialorder %v4032_v44, 0.0  ;;  %v1399_v9 = vmul.f32 0.2, %v1335_v10  ;;  %v670_v15 = vsel %vm606_vm15, %v4019_v13, %v638_v6  ;;  %v733_v32 = vunpack.c.h.b16 %v3583_v3  ;;  %v3094_v54 = vld [vmem:[%s4767_s1 + $0x74] ss:$8 sps:$4 sm:$0xff]   ;;  %2673 = vmatprep.subr.bf16.mxu0 %v3096_v63 }
  0xd7   : > { %v671_v36 = vsel %vm607_vm7, %v4032_v44, %v639_v47  ;;  %v1497_v5 = vmax.f32 %v4156_v49, %v4160_v38  ;;  %v1400_v57 = vmul.f32 0.2, %v1336_v12  ;;  %v4179_v13 = vsel %vm3998_vm1, %v670_v15, -1e+30  ;;  %v517_v47 = vpop.permute.xlu1 %516  ;;  %2738 = vmatpush3.bf16.msra.mxu1 %v3094_v54 }
  0xd8   : > { %v4183_v44 = vsel %vm4004_vm2, %v671_v36, -1e+30  ;;  %vm608_vm0 = vcmp.ge.f32.partialorder %v4068_v60, 0.0  ;;  %vm609_vm5 = vcmp.ge.f32.partialorder %v4071_v59, 0.0  ;;  %vm1365_vm9 = vcmp.ge.f32.partialorder %v3771_v8, 0.0 }
  0xd9   : > { %v822_v6 = vmax.f32 %v4179_v13, %v4183_v44  ;;  %v672_v24 = vsel %vm608_vm0, %v4068_v60, %v640_v22  ;;  %v673_v29 = vsel %vm609_vm5, %v4071_v59, %v641_v33  ;;  %v580_v16 = vadd.f32 %v3436_v40, %v517_v47  ;;  %1498 = vmax.xlane.f32.xlu0 %v1497_v5 }
  0xda   : > { %v581_v48 = vadd.f32 %v3442_v42, %v517_v47  ;;  %v4900_v15 = vunpack.c.l.b16 %v3513_v17  ;;  %v4205_v54 = vsel %vm3922_vm14, %v672_v24, -1e+30  ;;  %v4209_v60 = vsel %vm3928_vm11, %v673_v29, -1e+30  ;;  %2674 = vmatpush3.bf16.msra.mxu0 %v3097_v45 }
  0xdb   : > { %vm1366_vm2 = vcmp.ge.f32.partialorder %v3774_v18, 0.0  ;;  %v1429_v59 = vsel %vm1365_vm9, %v3771_v8, %v3797_v26  ;;  %v4903_v22 = vunpack.c.h.b16 %v3513_v17  ;;  %v825_v62 = vmax.f32 %v4205_v54, %v4209_v60  ;;  %v1281_v29 = vpop.permute.xlu1 %1280 }
  0xdc   : > { %vm4199_vm1 = vcmp.ne.s32.totalorder %v4900_v15, 0  ;;  %v644_v63 = vmul.f32 0.2, %v580_v16  ;;  %v645_v5 = vmul.f32 0.2, %v581_v48  ;;  %v1430_v14 = vsel %vm1366_vm2, %v3774_v18, %v3800_v0 }
  0xdd   : > { %vm4216_vm10 = vcmp.ne.s32.totalorder %v4903_v22, 0  ;;  %v4906_v47 = vunpack.c.l.b16 %v3526_v27  ;;  %v4232_v17 = vsel %vm4097_vm4, %v1429_v59, -1e+30  ;;  %v4236_v8 = vsel %vm4103_vm8, %v1430_v14, -1e+30  ;;  %826 = vmax.xlane.f32.xlu1 %v825_v62  ;;  %823 = vmax.xlane.f32.xlu0 %v822_v6 }
  0xde   : > { %vm1367_vm11 = vcmp.ge.f32.partialorder %v1335_v10, 0.0  ;;  %vm1368_vm12 = vcmp.ge.f32.partialorder %v1336_v12, 0.0  ;;  %v1503_v0 = vmax.f32 %v4232_v17, %v4236_v8  ;;  %vm610_vm13 = vcmp.ge.f32.partialorder %v3994_v34, 0.0 }
  0xdf   : > { %vm4226_vm14 = vcmp.ne.s32.totalorder %v4906_v47, 0  ;;  %v1431_v18 = vsel %vm1367_vm11, %v1335_v10, %v1399_v9  ;;  %v1432_v26 = vsel %vm1368_vm12, %v1336_v12, %v1400_v57  ;;  %v4909_v45 = vunpack.c.h.b16 %v3526_v27 }
  0xe0   : > { %v4249_v59 = vsel %vm4128_vm3, %v1431_v18, -1e+30  ;;  %v4253_v22 = vsel %vm4134_vm6, %v1432_v26, -1e+30  ;;  %v1337_v10 = vadd.f32 %v3445_v43, %v1281_v29  ;;  %v1338_v12 = vadd.f32 %v3452_v46, %v1281_v29 }
  0xe1   : > { %vm4243_vm15 = vcmp.ne.s32.totalorder %v4909_v45, 0  ;;  %v1506_v27 = vmax.f32 %v4249_v59, %v4253_v22  ;;  %vm611_vm7 = vcmp.ge.f32.partialorder %v4035_v30, 0.0  ;;  %v674_v9 = vsel %vm610_vm13, %v3994_v34, %v4038_v61  ;;  %1504 = vmax.xlane.f32.xlu0 %v1503_v0 }
  0xe2   : > { %vm612_vm0 = vcmp.ge.f32.partialorder %v580_v16, 0.0  ;;  %v1401_v57 = vmul.f32 0.2, %v1337_v10  ;;  %v1402_v6 = vmul.f32 0.2, %v1338_v12  ;;  %v675_v62 = vsel %vm611_vm7, %v4035_v30, %v4050_v23  ;;  %v522_v23 = vpop.permute.xlu1 %521 }
  0xe3   : > { %v4266_v14 = vsel %vm4097_vm4, %v674_v9, -1e+30  ;;  %1507 = vmax.xlane.f32.xlu1 %v1506_v27  ;;  %v4270_v47 = vsel %vm4103_vm8, %v675_v62, -1e+30  ;;  %vm613_vm5 = vcmp.ge.f32.partialorder %v581_v48, 0.0  ;;  %v676_v18 = vsel %vm612_vm0, %v580_v16, %v644_v63 }
  0xe4   : > { %vm1371_vm9 = vcmp.ge.f32.partialorder %v3828_v35, 0.0  ;;  %v828_v34 = vmax.f32 %v4266_v14, %v4270_v47  ;;  %v677_v61 = vsel %vm613_vm5, %v581_v48, %v645_v5  ;;  %v4277_v30 = vsel %vm4128_vm3, %v676_v18, -1e+30 }
  0xe5   : > { %vm1372_vm4 = vcmp.ge.f32.partialorder %v3831_v1, 0.0  ;;  %vm4282_vm8 = vcmp.ne.s32.totalorder %v4912_v21, 0  ;;  %v4288_v16 = vsel %vm4134_vm6, %v677_v61, -1e+30  ;;  %v582_v63 = vadd.f32 %v3436_v40, %v522_v23 }
  0xe6   : > { %v583_v48 = vadd.f32 %v3442_v42, %v522_v23  ;;  %v1435_v25 = vsel %vm1371_vm9, %v3828_v35, %v3850_v51  ;;  %v4915_v5 = vunpack.c.h.b16 %v3529_v28  ;;  %v831_v26 = vmax.f32 %v4277_v30, %v4288_v16  ;;  %829 = vmax.xlane.f32.xlu0 %v828_v34  ;;  %v527_v9 = vpop.permute.xlu1 %526 }
  0xe7   : > { %v1436_v19 = vsel %vm1372_vm4, %v3831_v1, %v3853_v55  ;;  %v4306_v29 = vsel %vm4199_vm1, %v1435_v25, -1e+30  ;;  %vm1369_vm6 = vcmp.ge.f32.partialorder %v1337_v10, 0.0  ;;  %v646_v45 = vmul.f32 0.2, %v582_v63 }
  0xe8   : > { %vm4296_vm3 = vcmp.ne.s32.totalorder %v4915_v5, 0  ;;  %v647_v27 = vmul.f32 0.2, %v583_v48  ;;  %v4310_v28 = vsel %vm4216_vm10, %v1436_v19, -1e+30  ;;  %v1433_v35 = vsel %vm1369_vm6, %v1337_v10, %v1401_v57  ;;  %832 = vmax.xlane.f32.xlu1 %v831_v26 }
  0xe9   : > { %v1512_v51 = vmax.f32 %v4306_v29, %v4310_v28  ;;  %vm1370_vm2 = vcmp.ge.f32.partialorder %v1338_v12, 0.0  ;;  %v4316_v55 = vsel %vm4226_vm14, %v1433_v35, -1e+30  ;;  %vm614_vm11 = vcmp.ge.f32.partialorder %v582_v63, 0.0 }
  0xea   : > { %v584_v1 = vadd.f32 %v3436_v40, %v527_v9  ;;  %v585_v62 = vadd.f32 %v3442_v42, %v527_v9  ;;  %v1434_v18 = vsel %vm1370_vm2, %v1338_v12, %v1402_v6  ;;  %vm615_vm12 = vcmp.ge.f32.partialorder %v583_v48, 0.0  ;;  %v1293_v6 = vpop.permute.xlu1 %1292 }
  0xeb   : > { %v4322_v10 = vsel %vm4243_vm15, %v1434_v18, -1e+30  ;;  %v678_v57 = vsel %vm614_vm11, %v582_v63, %v646_v45  ;;  %v679_v34 = vsel %vm615_vm12, %v583_v48, %v647_v27  ;;  %vm1373_vm13 = vcmp.ge.f32.partialorder %v3881_v7, 0.0 }
  0xec   : > { %v648_v61 = vmul.f32 0.2, %v584_v1  ;;  %v649_v23 = vmul.f32 0.2, %v585_v62  ;;  %v1509_v21 = vmax.f32 %v4316_v55, %v4322_v10  ;;  %v4329_v25 = vsel %vm4226_vm14, %v678_v57, -1e+30  ;;  %1513 = vmax.xlane.f32.xlu1 %v1512_v51 }
  0xed   : > { %v4333_v12 = vsel %vm4243_vm15, %v679_v34, -1e+30  ;;  %vm616_vm7 = vcmp.ge.f32.partialorder %v584_v1, 0.0  ;;  %vm617_vm0 = vcmp.ge.f32.partialorder %v585_v62, 0.0  ;;  %vm1374_vm5 = vcmp.ge.f32.partialorder %v3893_v58, 0.0 }
  0xee   : > { %1510 = vmax.xlane.f32.xlu0 %v1509_v21  ;;  %v834_v63 = vmax.f32 %v4329_v25, %v4333_v12  ;;  %v680_v48 = vsel %vm616_vm7, %v584_v1, %v648_v61  ;;  %v681_v5 = vsel %vm617_vm0, %v585_v62, %v649_v23  ;;  %v1437_v24 = vsel %vm1373_vm13, %v3881_v7, %v3907_v53 }
  0xef   : > { %v1343_v26 = vadd.f32 %v3445_v43, %v1293_v6  ;;  %v1344_v15 = vadd.f32 %v3452_v46, %v1293_v6  ;;  %v4344_v19 = vsel %vm4199_vm1, %v680_v48, -1e+30  ;;  %v4348_v45 = vsel %vm4216_vm10, %v681_v5, -1e+30 }
  0xf0   : > { %v837_v27 = vmax.f32 %v4344_v19, %v4348_v45  ;;  %v1438_v35 = vsel %vm1374_vm5, %v3893_v58, %v3910_v4  ;;  %v4356_v53 = vsel %vm4282_vm8, %v1437_v24, -1e+30  ;;  %vm618_vm14 = vcmp.ge.f32.partialorder %v4079_v20, 0.0  ;;  %v4925_v4 = vld [vmem:[#allocation10_spill] sm:$0xff] }
  0xf1   : > { %v1407_v43 = vmul.f32 0.2, %v1343_v26  ;;  %v1408_v46 = vmul.f32 0.2, %v1344_v15  ;;  %v4361_v7 = vsel %vm4296_vm3, %v1438_v35, -1e+30  ;;  %v682_v36 = vsel %vm618_vm14, %v4079_v20, %v4108_v31  ;;  %v537_v20 = vpop.permute.xlu1 %536 }
  0xf2   : > { %835 = vmax.xlane.f32.xlu0 %v834_v63  ;;  %838 = vmax.xlane.f32.xlu1 %v837_v27  ;;  %vm619_vm1 = vcmp.ge.f32.partialorder %v4082_v52, 0.0  ;;  %v4918_v58 = vunpack.c.l.b16 %v3583_v3  ;;  %vm4374_vm15 = vcmp.ne.s32.totalorder %v733_v32, 0  ;;  %vm1375_vm9 = vcmp.ge.f32.partialorder %v1343_v26, 0.0 }
  0xf3   : > { %v1515_v31 = vmax.f32 %v4356_v53, %v4361_v7  ;;  %v683_v51 = vsel %vm619_vm1, %v4082_v52, %v4111_v39  ;;  %vm1376_vm4 = vcmp.ge.f32.partialorder %v1344_v15, 0.0  ;;  %v1439_v9 = vsel %vm1375_vm9, %v1343_v26, %v1407_v43  ;;  %v4923_v43 = vld [vmem:[#allocation5_spill] sm:$0xff] }
  0xf4   : > { %vm4368_vm10 = vcmp.ne.s32.totalorder %v4918_v58, 0  ;;  %v588_v1 = vadd.f32 %v3436_v40, %v537_v20  ;;  %v589_v62 = vadd.f32 %v3442_v42, %v537_v20  ;;  %v4386_v3 = vsel %vm4282_vm8, %v682_v36, -1e+30  ;;  %v4924_v36 = vld [vmem:[#allocation9_spill] sm:$0xff] }
  0xf5   : > { %v1440_v32 = vsel %vm1376_vm4, %v1344_v15, %v1408_v46  ;;  %v4390_v18 = vsel %vm4296_vm3, %v683_v51, -1e+30  ;;  %v4394_v57 = vsel %vm4368_vm10, %v1439_v9, -1e+30  ;;  %vm2332_vm3 = vcmask 15360  }
  0xf6   : > { %v4398_v39 = vsel %vm4374_vm15, %v1440_v32, -1e+30  ;;  %1516 = vmax.xlane.f32.xlu0 %v1515_v31  ;;  %v652_v40 = vmul.f32 0.2, %v588_v1  ;;  %v653_v42 = vmul.f32 0.2, %v589_v62  ;;  %v840_v50 = vmax.f32 %v4386_v3, %v4390_v18 }
  0xf7   : > { %v1518_v52 = vmax.f32 %v4394_v57, %v4398_v39  ;;  %vm620_vm8 = vcmp.ge.f32.partialorder %v588_v1, 0.0  ;;  %vm621_vm6 = vcmp.ge.f32.partialorder %v589_v62, 0.0  ;;  %v4926_v32 = vld [vmem:[#allocation7_spill] sm:$0xff] }
  0xf8   : > { %v684_v0 = vsel %vm620_vm8, %v588_v1, %v652_v40  ;;  %v685_v34 = vsel %vm621_vm6, %v589_v62, %v653_v42 }
  0xf9   : > { %1519 = vmax.xlane.f32.xlu1 %v1518_v52  ;;  %v4406_v61 = vsel %vm4368_vm10, %v684_v0, -1e+30  ;;  %v4410_v23 = vsel %vm4374_vm15, %v685_v34, -1e+30  ;;  %v4928_v52 = vld [vmem:[#allocation8_spill] sm:$0xff]  ;;  %v4929_v0 = vld [vmem:[#allocation6_spill] sm:$0xff] }
  0xfa   : > { %841 = vmax.xlane.f32.xlu0 %v840_v50  ;;  %v843_v21 = vmax.f32 %v4406_v61, %v4410_v23 }
  0xfd   : > { %844 = vmax.xlane.f32.xlu1 %v843_v21 }
 0x129   : > { %v1475_v6 = vpop.xlane.xlu1 %1474 }
 0x12a   : > { %v1521_v63 = vsub.f32 %v3569_v41, %v1475_v6  ;;  %v1522_v48 = vsub.f32 %v3573_v56, %v1475_v6  ;;  %v4930_v6 = vld [vmem:[#allocation11_spill] sm:$0xff] }
 0x12c   : > { %v1553_v5 = vmul.f32 1.442695, %v1521_v63  ;;  %v1555_v24 = vmul.f32 1.442695, %v1522_v48 }
 0x12e   : > { %3098 = vpow2.f32 %v1553_v5  ;;  %v803_v26 = vpop.xlane.xlu1 %802  ;;  %v4931_v5 = vld [vmem:[#allocation12_spill] sm:$0xff] }
 0x12f   : > { %3100 = vpow2.f32 %v1555_v24  ;;  %v848_v27 = vsub.f32 %v3597_v37, %v803_v26  ;;  %v849_v46 = vsub.f32 %v4923_v43, %v803_v26  ;;  %v4927_v37 = vld [vmem:[#allocation4_spill] sm:$0xff] }
 0x131   : > { %v882_v51 = vmul.f32 1.442695, %v848_v27  ;;  %v884_v62 = vmul.f32 1.442695, %v849_v46 }
 0x133   : > { %v1484_v15 = vpop.xlane.xlu1 %1483 }
 0x134   : > { %v1527_v40 = vsub.f32 %v4926_v32, %v1484_v15  ;;  %v1528_v50 = vsub.f32 %v4928_v52, %v1484_v15 }
 0x136   : > { %v1478_v35 = vpop.xlane.xlu0 %1477  ;;  %v1565_v27 = vmul.f32 1.442695, %v1527_v40 }
 0x137   : > { %v1523_v58 = vsub.f32 %v4924_v36, %v1478_v35  ;;  %v1524_v33 = vsub.f32 %v4925_v4, %v1478_v35  ;;  %v1567_v35 = vmul.f32 1.442695, %v1528_v50  ;;  %v4932_v36 = vld [vmem:[#allocation15_spill] sm:$0xff] }
 0x138   : > { %v4420_v31 = vpop.eup %3098 }
 0x139   : > { %v1557_v41 = vmul.f32 1.442695, %v1523_v58  ;;  %v1559_v20 = vmul.f32 1.442695, %v1524_v33  ;;  %v3101_v56 = vpop.eup %3100  ;;  %v4933_v33 = vld [vmem:[#allocation16_spill] sm:$0xff] }
 0x13a   : > { %v800_v1 = vpop.xlane.xlu0 %799  ;;  %v1617_v21 = vadd.f32 %v3101_v56, %v4420_v31 }
 0x13b   : > { %v809_v9 = vpop.xlane.xlu1 %808  ;;  %3102 = vpow2.f32 %v1557_v41  ;;  %v846_v42 = vsub.f32 %v4927_v37, %v800_v1  ;;  %v847_v34 = vsub.f32 %v4929_v0, %v800_v1  ;;  %v4937_v0 = vld [vmem:[#allocation13_spill] sm:$0xff] }
 0x13c   : > { %3104 = vpow2.f32 %v1559_v20  ;;  %v852_v63 = vsub.f32 %v4930_v6, %v809_v9  ;;  %v853_v24 = vsub.f32 %v4931_v5, %v809_v9  ;;  %1618 = vadd.xlane.f32.xlu0 %v1617_v21  ;;  %v4934_v9 = vld [vmem:[#allocation14_spill] sm:$0xff] }
 0x13d   : > { %v878_v48 = vmul.f32 1.442695, %v846_v42  ;;  %v880_v26 = vmul.f32 1.442695, %v847_v34  ;;  %3106 = vpow2.f32 %v882_v51  ;;  %v4936_v42 = vld [vmem:[#allocation18_spill] sm:$0xff] }
 0x13e   : > { %3108 = vpow2.f32 %v884_v62  ;;  %v890_v46 = vmul.f32 1.442695, %v852_v63  ;;  %v892_v4 = vmul.f32 1.442695, %v853_v24  ;;  %v4935_v62 = vld [vmem:[#allocation17_spill] sm:$0xff] }
 0x13f   : > { %3110 = vpow2.f32 %v878_v48 }
 0x140   : > { %v1490_v15 = vpop.xlane.xlu1 %1489  ;;  %3112 = vpow2.f32 %v880_v26 }
 0x141   : > { %v1481_v43 = vpop.xlane.xlu0 %1480  ;;  %3114 = vpow2.f32 %v1565_v27  ;;  %v1532_v1 = vsub.f32 %v4934_v9, %v1490_v15  ;;  %v1531_v34 = vsub.f32 %v4937_v0, %v1490_v15  ;;  %v4941_v9 = vld [vmem:[#allocation22_spill] sm:$0xff] }
 0x142   : > { %v1525_v58 = vsub.f32 %v4932_v36, %v1481_v43  ;;  %v1526_v41 = vsub.f32 %v4933_v33, %v1481_v43  ;;  %3116 = vpow2.f32 %v1567_v35  ;;  %v4938_v35 = vld [vmem:[#allocation19_spill] sm:$0xff] }
 0x143   : > { %3118 = vpow2.f32 %v890_v46  ;;  %v1575_v5 = vmul.f32 1.442695, %v1532_v1  ;;  %v4939_v46 = vld [vmem:[#allocation20_spill] sm:$0xff] }
 0x144   : > { %v1561_v20 = vmul.f32 1.442695, %v1525_v58  ;;  %v1563_v32 = vmul.f32 1.442695, %v1526_v41  ;;  %3120 = vpow2.f32 %v892_v4  ;;  %v1573_v4 = vmul.f32 1.442695, %v1531_v34 }
 0x145   : > { %v806_v51 = vpop.xlane.xlu0 %805  ;;  %v3103_v40 = vpop.eup %3102  ;;  %v4940_v41 = vld [vmem:[#allocation21_spill] sm:$0xff] }
 0x146   : > { %v850_v37 = vsub.f32 %v4935_v62, %v806_v51  ;;  %v851_v52 = vsub.f32 %v4936_v42, %v806_v51  ;;  %v3105_v50 = vpop.eup %3104  ;;  %v1665_v21 = vpack.c.bf16 %v3103_v40, %v4420_v31  ;;  %3122 = vpow2.f32 %v1561_v20 }
 0x147   : > { %v1666_v48 = vpack.c.bf16 %v3105_v50, %v3101_v56  ;;  %3124 = vpow2.f32 %v1563_v32  ;;  %v1620_v26 = vadd.f32 %v3105_v50, %v3103_v40  ;;  %v3107_v27 = vpop.eup %3106 }
 0x148   : > { %v886_v6 = vmul.f32 1.442695, %v850_v37  ;;  %v888_v63 = vmul.f32 1.442695, %v851_v52  ;;  %v3109_v58 = vpop.eup %3108 }
 0x149   : > { %v1487_v24 = vpop.xlane.xlu0 %1486  ;;  %1777 = vmatprep.mubr.bf16.mxu1 %v1666_v48  ;;  %1621 = vadd.xlane.f32.xlu0 %v1620_v26  ;;  %v3111_v31 = vpop.eup %3110 }
 0x14a   : > { %3126 = vpow2.f32 %v886_v6  ;;  %v1529_v43 = vsub.f32 %v4938_v35, %v1487_v24  ;;  %v1530_v36 = vsub.f32 %v4939_v46, %v1487_v24  ;;  %1778 = vmatmul.mubr.bf16.vlgmr.msra.gmra.mrb[0].mxu1 %v1665_v21  ;;  %v3113_v32 = vpop.eup %3112  ;;  %v990_v51 = vpack.c.bf16 %v3107_v27, %v3111_v31  ;;  %v4942_v21 = vld [vmem:[#allocation23_spill] sm:$0xff] }
 0x14b   : > { %3128 = vpow2.f32 %v888_v63  ;;  %v3115_v40 = vpop.eup %3114  ;;  %v991_v37 = vpack.c.bf16 %v3109_v58, %v3113_v32  ;;  %v942_v0 = vadd.f32 %v3113_v32, %v3111_v31  ;;  %v4943_v63 = vld [vmem:[#allocation24_spill] sm:$0xff]  ;;  %v945_v46 = vadd.f32 %v3109_v58, %v3107_v27 }
 0x14c   : > { %v815_v15 = vpop.xlane.xlu1 %814  ;;  %v1569_v33 = vmul.f32 1.442695, %v1529_v43  ;;  %v1571_v56 = vmul.f32 1.442695, %v1530_v36  ;;  %3130 = vpow2.f32 %v1575_v5  ;;  %v3117_v42 = vpop.eup %3116  ;;  %v4947_v58 = vld [vmem:[#allocation28_spill] sm:$0xff] }
 0x14d   : > { %v856_v20 = vsub.f32 %v4940_v41, %v815_v15  ;;  %v857_v1 = vsub.f32 %v4941_v9, %v815_v15  ;;  %v3119_v34 = vpop.eup %3118  ;;  %1134 = vmatprep.mubr.bf16.mxu0 %v991_v37  ;;  %943 = vadd.xlane.f32.xlu1 %v942_v0  ;;  %v4944_v15 = vld [vmem:[#allocation25_spill] sm:$0xff] }
 0x14e   : > { %3132 = vpow2.f32 %v1569_v33  ;;  %v3121_v24 = vpop.eup %3120  ;;  %1135 = vmatmul.mubr.bf16.vlgmr.msra.gmra.mrb[0].mxu0 %v990_v51  ;;  %v4945_v33 = vld [vmem:[#allocation26_spill] sm:$0xff] }
 0x14f   : > { %v898_v62 = vmul.f32 1.442695, %v856_v20  ;;  %3134 = vpow2.f32 %v1571_v56  ;;  %v900_v52 = vmul.f32 1.442695, %v857_v1 }
 0x150   : > { %3136 = vpow2.f32 %v1573_v4  ;;  %v3123_v5 = vpop.eup %3122 }
 0x151   : > { %v812_v50 = vpop.xlane.xlu0 %811  ;;  %3138 = vpow2.f32 %v898_v62  ;;  %v3125_v36 = vpop.eup %3124  ;;  %v1667_v56 = vpack.c.bf16 %v3115_v40, %v3123_v5  ;;  %946 = vadd.xlane.f32.xlu1 %v945_v46 }
 0x152   : > { %v854_v6 = vsub.f32 %v4942_v21, %v812_v50  ;;  %v855_v48 = vsub.f32 %v4943_v63, %v812_v50  ;;  %3140 = vpow2.f32 %v900_v52  ;;  %v1668_v20 = vpack.c.bf16 %v3117_v42, %v3125_v36  ;;  %v4946_v50 = vld [vmem:[#allocation27_spill] sm:$0xff] }
 0x153   : > { %v1623_v9 = vadd.f32 %v3125_v36, %v3123_v5  ;;  %v1626_v63 = vadd.f32 %v3117_v42, %v3115_v40  ;;  %v951_v42 = vadd.f32 %v3121_v24, %v3119_v34 }
 0x154   : > { %v894_v26 = vmul.f32 1.442695, %v854_v6  ;;  %v896_v35 = vmul.f32 1.442695, %v855_v48  ;;  %v1496_v43 = vpop.xlane.xlu1 %1495  ;;  %v3127_v41 = vpop.eup %3126  ;;  %1785 = vmatprep.mubr.bf16.mxu1 %v1668_v20 }
 0x155   : > { %v1535_v31 = vsub.f32 %v4944_v15, %v1496_v43  ;;  %v1536_v4 = vsub.f32 %v4945_v33, %v1496_v43  ;;  %v3129_v1 = vpop.eup %3128  ;;  %v992_v37 = vpack.c.bf16 %v3119_v34, %v3127_v41  ;;  %1624 = vadd.xlane.f32.xlu0 %v1623_v9  ;;  %1786 = vmatmul.mubr.bf16.gmra.mrb[4].mxu1 %v1667_v56  ;;  %v4948_v43 = vld [vmem:[#allocation29_spill] sm:$0xff]  ;;  %v4949_v15 = vld [vmem:[#allocation30_spill] sm:$0xff] }
 0x156   : > { %3142 = vpow2.f32 %v894_v26  ;;  %v993_v0 = vpack.c.bf16 %v3121_v24, %v3129_v1  ;;  %v3131_v21 = vpop.eup %3130  ;;  %v948_v48 = vadd.f32 %v3129_v1, %v3127_v41  ;;  %v4950_v1 = vld [vmem:[#allocation31_spill] sm:$0xff] }
 0x157   : > { %3144 = vpow2.f32 %v896_v35  ;;  %v1581_v32 = vmul.f32 1.442695, %v1535_v31  ;;  %v1583_v51 = vmul.f32 1.442695, %v1536_v4  ;;  %v1493_v62 = vpop.xlane.xlu0 %1492 }
 0x158   : > { %v1533_v27 = vsub.f32 %v4946_v50, %v1493_v62  ;;  %v1534_v52 = vsub.f32 %v4947_v58, %v1493_v62  ;;  %v3133_v5 = vpop.eup %3132  ;;  %1142 = vmatprep.mubr.bf16.mxu0 %v993_v0  ;;  %949 = vadd.xlane.f32.xlu1 %v948_v48  ;;  %v4951_v50 = vld [vmem:[#allocation32_spill] sm:$0xff] }
 0x159   : > { %3146 = vpow2.f32 %v1581_v32  ;;  %v3135_v46 = vpop.eup %3134  ;;  %1143 = vmatmul.mubr.bf16.gmra.mrb[4].mxu0 %v992_v37  ;;  %1627 = vadd.xlane.f32.xlu0 %v1626_v63 }
 0x15a   : > { %v821_v6 = vpop.xlane.xlu1 %820  ;;  %v1577_v26 = vmul.f32 1.442695, %v1533_v27  ;;  %v1579_v35 = vmul.f32 1.442695, %v1534_v52  ;;  %3148 = vpow2.f32 %v1583_v51  ;;  %v3137_v33 = vpop.eup %3136  ;;  %v1670_v4 = vpack.c.bf16 %v3131_v21, %v3135_v46 }
 0x15b   : > { %v860_v36 = vsub.f32 %v4948_v43, %v821_v6  ;;  %v861_v31 = vsub.f32 %v4949_v15, %v821_v6  ;;  %v1629_v56 = vadd.f32 %v3135_v46, %v3133_v5  ;;  %v1669_v41 = vpack.c.bf16 %v3137_v33, %v3133_v5  ;;  %v3139_v20 = vpop.eup %3138 }
 0x15c   : > { %3150 = vpow2.f32 %v1577_v26  ;;  %1793 = vmatprep.mubr.bf16.mxu1 %v1670_v4  ;;  %v3141_v62 = vpop.eup %3140  ;;  %952 = vadd.xlane.f32.xlu1 %v951_v42  ;;  %v1632_v63 = vadd.f32 %v3137_v33, %v3131_v21 }
 0x15d   : > { %3152 = vpow2.f32 %v1579_v35  ;;  %v906_v9 = vmul.f32 1.442695, %v860_v36  ;;  %v908_v51 = vmul.f32 1.442695, %v861_v31  ;;  %1630 = vadd.xlane.f32.xlu0 %v1629_v56  ;;  %1794 = vmatmul.mubr.bf16.gmra.mrb[8].mxu1 %v1669_v41  ;;  %v957_v31 = vadd.f32 %v3141_v62, %v3139_v20 }
 0x15e   : > { %v1502_v40 = vpop.xlane.xlu1 %1501 }
 0x15f   : > { %v1539_v32 = vsub.f32 %v4950_v1, %v1502_v40  ;;  %v1540_v27 = vsub.f32 %v4951_v50, %v1502_v40  ;;  %3154 = vpow2.f32 %v906_v9 }
 0x160   : > { %v3143_v37 = vpop.eup %3142  ;;  %3156 = vpow2.f32 %v908_v51 }
 0x161   : > { %v1589_v58 = vmul.f32 1.442695, %v1539_v32  ;;  %v3145_v0 = vpop.eup %3144  ;;  %v994_v24 = vpack.c.bf16 %v3139_v20, %v3143_v37  ;;  %v1591_v26 = vmul.f32 1.442695, %v1540_v27  ;;  %1633 = vadd.xlane.f32.xlu0 %v1632_v63 }
 0x162   : > { %v818_v52 = vpop.xlane.xlu0 %817  ;;  %v995_v48 = vpack.c.bf16 %v3141_v62, %v3145_v0  ;;  %v954_v5 = vadd.f32 %v3145_v0, %v3143_v37 }
 0x163   : > { %v858_v6 = vsub.f32 %v4117_v2, %v818_v52  ;;  %v859_v34 = vsub.f32 %v4121_v11, %v818_v52  ;;  %v3147_v36 = vpop.eup %3146  ;;  %3158 = vpow2.f32 %v1589_v58 }
 0x164   : > { %1150 = vmatprep.mubr.bf16.mxu0 %v995_v48  ;;  %v3149_v15 = vpop.eup %3148  ;;  %955 = vadd.xlane.f32.xlu1 %v954_v5 }
 0x165   : > { %v902_v35 = vmul.f32 1.442695, %v858_v6  ;;  %v904_v43 = vmul.f32 1.442695, %v859_v34  ;;  %1151 = vmatmul.mubr.bf16.gmra.mrb[8].mxu0 %v994_v24  ;;  %v1638_v58 = vadd.f32 %v3149_v15, %v3147_v36 }
 0x166   : > { %v1499_v46 = vpop.xlane.xlu0 %1498  ;;  %v3151_v21 = vpop.eup %3150 }
 0x167   : > { %3160 = vpow2.f32 %v902_v35  ;;  %v1537_v2 = vsub.f32 %v4156_v49, %v1499_v46  ;;  %v1538_v11 = vsub.f32 %v4160_v38, %v1499_v46  ;;  %v3153_v33 = vpop.eup %3152  ;;  %v1671_v42 = vpack.c.bf16 %v3147_v36, %v3151_v21 }
 0x168   : > { %3162 = vpow2.f32 %v904_v43  ;;  %v1672_v32 = vpack.c.bf16 %v3149_v15, %v3153_v33  ;;  %v1635_v49 = vadd.f32 %v3153_v33, %v3151_v21  ;;  %958 = vadd.xlane.f32.xlu1 %v957_v31 }
 0x169   : > { %3164 = vpow2.f32 %v1591_v26  ;;  %v1585_v4 = vmul.f32 1.442695, %v1537_v2  ;;  %v1587_v56 = vmul.f32 1.442695, %v1538_v11 }
 0x16a   : > { %v827_v40 = vpop.xlane.xlu1 %826  ;;  %v824_v41 = vpop.xlane.xlu0 %823  ;;  %1801 = vmatprep.mubr.bf16.mxu1 %v1672_v32  ;;  %1636 = vadd.xlane.f32.xlu0 %v1635_v49 }
 0x16b   : > { %v864_v9 = vsub.f32 %v4205_v54, %v827_v40  ;;  %v865_v1 = vsub.f32 %v4209_v60, %v827_v40  ;;  %3166 = vpow2.f32 %v1585_v4  ;;  %v862_v38 = vsub.f32 %v4179_v13, %v824_v41  ;;  %1802 = vmatmul.mubr.bf16.gmra.mrb[12].mxu1 %v1671_v42  ;;  %v3155_v54 = vpop.eup %3154 }
 0x16c   : > { %v863_v51 = vsub.f32 %v4183_v44, %v824_v41  ;;  %3168 = vpow2.f32 %v1587_v56  ;;  %v3157_v0 = vpop.eup %3156 }
 0x16d   : > { %v914_v20 = vmul.f32 1.442695, %v864_v9  ;;  %v910_v62 = vmul.f32 1.442695, %v862_v38  ;;  %v916_v27 = vmul.f32 1.442695, %v865_v1  ;;  %v3159_v34 = vpop.eup %3158 }
 0x16e   : > { %v912_v50 = vmul.f32 1.442695, %v863_v51  ;;  %v1505_v60 = vpop.xlane.xlu0 %1504  ;;  %1639 = vadd.xlane.f32.xlu0 %v1638_v58 }
 0x16f   : > { %3170 = vpow2.f32 %v914_v20  ;;  %v1541_v44 = vsub.f32 %v4232_v17, %v1505_v60  ;;  %v1542_v6 = vsub.f32 %v4236_v8, %v1505_v60 }
 0x170   : > { %v1508_v37 = vpop.xlane.xlu1 %1507  ;;  %3172 = vpow2.f32 %v910_v62 }
 0x171   : > { %v1543_v52 = vsub.f32 %v4249_v59, %v1508_v37  ;;  %v1544_v13 = vsub.f32 %v4253_v22, %v1508_v37  ;;  %3174 = vpow2.f32 %v912_v50  ;;  %v3161_v63 = vpop.eup %3160  ;;  %v1593_v48 = vmul.f32 1.442695, %v1541_v44 }
 0x172   : > { %3176 = vpow2.f32 %v916_v27  ;;  %v1595_v5 = vmul.f32 1.442695, %v1542_v6  ;;  %v3163_v35 = vpop.eup %3162  ;;  %v996_v22 = vpack.c.bf16 %v3155_v54, %v3161_v63 }
 0x173   : > { %v1597_v24 = vmul.f32 1.442695, %v1543_v52  ;;  %v1599_v26 = vmul.f32 1.442695, %v1544_v13  ;;  %v830_v59 = vpop.xlane.xlu0 %829  ;;  %v3165_v36 = vpop.eup %3164  ;;  %v997_v46 = vpack.c.bf16 %v3157_v0, %v3163_v35  ;;  %v960_v15 = vadd.f32 %v3163_v35, %v3161_v63 }
 0x174   : > { %v866_v17 = vsub.f32 %v4266_v14, %v830_v59  ;;  %v867_v8 = vsub.f32 %v4270_v47, %v830_v59  ;;  %v963_v14 = vadd.f32 %v3157_v0, %v3155_v54  ;;  %v1644_v54 = vadd.f32 %v3165_v36, %v3159_v34 }
 0x175   : > { %3178 = vpow2.f32 %v1597_v24  ;;  %v833_v43 = vpop.xlane.xlu1 %832  ;;  %v3167_v21 = vpop.eup %3166  ;;  %1158 = vmatprep.mubr.bf16.mxu0 %v997_v46  ;;  %961 = vadd.xlane.f32.xlu1 %v960_v15 }
 0x176   : > { %3180 = vpow2.f32 %v1593_v48  ;;  %v868_v2 = vsub.f32 %v4277_v30, %v833_v43  ;;  %v869_v11 = vsub.f32 %v4288_v16, %v833_v43  ;;  %v918_v31 = vmul.f32 1.442695, %v866_v17  ;;  %v3169_v4 = vpop.eup %3168  ;;  %1159 = vmatmul.mubr.bf16.gmra.mrb[12].mxu0 %v996_v22 }
 0x177   : > { %3182 = vpow2.f32 %v1595_v5  ;;  %v920_v33 = vmul.f32 1.442695, %v867_v8  ;;  %v1673_v47 = vpack.c.bf16 %v3159_v34, %v3167_v21  ;;  %v1674_v41 = vpack.c.bf16 %v3165_v36, %v3169_v4 }
 0x178   : > { %3184 = vpow2.f32 %v1599_v26  ;;  %v922_v56 = vmul.f32 1.442695, %v868_v2  ;;  %v924_v40 = vmul.f32 1.442695, %v869_v11  ;;  %v1641_v9 = vadd.f32 %v3169_v4, %v3167_v21 }
 0x179   : > { %v1514_v42 = vpop.xlane.xlu1 %1513  ;;  %3186 = vpow2.f32 %v918_v31  ;;  %v3171_v16 = vpop.eup %3170  ;;  %1809 = vmatprep.mubr.bf16.mxu1 %v1674_v41  ;;  %964 = vadd.xlane.f32.xlu1 %v963_v14 }
 0x17a   : > { %v1547_v30 = vsub.f32 %v4306_v29, %v1514_v42  ;;  %3188 = vpow2.f32 %v920_v33  ;;  %v1548_v32 = vsub.f32 %v4310_v28, %v1514_v42  ;;  %v3173_v51 = vpop.eup %3172  ;;  %1642 = vadd.xlane.f32.xlu0 %v1641_v9  ;;  %1810 = vmatmul.mubr.bf16.gmra.mrb[16].mxu1 %v1673_v47 }
 0x17b   : > { %v1511_v1 = vpop.xlane.xlu0 %1510  ;;  %3190 = vpow2.f32 %v922_v56  ;;  %v3175_v62 = vpop.eup %3174  ;;  %v998_v60 = vpack.c.bf16 %v3171_v16, %v3173_v51 }
 0x17c   : > { %v1545_v49 = vsub.f32 %v4316_v55, %v1511_v1  ;;  %v1546_v38 = vsub.f32 %v4322_v10, %v1511_v1  ;;  %v1605_v20 = vmul.f32 1.442695, %v1547_v30  ;;  %3192 = vpow2.f32 %v924_v40  ;;  %v3177_v37 = vpop.eup %3176 }
 0x17d   : > { %v1607_v50 = vmul.f32 1.442695, %v1548_v32  ;;  %v966_v28 = vadd.f32 %v3175_v62, %v3173_v51  ;;  %v999_v52 = vpack.c.bf16 %v3177_v37, %v3175_v62  ;;  %v969_v5 = vadd.f32 %v3177_v37, %v3171_v16  ;;  %v2011_v51 = vld [vmem:[%s4772_s6 + $0x88] sm:$0xff] }
 0x17e   : > { %v1601_v29 = vmul.f32 1.442695, %v1545_v49  ;;  %v1603_v27 = vmul.f32 1.442695, %v1546_v38  ;;  %3194 = vpow2.f32 %v1605_v20  ;;  %1645 = vadd.xlane.f32.xlu0 %v1644_v54  ;;  %v2010_v38 = vld [vmem:[%s4772_s6 + $0x80] sm:$0xff] }
 0x17f   : > { %v836_v55 = vpop.xlane.xlu0 %835  ;;  %v839_v58 = vpop.xlane.xlu1 %838  ;;  %3196 = vpow2.f32 %v1607_v50  ;;  %967 = vadd.xlane.f32.xlu1 %v966_v28  ;;  %1166 = vmatprep.mubr.bf16.mxu0 %v999_v52  ;;  %v1994_v20 = vld [vmem:[%s4772_s6] sm:$0xff]  ;;  %v1995_v50 = vld [vmem:[%s4772_s6 + $0x8] sm:$0xff]  ;;  %v2955_v37 = vpack.c.bf16 %v2011_v51, %v2010_v38 }
 0x180   : > { %v3179_v10 = vpop.eup %3178  ;;  %v870_v13 = vsub.f32 %v4329_v25, %v836_v55  ;;  %v871_v0 = vsub.f32 %v4333_v12, %v836_v55  ;;  %3198 = vpow2.f32 %v1601_v29  ;;  %v872_v6 = vsub.f32 %v4344_v19, %v839_v58  ;;  %1167 = vmatmul.mubr.bf16.gmra.mrb[16].mxu0 %v998_v60  ;;  %v2022_v38 = vld [vmem:[%s4772_s6 + $0xe0] sm:$0xff] }
 0x181   : > { %v3181_v44 = vpop.eup %3180  ;;  %v873_v24 = vsub.f32 %v4348_v45, %v839_v58  ;;  %3200 = vpow2.f32 %v1603_v27  ;;  %v2957_v54 = vpack.c.bf16 %v1995_v50, %v1994_v20  ;;  %2956 = vmatprep.subr.bf16.mxu0 %v2955_v37  ;;  %v2023_v20 = vld [vmem:[%s4772_s6 + $0xe8] sm:$0xff]  ;;  %v2008_v37 = vld [vmem:[%s4772_s6 + $0x70] sm:$0xff] }
 0x182   : > { %v3183_v63 = vpop.eup %3182  ;;  %v926_v34 = vmul.f32 1.442695, %v870_v13  ;;  %v928_v48 = vmul.f32 1.442695, %v871_v0  ;;  %v930_v25 = vmul.f32 1.442695, %v872_v6  ;;  %v1675_v12 = vpack.c.bf16 %v3179_v10, %v3181_v44 }
 0x183   : > { %v3185_v26 = vpop.eup %3184  ;;  %v1647_v35 = vadd.f32 %v3183_v63, %v3181_v44  ;;  %v932_v59 = vmul.f32 1.442695, %v873_v24  ;;  %v1517_v43 = vpop.xlane.xlu0 %1516  ;;  %970 = vadd.xlane.f32.xlu1 %v969_v5  ;;  %2958 = vmatpush3.bf16.msra.mxu0 %v2957_v54  ;;  %v1996_v5 = vld [vmem:[%s4772_s6 + $0x10] sm:$0xff] }
 0x184   : > { %3202 = vpow2.f32 %v926_v34  ;;  %v1676_v22 = vpack.c.bf16 %v3185_v26, %v3183_v63  ;;  %v1549_v19 = vsub.f32 %v4356_v53, %v1517_v43  ;;  %v1550_v45 = vsub.f32 %v4361_v7, %v1517_v43  ;;  %v3187_v36 = vpop.eup %3186  ;;  %v2012_v34 = vld [vmem:[%s4772_s6 + $0x90] sm:$0xff] }
 0x185   : > { %3204 = vpow2.f32 %v928_v48  ;;  %1648 = vadd.xlane.f32.xlu0 %v1647_v35  ;;  %v3189_v8 = vpop.eup %3188  ;;  %v1650_v21 = vadd.f32 %v3185_v26, %v3179_v10  ;;  %v2013_v48 = vld [vmem:[%s4772_s6 + $0x98] sm:$0xff] }
 0x186   : > { %v1520_v17 = vpop.xlane.xlu1 %1519  ;;  %1817 = vmatprep.mubr.bf16.mxu1 %v1676_v22  ;;  %3206 = vpow2.f32 %v930_v25  ;;  %v1609_v46 = vmul.f32 1.442695, %v1549_v19  ;;  %v1611_v15 = vmul.f32 1.442695, %v1550_v45  ;;  %v3191_v11 = vpop.eup %3190  ;;  %v972_v31 = vadd.f32 %v3189_v8, %v3187_v36 }
 0x187   : > { %v1551_v2 = vsub.f32 %v4394_v57, %v1520_v17  ;;  %3208 = vpow2.f32 %v932_v59  ;;  %1818 = vmatmul.mubr.bf16.gmra.mrb[20].mxu1 %v1675_v12  ;;  %v842_v53 = vpop.xlane.xlu0 %841  ;;  %v1552_v7 = vsub.f32 %v4398_v39, %v1520_v17  ;;  %v3193_v33 = vpop.eup %3192  ;;  %v1000_v47 = vpack.c.bf16 %v3191_v11, %v3187_v36  ;;  %v1997_v59 = vld [vmem:[%s4772_s6 + $0x18] sm:$0xff] }
 0x188   : > { %3210 = vpow2.f32 %v1609_v46  ;;  %v874_v4 = vsub.f32 %v4386_v3, %v842_v53  ;;  %v875_v56 = vsub.f32 %v4390_v18, %v842_v53  ;;  %v3195_v14 = vpop.eup %3194  ;;  %v1001_v42 = vpack.c.bf16 %v3193_v33, %v3189_v8  ;;  %973 = vadd.xlane.f32.xlu1 %v972_v31  ;;  %v1998_v31 = vld [vmem:[%s4772_s6 + $0x20] sm:$0xff] }
 0x189   : > { %v1613_v40 = vmul.f32 1.442695, %v1551_v2  ;;  %3212 = vpow2.f32 %v1611_v15  ;;  %1651 = vadd.xlane.f32.xlu0 %v1650_v21  ;;  %v1615_v57 = vmul.f32 1.442695, %v1552_v7  ;;  %v3197_v9 = vpop.eup %3196  ;;  %v975_v39 = vadd.f32 %v3193_v33, %v3191_v11  ;;  %v2014_v11 = vld [vmem:[%s4772_s6 + $0xa0] sm:$0xff]  ;;  %v2015_v21 = vld [vmem:[%s4772_s6 + $0xa8] sm:$0xff] }
 0x18a   : > { %v845_v41 = vpop.xlane.xlu1 %844  ;;  %v934_v30 = vmul.f32 1.442695, %v874_v4  ;;  %v936_v1 = vmul.f32 1.442695, %v875_v56  ;;  %v3199_v16 = vpop.eup %3198  ;;  %1174 = vmatprep.mubr.bf16.mxu0 %v1001_v42  ;;  %v1656_v10 = vadd.f32 %v3197_v9, %v3195_v14  ;;  %v2959_v25 = vpack.c.bf16 %v2013_v48, %v2012_v34  ;;  %v1999_v7 = vld [vmem:[%s4772_s6 + $0x28] sm:$0xff]  ;;  %v2016_v4 = vld [vmem:[%s4772_s6 + $0xb0] sm:$0xff] }
 0x18b   : > { %3214 = vpow2.f32 %v1613_v40  ;;  %v876_v3 = vsub.f32 %v4406_v61, %v845_v41  ;;  %v877_v18 = vsub.f32 %v4410_v23, %v845_v41  ;;  %v3201_v32 = vpop.eup %3200  ;;  %1175 = vmatmul.mubr.bf16.gmra.mrb[20].mxu0 %v1000_v47  ;;  %v1677_v49 = vpack.c.bf16 %v3195_v14, %v3199_v16  ;;  %v2017_v56 = vld [vmem:[%s4772_s6 + $0xb8] sm:$0xff]  ;;  %v2000_v40 = vld [vmem:[%s4772_s6 + $0x30] sm:$0xff]  ;;  %v2018_v47 = vld [vmem:[%s4772_s6 + $0xc0] sm:$0xff] }
 0x18c   : > { %3216 = vpow2.f32 %v1615_v57  ;;  %v1678_v61 = vpack.c.bf16 %v3197_v9, %v3201_v32  ;;  %v1653_v62 = vadd.f32 %v3201_v32, %v3199_v16  ;;  %976 = vadd.xlane.f32.xlu1 %v975_v39  ;;  %v2961_v22 = vpack.c.bf16 %v1997_v59, %v1996_v5  ;;  %2960 = vmatprep.subr.bf16.mxu0 %v2959_v25  ;;  %v2001_v42 = vld [vmem:[%s4772_s6 + $0x38] sm:$0xff]  ;;  %v2019_v41 = vld [vmem:[%s4772_s6 + $0xc8] sm:$0xff]  ;;  %v2020_v16 = vld [vmem:[%s4772_s6 + $0xd0] sm:$0xff] }
 0x18d   : > { %3218 = vpow2.f32 %v934_v30  ;;  %v938_v23 = vmul.f32 1.442695, %v876_v3  ;;  %v940_v27 = vmul.f32 1.442695, %v877_v18  ;;  %v2963_v53 = vpack.c.bf16 %v2015_v21, %v2014_v11  ;;  %v2002_v30 = vld [vmem:[%s4772_s6 + $0x40] sm:$0xff]  ;;  %v2021_v3 = vld [vmem:[%s4772_s6 + $0xd8] sm:$0xff] }
 0x18e   : > { %3220 = vpow2.f32 %v936_v1  ;;  %v3203_v29 = vpop.eup %3202  ;;  %1825 = vmatprep.mubr.bf16.mxu1 %v1678_v61  ;;  %1654 = vadd.xlane.f32.xlu0 %v1653_v62  ;;  %v2965_v33 = vpack.c.bf16 %v1999_v7, %v1998_v31  ;;  %v2967_v14 = vpack.c.bf16 %v2017_v56, %v2016_v4  ;;  %v2969_v57 = vpack.c.bf16 %v2001_v42, %v2000_v40  ;;  %v2003_v1 = vld [vmem:[%s4772_s6 + $0x48] sm:$0xff]  ;;  %v2004_v32 = vld [vmem:[%s4772_s6 + $0x50] sm:$0xff]  ;;  %v2006_v62 = vld [vmem:[%s4772_s6 + $0x60] sm:$0xff] }
 0x18f   : > { %v3205_v28 = vpop.eup %3204  ;;  %3222 = vpow2.f32 %v938_v23  ;;  %1826 = vmatmul.mubr.bf16.gmra.mrb[24].mxu1 %v1677_v49  ;;  %2962 = vmatpush3.bf16.msra.mxu0 %v2961_v22  ;;  %v2971_v9 = vpack.c.bf16 %v2019_v41, %v2018_v47  ;;  %v2973_v39 = vpack.c.bf16 %v2003_v1, %v2002_v30  ;;  %v2975_v18 = vpack.c.bf16 %v2021_v3, %v2020_v16  ;;  %v2005_v49 = vld [vmem:[%s4772_s6 + $0x58] sm:$0xff]  ;;  %v2007_v23 = vld [vmem:[%s4772_s6 + $0x68] sm:$0xff]  ;;  %v2179_v5 = vld [vmem:[%s4773_s7 + $0x40] sm:$0xff] }
 0x190   : > { %v3207_v60 = vpop.eup %3206  ;;  %3224 = vpow2.f32 %v940_v27  ;;  %v978_v55 = vadd.f32 %v3205_v28, %v3203_v29  ;;  %2964 = vmatprep.subr.bf16.mxu0 %v2963_v53  ;;  %v2977_v51 = vpack.c.bf16 %v2005_v49, %v2004_v32  ;;  %v2979_v61 = vpack.c.bf16 %v2023_v20, %v2022_v38  ;;  %v2025_v27 = vld [vmem:[%s4772_s6 + $0xf8] sm:$0xff]  ;;  %v2181_v25 = vld [vmem:[%s4773_s7 + $0x50] sm:$0xff]  ;;  %v1918_v31 = vld [vmem:[%s4771_s5] sm:$0x3] }
 0x191   : > { %v3209_v58 = vpop.eup %3208  ;;  %v1002_v52 = vpack.c.bf16 %v3207_v60, %v3203_v29  ;;  %v2981_v50 = vpack.c.bf16 %v2007_v23, %v2006_v62  ;;  %v2024_v29 = vld [vmem:[%s4772_s6 + $0xf0] sm:$0xff]  ;;  %v2178_v34 = vld [vmem:[%s4773_s7 + $0x38] sm:$0xff]  ;;  %v4952_v7 = vld [vmem:[#allocation3_spill] sm:$0xff] }
 0x192   : > { %v3211_v13 = vpop.eup %3210  ;;  %979 = vadd.xlane.f32.xlu1 %v978_v55  ;;  %v1003_v0 = vpack.c.bf16 %v3209_v58, %v3205_v28  ;;  %v981_v44 = vadd.f32 %v3209_v58, %v3207_v60  ;;  %1657 = vadd.xlane.f32.xlu0 %v1656_v10  ;;  %v2983_v54 = vpack.c.bf16 %v2025_v27, %v2024_v29  ;;  %v2009_v28 = vld [vmem:[%s4772_s6 + $0x78] sm:$0xff]  ;;  %v2171_v55 = vld [vmem:[%s4773_s7] sm:$0xff]  ;;  %v2172_v58 = vld [vmem:[%s4773_s7 + $0x8] sm:$0xff] }
 0x193   : > { %v3213_v6 = vpop.eup %3212  ;;  %2966 = vmatpush3.bf16.msra.mxu0 %v2965_v33  ;;  %v2985_v60 = vpack.c.bf16 %v2009_v28, %v2008_v37  ;;  %v2173_v10 = vld [vmem:[%s4773_s7 + $0x10] sm:$0xff]  ;;  %v2182_v59 = vld [vmem:[%s4773_s7 + $0x58] sm:$0xff]  ;;  %v4624_v47 = vrot.slane %v1918_v31, %v4952_v7 }
 0x194   : > { %1182 = vmatprep.mubr.bf16.mxu0 %v1003_v0  ;;  %v1659_v63 = vadd.f32 %v3213_v6, %v3211_v13  ;;  %2968 = vmatprep.subr.bf16.mxu0 %v2967_v14 }
 0x195   : > { %v3215_v24 = vpop.eup %3214  ;;  %1183 = vmatmul.mubr.bf16.gmra.mrb[24].mxu0 %v1002_v52  ;;  %v2987_v52 = vpack.c.bf16 %v2172_v58, %v2171_v55 }
 0x196   : > { %v3217_v26 = vpop.eup %3216  ;;  %v1679_v35 = vpack.c.bf16 %v3215_v24, %v3211_v13  ;;  %982 = vadd.xlane.f32.xlu1 %v981_v44  ;;  %1660 = vadd.xlane.f32.xlu0 %v1659_v63  ;;  %v2174_v13 = vld [vmem:[%s4773_s7 + $0x18] sm:$0xff]  ;;  %v2175_v44 = vld [vmem:[%s4773_s7 + $0x20] sm:$0xff]  ;;  %v2177_v63 = vld [vmem:[%s4773_s7 + $0x30] sm:$0xff] }
 0x197   : > { %v3219_v12 = vpop.eup %3218  ;;  %v1680_v43 = vpack.c.bf16 %v3217_v26, %v3213_v6  ;;  %v1662_v45 = vadd.f32 %v3217_v26, %v3215_v24  ;;  %2970 = vmatpush3.bf16.msra.mxu0 %v2969_v57  ;;  %v2991_v0 = vpack.c.bf16 %v2174_v13, %v2173_v10  ;;  %v2176_v6 = vld [vmem:[%s4773_s7 + $0x28] sm:$0xff]  ;;  %2988 = vmatprep.subr.bf16.mxu1 %v2987_v52 }
 0x198   : > { %v3221_v19 = vpop.eup %3220  ;;  %2972 = vmatprep.subr.bf16.mxu0 %v2971_v9  ;;  %2990 = vmatpush3.bf16.msra.mxu1 %v2987_v52  ;;  %v2995_v24 = vpack.c.bf16 %v2176_v6, %v2175_v44  ;;  %v2999_v48 = vpack.c.bf16 %v2178_v34, %v2177_v63  ;;  %v2180_v26 = vld [vmem:[%s4773_s7 + $0x48] sm:$0xff] }
 0x199   : > { %v984_v36 = vadd.f32 %v3221_v19, %v3219_v12  ;;  %1833 = vmatprep.mubr.bf16.mxu1 %v1680_v43  ;;  %v3223_v17 = vpop.eup %3222  ;;  %2992 = vmatprep.subr.bf16.mxu1 %v2991_v0  ;;  %v3007_v43 = vpack.c.bf16 %v2182_v59, %v2181_v25 }
 0x19a   : > { %1834 = vmatmul.mubr.bf16.gmra.mrb[28].mxu1 %v1679_v35  ;;  %v3225_v8 = vpop.eup %3224  ;;  %v1004_v46 = vpack.c.bf16 %v3223_v17, %v3219_v12  ;;  %1663 = vadd.xlane.f32.xlu0 %v1662_v45  ;;  %v3003_v35 = vpack.c.bf16 %v2180_v26, %v2179_v5 }
 0x19b   : > { %985 = vadd.xlane.f32.xlu1 %v984_v36  ;;  %v1005_v15 = vpack.c.bf16 %v3225_v8, %v3221_v19  ;;  %v987_v2 = vadd.f32 %v3225_v8, %v3223_v17  ;;  %2974 = vmatpush3.bf16.msra.mxu0 %v2973_v39 }
 0x19c   : > { %2976 = vmatprep.subr.bf16.mxu0 %v2975_v18  ;;  %2994 = vmatpush3.bf16.msra.mxu1 %v2991_v0  ;;  %v4953_v18 = vld [vmem:[#allocation2_spill] sm:$0xff] }
 0x19d   : > { %1190 = vmatprep.mubr.bf16.mxu0 %v1005_v15  ;;  %2996 = vmatprep.subr.bf16.mxu1 %v2995_v24  ;;  %v1874_v15 = vld [vmem:[%s4770_s4] sm:$0x3] }
 0x19e   : > { %1191 = vmatmul.mubr.bf16.gmra.mrb[28].mxu0 %v1004_v46  ;;  %v4621_v33 = vrot.slane %v1874_v15, %v4952_v7  ;;  %v4628_v32 = vrot.slane %v1874_v15, %v4953_v18 }
 0x19f   : > { %988 = vadd.xlane.f32.xlu1 %v987_v2  ;;  %2978 = vmatpush3.bf16.msra.mxu0 %v2977_v51 }
 0x1a0   : > { %2980 = vmatprep.subr.bf16.mxu0 %v2979_v61  ;;  %2998 = vmatpush3.bf16.msra.mxu1 %v2995_v24 }
 0x1a1   : > { %3000 = vmatprep.subr.bf16.mxu1 %v2999_v48 }
 0x1a3   : > { %2982 = vmatpush3.bf16.msra.mxu0 %v2981_v50  ;;  %v4633_v50 = vrot.slane %v1918_v31, %v4953_v18 }
 0x1a4   : > { %2984 = vmatprep.subr.bf16.mxu0 %v2983_v54  ;;  %3002 = vmatpush3.bf16.msra.mxu1 %v2999_v48 }
 0x1a5   : > { %3004 = vmatprep.subr.bf16.mxu1 %v3003_v35 }
 0x1a7   : > { %2986 = vmatpush3.bf16.msra.mxu0 %v2985_v60 }
 0x1a8   : > { %3006 = vmatpush3.bf16.msra.mxu1 %v3003_v35 }
 0x1a9   : > { %3008 = vmatprep.subr.bf16.mxu1 %v3007_v43 }
 0x1ac   : > { %3010 = vmatpush3.bf16.msra.mxu1 %v3007_v43 }
 0x1c9   : > { %v1619_v12 = vpop.xlane.xlu0 %1618 }
 0x1ca   : > { %3226 = vrcp.f32 %v1619_v12 }
 0x1d4   : > { %v3227_v56 = vpop.eup %3226 }
 0x1d6   : > { %v1622_v22 = vpop.xlane.xlu0 %1621 }
 0x1d7   : > { %3228 = vrcp.f32 %v1622_v22 }
 0x1da   : > { %v944_v19 = vpop.xlane.xlu1 %943 }
 0x1db   : > { %3230 = vrcp.f32 %v944_v19 }
 0x1de   : > { %v947_v36 = vpop.xlane.xlu1 %946 }
 0x1df   : > { %3232 = vrcp.f32 %v947_v36 }
 0x1e1   : > { %v3229_v41 = vpop.eup %3228 }
 0x1e2   : > { %v1625_v45 = vpop.xlane.xlu0 %1624 }
 0x1e3   : > { %3234 = vrcp.f32 %v1625_v45 }
 0x1e5   : > { %v950_v8 = vpop.xlane.xlu1 %949  ;;  %v3231_v51 = vpop.eup %3230 }
 0x1e6   : > { %v1628_v17 = vpop.xlane.xlu0 %1627  ;;  %3236 = vrcp.f32 %v950_v8 }
 0x1e7   : > { %3238 = vrcp.f32 %v1628_v17 }
 0x1e9   : > { %v953_v11 = vpop.xlane.xlu1 %952  ;;  %v3233_v37 = vpop.eup %3232 }
 0x1ea   : > { %v1631_v46 = vpop.xlane.xlu0 %1630  ;;  %3240 = vrcp.f32 %v953_v11 }
 0x1eb   : > { %3242 = vrcp.f32 %v1631_v46 }
 0x1ed   : > { %v3235_v24 = vpop.eup %3234 }
 0x1ee   : > { %v1634_v14 = vpop.xlane.xlu0 %1633 }
 0x1ef   : > { %3244 = vrcp.f32 %v1634_v14 }
 0x1f0   : > { %v3237_v48 = vpop.eup %3236 }
 0x1f1   : > { %v956_v39 = vpop.xlane.xlu1 %955  ;;  %v3239_v43 = vpop.eup %3238 }
 0x1f2   : > { %3246 = vrcp.f32 %v956_v39 }
 0x1f5   : > { %v959_v55 = vpop.xlane.xlu1 %958 }
 0x1f6   : > { %3248 = vrcp.f32 %v959_v55 }
 0x1f7   : > { %v1637_v62 = vpop.xlane.xlu0 %1636 }
 0x1f8   : > { %3250 = vrcp.f32 %v1637_v62 }
 0x1fb   : > { %v1640_v5 = vpop.xlane.xlu0 %1639 }
 0x1fc   : > { %3252 = vrcp.f32 %v1640_v5 }
 0x202   : > { %v4639_v22 = vpop.xlane.xlu1 %961 }
 0x203   : > { %3254 = vrcp.f32 %v4639_v22 }
 0x21d   : > { %v2739_v2 = vpop.f32.mrb[0].mxu1 }
 0x21e   : > { %v2740_v21 = vpop.f32.mrb[1].mxu1 }
 0x21f   : > { %v2741_v53 = vadd.f32 %v2740_v21, %v2739_v2  ;;  %v2742_v4 = vpop.f32.mrb[2].mxu1  ;;  %v3241_v2 = vpop.eup %3240 }
 0x220   : > { %v2743_v40 = vpop.f32.mrb[3].mxu1 }
 0x221   : > { %v1858_v42 = vmul.f32 %v3227_v56, %v2741_v53  ;;  %v2744_v57 = vadd.f32 %v2743_v40, %v2742_v4  ;;  %v2675_v1 = vpop.f32.mrb[0].mxu0  ;;  %v1643_v56 = vpop.xlane.xlu0 %1642 }
 0x222   : > { %v2676_v16 = vpop.f32.mrb[1].mxu0 }
 0x223   : > { %v1887_v9 = vmul.f32 %v4621_v33, %v1858_v42  ;;  %v1859_v30 = vmul.f32 %v3229_v41, %v2744_v57  ;;  %v2677_v3 = vadd.f32 %v2676_v16, %v2675_v1  ;;  %v2678_v49 = vpop.f32.mrb[2].mxu0  ;;  %v965_v1 = vpop.xlane.xlu1 %964 }
 0x224   : > { %v2679_v61 = vpop.f32.mrb[3].mxu0  ;;  %3256 = vrcp.f32 %v965_v1 }
 0x225   : > { %v1931_v38 = vadd.f32 %v4624_v47, %v1887_v9  ;;  %v1889_v20 = vmul.f32 %v4621_v33, %v1859_v30  ;;  %v1215_v23 = vmul.f32 %v3231_v51, %v2677_v3  ;;  %v2680_v29 = vadd.f32 %v2679_v61, %v2678_v49  ;;  %v3243_v30 = vpop.eup %3242 }
 0x226   : > { %3258 = vrcp.f32 %v1643_v56 }
 0x227   : > { %v1963_v27 = vmax.f32 %v1931_v38, 0.0  ;;  %v1886_v54 = vmul.f32 %v4628_v32, %v1215_v23  ;;  %v1216_v28 = vmul.f32 %v3233_v37, %v2680_v29  ;;  %v1933_v10 = vadd.f32 %v4624_v47, %v1889_v20  ;;  %v3245_v20 = vpop.eup %3244 }
 0x228   : > { %v2745_v60 = vpop.f32.mrb[4].mxu1  ;;  %v3247_v62 = vpop.eup %3246 }
 0x229   : > { %2090 = vmatprep.mubr.f32.mxu0 %v1963_v27  ;;  %v2746_v58 = vpop.f32.mrb[5].mxu1  ;;  %v1930_v52 = vadd.f32 %v4633_v50, %v1886_v54  ;;  %v1888_v13 = vmul.f32 %v4628_v32, %v1216_v28  ;;  %v1965_v45 = vmax.f32 %v1933_v10, 0.0  ;;  %v1646_v28 = vpop.xlane.xlu0 %1645 }
 0x22a   : > { %v2747_v0 = vadd.f32 %v2746_v58, %v2745_v60  ;;  %v2748_v44 = vpop.f32.mrb[6].mxu1  ;;  %3260 = vrcp.f32 %v1646_v28 }
 0x22b   : > { %v2749_v63 = vpop.f32.mrb[7].mxu1  ;;  %v1962_v26 = vmax.f32 %v1930_v52, 0.0  ;;  %v1932_v36 = vadd.f32 %v4633_v50, %v1888_v13 }
 0x22c   : > { %v2681_v6 = vpop.f32.mrb[4].mxu0  ;;  %v1860_v35 = vmul.f32 %v3235_v24, %v2747_v0  ;;  %v2750_v25 = vadd.f32 %v2749_v63, %v2748_v44  ;;  %v3249_v0 = vpop.eup %3248 }
 0x22d   : > { %v2682_v34 = vpop.f32.mrb[5].mxu0  ;;  %2091 = vmatmul.mubr.f32.vlgmr.msra.gmra.mrb[32].mxu0 %v1962_v26  ;;  %v1964_v11 = vmax.f32 %v1932_v36, 0.0  ;;  %v968_v44 = vpop.xlane.xlu1 %967 }
 0x22e   : > { %v2683_v59 = vadd.f32 %v2682_v34, %v2681_v6  ;;  %v2684_v12 = vpop.f32.mrb[6].mxu0  ;;  %v1891_v17 = vmul.f32 %v4621_v33, %v1860_v35  ;;  %v1861_v8 = vmul.f32 %v3239_v43, %v2750_v25  ;;  %2095 = vmatprep.mubr.f32.mxu0 %v1965_v45  ;;  %v1649_v43 = vpop.xlane.xlu0 %1648  ;;  %3262 = vrcp.f32 %v968_v44 }
 0x22f   : > { %v2685_v19 = vpop.f32.mrb[7].mxu0 }
 0x230   : > { %v1217_v46 = vmul.f32 %v3237_v48, %v2683_v59  ;;  %v2686_v15 = vadd.f32 %v2685_v19, %v2684_v12  ;;  %v1893_v21 = vmul.f32 %v4621_v33, %v1861_v8  ;;  %v2751_v7 = vpop.f32.mrb[8].mxu1  ;;  %v1935_v4 = vadd.f32 %v4624_v47, %v1891_v17  ;;  %v3251_v12 = vpop.eup %3250 }
 0x231   : > { %v2752_v40 = vpop.f32.mrb[9].mxu1  ;;  %2096 = vmatmul.mubr.f32.gmra.mrb[34].mxu0 %v1964_v11 }
 0x232   : > { %v1890_v31 = vmul.f32 %v4628_v32, %v1217_v46  ;;  %v1218_v53 = vmul.f32 %v3241_v2, %v2686_v15  ;;  %v2753_v42 = vadd.f32 %v2752_v40, %v2751_v7  ;;  %v2754_v57 = vpop.f32.mrb[10].mxu1  ;;  %v1967_v41 = vmax.f32 %v1935_v4, 0.0  ;;  %v971_v46 = vpop.xlane.xlu1 %970 }
 0x233   : > { %v2755_v39 = vpop.f32.mrb[11].mxu1  ;;  %v1937_v16 = vadd.f32 %v4624_v47, %v1893_v21  ;;  %v3253_v2 = vpop.eup %3252  ;;  %3264 = vrcp.f32 %v971_v46 }
 0x234   : > { %v1892_v14 = vmul.f32 %v4628_v32, %v1218_v53  ;;  %v1934_v9 = vadd.f32 %v4633_v50, %v1890_v31  ;;  %v1862_v3 = vmul.f32 %v3243_v30, %v2753_v42  ;;  %v2756_v18 = vadd.f32 %v2755_v39, %v2754_v57  ;;  %2100 = vmatprep.mubr.f32.mxu0 %v1967_v41  ;;  %v1652_v53 = vpop.xlane.xlu0 %1651  ;;  %v3255_v56 = vpop.eup %3254 }
 0x235   : > { %v1969_v23 = vmax.f32 %v1937_v16, 0.0  ;;  %v3257_v30 = vpop.eup %3256  ;;  %3266 = vrcp.f32 %v1649_v43 }
 0x236   : > { %v1966_v38 = vmax.f32 %v1934_v9, 0.0  ;;  %v1936_v51 = vadd.f32 %v4633_v50, %v1892_v14  ;;  %v1895_v29 = vmul.f32 %v4621_v33, %v1862_v3  ;;  %v1863_v27 = vmul.f32 %v3245_v20, %v2756_v18  ;;  %v974_v14 = vpop.xlane.xlu1 %973 }
 0x237   : > { %3268 = vrcp.f32 %v1652_v53 }
 0x238   : > { %v2687_v49 = vpop.f32.mrb[8].mxu0  ;;  %2101 = vmatmul.mubr.f32.gmra.mrb[36].mxu0 %v1966_v38  ;;  %v1968_v55 = vmax.f32 %v1936_v51, 0.0  ;;  %v1897_v58 = vmul.f32 %v4621_v33, %v1863_v27  ;;  %v1939_v13 = vadd.f32 %v4624_v47, %v1895_v29  ;;  %v1655_v1 = vpop.xlane.xlu0 %1654  ;;  %3270 = vrcp.f32 %v974_v14 }
 0x239   : > { %v2688_v61 = vpop.f32.mrb[9].mxu0  ;;  %2105 = vmatprep.mubr.f32.mxu0 %v1969_v23 }
 0x23a   : > { %v2689_v37 = vadd.f32 %v2688_v61, %v2687_v49  ;;  %v2690_v54 = vpop.f32.mrb[10].mxu0  ;;  %v1971_v34 = vmax.f32 %v1939_v13, 0.0  ;;  %v1941_v5 = vadd.f32 %v4624_v47, %v1897_v58  ;;  %v3259_v61 = vpop.eup %3258 }
 0x23b   : > { %v2691_v60 = vpop.f32.mrb[11].mxu0  ;;  %v977_v27 = vpop.xlane.xlu1 %976 }
 0x23c   : > { %v1219_v10 = vmul.f32 %v3247_v62, %v2689_v37  ;;  %v2692_v52 = vadd.f32 %v2691_v60, %v2690_v54  ;;  %2106 = vmatmul.mubr.f32.gmra.mrb[38].mxu0 %v1968_v55  ;;  %v1973_v15 = vmax.f32 %v1941_v5, 0.0  ;;  %v3261_v60 = vpop.eup %3260  ;;  %v1658_v58 = vpop.xlane.xlu0 %1657  ;;  %3272 = vrcp.f32 %v977_v27 }
 0x23d   : > { %2110 = vmatprep.mubr.f32.mxu0 %v1971_v34  ;;  %v3263_v34 = vpop.eup %3262  ;;  %3274 = vrcp.f32 %v1655_v1 }
 0x23e   : > { %v1894_v6 = vmul.f32 %v4628_v32, %v1219_v10  ;;  %v1220_v24 = vmul.f32 %v3249_v0, %v2692_v52  ;;  %v2757_v63 = vpop.f32.mrb[12].mxu1  ;;  %v3265_v43 = vpop.eup %3264  ;;  %3276 = vrcp.f32 %v1658_v58 }
 0x23f   : > { %v2758_v48 = vpop.f32.mrb[13].mxu1 }
 0x240   : > { %v1896_v26 = vmul.f32 %v4628_v32, %v1220_v24  ;;  %v2759_v35 = vadd.f32 %v2758_v48, %v2757_v63  ;;  %v2760_v25 = vpop.f32.mrb[14].mxu1  ;;  %v1938_v59 = vadd.f32 %v4633_v50, %v1894_v6  ;;  %v980_v48 = vpop.xlane.xlu1 %979 }
 0x241   : > { %v2761_v19 = vpop.f32.mrb[15].mxu1  ;;  %3278 = vrcp.f32 %v980_v48 }
 0x242   : > { %v1864_v45 = vmul.f32 %v3251_v12, %v2759_v35  ;;  %v2762_v36 = vadd.f32 %v2761_v19, %v2760_v25  ;;  %v1970_v17 = vmax.f32 %v1938_v59, 0.0  ;;  %v1940_v8 = vadd.f32 %v4633_v50, %v1896_v26 }
 0x244   : > { %v1899_v22 = vmul.f32 %v4621_v33, %v1864_v45  ;;  %2111 = vmatmul.mubr.f32.gmra.mrb[40].mxu0 %v1970_v17  ;;  %v1865_v11 = vmul.f32 %v3253_v2, %v2762_v36  ;;  %v1972_v21 = vmax.f32 %v1940_v8, 0.0  ;;  %v1661_v2 = vpop.xlane.xlu0 %1660  ;;  %v983_v14 = vpop.xlane.xlu1 %982 }
 0x245   : > { %2115 = vmatprep.mubr.f32.mxu0 %v1973_v15  ;;  %3280 = vrcp.f32 %v983_v14 }
 0x246   : > { %v1943_v31 = vadd.f32 %v4624_v47, %v1899_v22  ;;  %v1901_v41 = vmul.f32 %v4621_v33, %v1865_v11  ;;  %v3267_v22 = vpop.eup %3266  ;;  %3282 = vrcp.f32 %v1661_v2 }
 0x248   : > { %2116 = vmatmul.mubr.f32.gmra.mrb[42].mxu0 %v1972_v21  ;;  %v1975_v40 = vmax.f32 %v1943_v31, 0.0  ;;  %v1945_v29 = vadd.f32 %v4624_v47, %v1901_v41  ;;  %v3269_v31 = vpop.eup %3268 }
 0x249   : > { %v2693_v7 = vpop.f32.mrb[12].mxu0 }
 0x24a   : > { %v2694_v4 = vpop.f32.mrb[13].mxu0  ;;  %2120 = vmatprep.mubr.f32.mxu0 %v1975_v40  ;;  %v1977_v63 = vmax.f32 %v1945_v29, 0.0 }
 0x24b   : > { %v2695_v42 = vadd.f32 %v2694_v4, %v2693_v7  ;;  %v2696_v57 = vpop.f32.mrb[14].mxu0 }
 0x24c   : > { %v2697_v9 = vpop.f32.mrb[15].mxu0 }
 0x24d   : > { %v1221_v39 = vmul.f32 %v3255_v56, %v2695_v42  ;;  %v2698_v16 = vadd.f32 %v2697_v9, %v2696_v57  ;;  %v2763_v3 = vpop.f32.mrb[16].mxu1 }
 0x24e   : > { %v2764_v18 = vpop.f32.mrb[17].mxu1 }
 0x24f   : > { %v1898_v49 = vmul.f32 %v4628_v32, %v1221_v39  ;;  %v1222_v38 = vmul.f32 %v3257_v30, %v2698_v16  ;;  %v2765_v51 = vadd.f32 %v2764_v18, %v2763_v3  ;;  %v2766_v20 = vpop.f32.mrb[18].mxu1  ;;  %v3271_v3 = vpop.eup %3270 }
 0x250   : > { %v2767_v23 = vpop.f32.mrb[19].mxu1  ;;  %v3273_v29 = vpop.eup %3272 }
 0x251   : > { %v1900_v37 = vmul.f32 %v4628_v32, %v1222_v38  ;;  %v1866_v54 = vmul.f32 %v3259_v61, %v2765_v51  ;;  %v2768_v62 = vadd.f32 %v2767_v23, %v2766_v20  ;;  %v1942_v28 = vadd.f32 %v4633_v50, %v1898_v49  ;;  %v1664_v51 = vpop.xlane.xlu0 %1663 }
 0x252   : > { %3284 = vrcp.f32 %v1664_v51 }
 0x253   : > { %v2699_v55 = vpop.f32.mrb[16].mxu0  ;;  %v1903_v10 = vmul.f32 %v4621_v33, %v1866_v54  ;;  %v1867_v52 = vmul.f32 %v3261_v60, %v2768_v62  ;;  %v1974_v0 = vmax.f32 %v1942_v28, 0.0  ;;  %v1944_v44 = vadd.f32 %v4633_v50, %v1900_v37  ;;  %v986_v62 = vpop.xlane.xlu1 %985 }
 0x254   : > { %v2700_v13 = vpop.f32.mrb[17].mxu0  ;;  %3286 = vrcp.f32 %v986_v62 }
 0x255   : > { %v2701_v6 = vadd.f32 %v2700_v13, %v2699_v55  ;;  %v2702_v24 = vpop.f32.mrb[18].mxu0  ;;  %v1905_v5 = vmul.f32 %v4621_v33, %v1867_v52  ;;  %2121 = vmatmul.mubr.f32.gmra.mrb[44].mxu0 %v1974_v0  ;;  %v1947_v35 = vadd.f32 %v4624_v47, %v1903_v10  ;;  %v1976_v45 = vmax.f32 %v1944_v44, 0.0  ;;  %v3275_v10 = vpop.eup %3274 }
 0x256   : > { %v2703_v26 = vpop.f32.mrb[19].mxu0  ;;  %2125 = vmatprep.mubr.f32.mxu0 %v1977_v63  ;;  %v3277_v0 = vpop.eup %3276 }
 0x257   : > { %v1223_v25 = vmul.f32 %v3263_v34, %v2701_v6  ;;  %v2704_v59 = vadd.f32 %v2703_v26, %v2702_v24  ;;  %v1979_v36 = vmax.f32 %v1947_v35, 0.0  ;;  %v1949_v21 = vadd.f32 %v4624_v47, %v1905_v5  ;;  %v989_v48 = vpop.xlane.xlu1 %988 }
 0x258   : > { %3288 = vrcp.f32 %v989_v48 }
 0x259   : > { %v1902_v17 = vmul.f32 %v4628_v32, %v1223_v25  ;;  %v1224_v8 = vmul.f32 %v3265_v43, %v2704_v59  ;;  %2126 = vmatmul.mubr.f32.gmra.mrb[46].mxu0 %v1976_v45  ;;  %v1981_v16 = vmax.f32 %v1949_v21, 0.0  ;;  %v3279_v45 = vpop.eup %3278 }
 0x25a   : > { %v2769_v12 = vpop.f32.mrb[20].mxu1  ;;  %2130 = vmatprep.mubr.f32.mxu0 %v1979_v36  ;;  %v3281_v2 = vpop.eup %3280 }
 0x25b   : > { %v2770_v19 = vpop.f32.mrb[21].mxu1  ;;  %v1904_v53 = vmul.f32 %v4628_v32, %v1224_v8  ;;  %v1946_v40 = vadd.f32 %v4633_v50, %v1902_v17  ;;  %v3283_v14 = vpop.eup %3282 }
 0x25c   : > { %v2771_v46 = vadd.f32 %v2770_v19, %v2769_v12  ;;  %v2772_v15 = vpop.f32.mrb[22].mxu1 }
 0x25d   : > { %v2773_v11 = vpop.f32.mrb[23].mxu1  ;;  %v1978_v9 = vmax.f32 %v1946_v40, 0.0  ;;  %v1948_v30 = vadd.f32 %v4633_v50, %v1904_v53 }
 0x25e   : > { %v1868_v7 = vmul.f32 %v3267_v22, %v2771_v46  ;;  %v2774_v4 = vadd.f32 %v2773_v11, %v2772_v15  ;;  %v2705_v42 = vpop.f32.mrb[20].mxu0 }
 0x25f   : > { %v2706_v41 = vpop.f32.mrb[21].mxu0  ;;  %2131 = vmatmul.mubr.f32.gmra.mrb[48].mxu0 %v1978_v9  ;;  %v1980_v37 = vmax.f32 %v1948_v30, 0.0 }
 0x260   : > { %v1907_v57 = vmul.f32 %v4621_v33, %v1868_v7  ;;  %v1869_v56 = vmul.f32 %v3269_v31, %v2774_v4  ;;  %v2707_v1 = vadd.f32 %v2706_v41, %v2705_v42  ;;  %v2708_v39 = vpop.f32.mrb[22].mxu0  ;;  %2135 = vmatprep.mubr.f32.mxu0 %v1981_v16 }
 0x261   : > { %v2709_v49 = vpop.f32.mrb[23].mxu0 }
 0x262   : > { %v1909_v18 = vmul.f32 %v4621_v33, %v1869_v56  ;;  %v1951_v38 = vadd.f32 %v4624_v47, %v1907_v57  ;;  %v1225_v20 = vmul.f32 %v3271_v3, %v2707_v1  ;;  %v2710_v61 = vadd.f32 %v2709_v49, %v2708_v39  ;;  %v2775_v23 = vpop.f32.mrb[24].mxu1  ;;  %v3285_v56 = vpop.eup %3284 }
 0x263   : > { %v2776_v27 = vpop.f32.mrb[25].mxu1  ;;  %2136 = vmatmul.mubr.f32.gmra.mrb[50].mxu0 %v1980_v37 }
 0x264   : > { %v1983_v54 = vmax.f32 %v1951_v38, 0.0  ;;  %v1906_v28 = vmul.f32 %v4628_v32, %v1225_v20  ;;  %v1226_v60 = vmul.f32 %v3273_v29, %v2710_v61  ;;  %v2777_v55 = vadd.f32 %v2776_v27, %v2775_v23  ;;  %v2778_v58 = vpop.f32.mrb[26].mxu1  ;;  %v3287_v23 = vpop.eup %3286 }
 0x265   : > { %v2779_v52 = vpop.f32.mrb[27].mxu1  ;;  %v1953_v13 = vadd.f32 %v4624_v47, %v1909_v18 }
 0x266   : > { %v1908_v44 = vmul.f32 %v4628_v32, %v1226_v60  ;;  %v1870_v6 = vmul.f32 %v3275_v10, %v2777_v55  ;;  %2140 = vmatprep.mubr.f32.mxu0 %v1983_v54  ;;  %v2780_v24 = vadd.f32 %v2779_v52, %v2778_v58  ;;  %v1950_v63 = vadd.f32 %v4633_v50, %v1906_v28  ;;  %v3289_v28 = vpop.eup %3288 }
 0x267   : > { %v1985_v12 = vmax.f32 %v1953_v13, 0.0 }
 0x268   : > { %v2711_v34 = vpop.f32.mrb[24].mxu0  ;;  %v1911_v5 = vmul.f32 %v4621_v33, %v1870_v6  ;;  %v1871_v26 = vmul.f32 %v3277_v0, %v2780_v24  ;;  %v1982_v35 = vmax.f32 %v1950_v63, 0.0  ;;  %v1952_v59 = vadd.f32 %v4633_v50, %v1908_v44  ;;  %v2183_v63 = vld [vmem:[%s4773_s7 + $0x60] sm:$0xff] }
 0x269   : > { %v2712_v25 = vpop.f32.mrb[25].mxu0 }
 0x26a   : > { %v2713_v43 = vadd.f32 %v2712_v25, %v2711_v34  ;;  %v2714_v19 = vpop.f32.mrb[26].mxu0  ;;  %v1913_v36 = vmul.f32 %v4621_v33, %v1871_v26  ;;  %2141 = vmatmul.mubr.f32.gmra.mrb[52].mxu0 %v1982_v35  ;;  %v1955_v8 = vadd.f32 %v4624_v47, %v1911_v5  ;;  %v1984_v11 = vmax.f32 %v1952_v59, 0.0  ;;  %v2186_v34 = vld [vmem:[%s4773_s7 + $0x78] sm:$0xff] }
 0x26b   : > { %v2715_v17 = vpop.f32.mrb[27].mxu0  ;;  %2145 = vmatprep.mubr.f32.mxu0 %v1985_v12 }
 0x26c   : > { %v1227_v46 = vmul.f32 %v3279_v45, %v2713_v43  ;;  %v2716_v15 = vadd.f32 %v2715_v17, %v2714_v19  ;;  %v1987_v21 = vmax.f32 %v1955_v8, 0.0  ;;  %v1957_v57 = vadd.f32 %v4624_v47, %v1913_v36 }
 0x26d   : > { %v2781_v22 = vpop.f32.mrb[28].mxu1 }
 0x26e   : > { %v2782_v31 = vpop.f32.mrb[29].mxu1  ;;  %v1910_v53 = vmul.f32 %v4628_v32, %v1227_v46  ;;  %v1228_v7 = vmul.f32 %v3281_v2, %v2716_v15  ;;  %2146 = vmatmul.mubr.f32.gmra.mrb[54].mxu0 %v1984_v11  ;;  %v1989_v61 = vmax.f32 %v1957_v57, 0.0 }
 0x26f   : > { %v2783_v4 = vadd.f32 %v2782_v31, %v2781_v22  ;;  %v2784_v40 = vpop.f32.mrb[30].mxu1  ;;  %2150 = vmatprep.mubr.f32.mxu0 %v1987_v21 }
 0x270   : > { %v2785_v42 = vpop.f32.mrb[31].mxu1  ;;  %v1912_v41 = vmul.f32 %v4628_v32, %v1228_v7  ;;  %v1954_v1 = vadd.f32 %v4633_v50, %v1910_v53 }
 0x271   : > { %v1872_v9 = vmul.f32 %v3283_v14, %v2783_v4  ;;  %v2786_v30 = vadd.f32 %v2785_v42, %v2784_v40  ;;  %v2717_v39 = vpop.f32.mrb[28].mxu0 }
 0x272   : > { %v2718_v18 = vpop.f32.mrb[29].mxu0  ;;  %v1986_v49 = vmax.f32 %v1954_v1, 0.0  ;;  %v1956_v38 = vadd.f32 %v4633_v50, %v1912_v41 }
 0x273   : > { %v1915_v16 = vmul.f32 %v4621_v33, %v1872_v9  ;;  %v1873_v3 = vmul.f32 %v3285_v56, %v2786_v30  ;;  %v2719_v51 = vadd.f32 %v2718_v18, %v2717_v39  ;;  %v2720_v20 = vpop.f32.mrb[30].mxu0 }
 0x274   : > { %2151 = vmatmul.mubr.f32.gmra.mrb[56].mxu0 %v1986_v49  ;;  %v2721_v27 = vpop.f32.mrb[31].mxu0  ;;  %v1988_v60 = vmax.f32 %v1956_v38, 0.0 }
 0x275   : > { %v1917_v29 = vmul.f32 %v4621_v33, %v1873_v3  ;;  %v1959_v37 = vadd.f32 %v4624_v47, %v1915_v16  ;;  %v1229_v54 = vmul.f32 %v3287_v23, %v2719_v51  ;;  %v2722_v62 = vadd.f32 %v2721_v27, %v2720_v20  ;;  %2155 = vmatprep.mubr.f32.mxu0 %v1989_v61 }
 0x277   : > { %v1991_v55 = vmax.f32 %v1959_v37, 0.0  ;;  %v1914_v58 = vmul.f32 %v4628_v32, %v1229_v54  ;;  %v1230_v10 = vmul.f32 %v3289_v28, %v2722_v62  ;;  %v1961_v52 = vadd.f32 %v4624_v47, %v1917_v29  ;;  %v2184_v47 = vld [vmem:[%s4773_s7 + $0x68] sm:$0xff] }
 0x278   : > { %2156 = vmatmul.mubr.f32.gmra.mrb[58].mxu0 %v1988_v60 }
 0x279   : > { %v1916_v13 = vmul.f32 %v4628_v32, %v1230_v10  ;;  %2160 = vmatprep.mubr.f32.mxu0 %v1991_v55  ;;  %v1958_v33 = vadd.f32 %v4633_v50, %v1914_v58  ;;  %v1993_v6 = vmax.f32 %v1961_v52, 0.0  ;;  %v3011_v32 = vpack.c.bf16 %v2184_v47, %v2183_v63 }
 0x27b   : > { %v1990_v0 = vmax.f32 %v1958_v33, 0.0  ;;  %v1960_v44 = vadd.f32 %v4633_v50, %v1916_v13  ;;  %3012 = vmatprep.subr.bf16.mxu1 %v3011_v32  ;;  %v2185_v50 = vld [vmem:[%s4773_s7 + $0x70] sm:$0xff] }
 0x27c   : > { %3014 = vmatpush3.bf16.msra.mxu1 %v3011_v32  ;;  %v3015_v48 = vpack.c.bf16 %v2186_v34, %v2185_v50 }
 0x27d   : > { %2161 = vmatmul.mubr.f32.gmra.mrb[60].mxu0 %v1990_v0  ;;  %v1992_v24 = vmax.f32 %v1960_v44, 0.0 }
 0x27e   : > { %2165 = vmatprep.mubr.f32.mxu0 %v1993_v6  ;;  %3016 = vmatprep.subr.bf16.mxu1 %v3015_v48 }
 0x280   : > { %3018 = vmatpush3.bf16.msra.mxu1 %v3015_v48 }
 0x281   : > { %2166 = vmatmul.mubr.f32.gmra.mrb[62].mxu0 %v1992_v24 }
 0x300   : > { %v2819_v5 = vpop.f32.mrb[32].mxu0 }
 0x301   : > { %v2820_v26 = vpop.f32.mrb[33].mxu0 }
 0x302   : > { %v2821_v35 = vadd.f32 %v2820_v26, %v2819_v5 }
 0x304   : > { %v2822_v25 = vpop.f32.mrb[34].mxu0  ;;  %2931 = vmatprep.mubr.f32.mxu1 %v2821_v35 }
 0x305   : > { %v2823_v59 = vpop.f32.mrb[35].mxu0 }
 0x306   : > { %v2824_v12 = vadd.f32 %v2823_v59, %v2822_v25 }
 0x308   : > { %v2615_v43 = vpack.c.bf16 %v2824_v12, %v2821_v35  ;;  %2932 = vmatmul.mubr.f32.vlgmr.msra.gmra.mrb[32].mxu1 %v2824_v12 }
 0x30a   : > { %2616 = vst [vmem:[%s4715_s26] sm:$0xff] %v2615_v43  }
 0x30b   : > { %v2825_v19 = vpop.f32.mrb[36].mxu0 }
 0x30c   : > { %v2826_v45 = vpop.f32.mrb[37].mxu0 }
 0x30d   : > { %v2827_v36 = vadd.f32 %v2826_v45, %v2825_v19 }
 0x30f   : > { %v2828_v17 = vpop.f32.mrb[38].mxu0  ;;  %2934 = vmatprep.mubr.f32.mxu1 %v2827_v36 }
 0x310   : > { %v2829_v8 = vpop.f32.mrb[39].mxu0 }
 0x311   : > { %v2830_v46 = vadd.f32 %v2829_v8, %v2828_v17 }
 0x313   : > { %v2620_v15 = vpack.c.bf16 %v2830_v46, %v2827_v36  ;;  %2935 = vmatmul.mubr.f32.gmra.mrb[34].mxu1 %v2830_v46 }
 0x315   : > { %2652 = vst [vmem:[%s4715_s26 + $0x8] sm:$0xff] %v2620_v15  }
 0x317   : > { %v2831_v22 = vpop.f32.mrb[40].mxu0 }
 0x318   : > { %v2832_v2 = vpop.f32.mrb[41].mxu0 }
 0x319   : > { %v2833_v11 = vadd.f32 %v2832_v2, %v2831_v22 }
 0x31b   : > { %v2834_v21 = vpop.f32.mrb[42].mxu0  ;;  %2937 = vmatprep.mubr.f32.mxu1 %v2833_v11 }
 0x31c   : > { %v2835_v31 = vpop.f32.mrb[43].mxu0 }
 0x31d   : > { %v2836_v53 = vadd.f32 %v2835_v31, %v2834_v21 }
 0x31f   : > { %v2625_v7 = vpack.c.bf16 %v2836_v53, %v2833_v11  ;;  %2938 = vmatmul.mubr.f32.gmra.mrb[36].mxu1 %v2836_v53 }
 0x321   : > { %2653 = vst [vmem:[%s4715_s26 + $0x10] sm:$0xff] %v2625_v7  }
 0x328   : > { %v2837_v4 = vpop.f32.mrb[44].mxu0 }
 0x329   : > { %v2838_v40 = vpop.f32.mrb[45].mxu0 }
 0x32a   : > { %v2839_v14 = vadd.f32 %v2838_v40, %v2837_v4 }
 0x32c   : > { %v2840_v42 = vpop.f32.mrb[46].mxu0  ;;  %2940 = vmatprep.mubr.f32.mxu1 %v2839_v14 }
 0x32d   : > { %v2841_v57 = vpop.f32.mrb[47].mxu0 }
 0x32e   : > { %v2842_v56 = vadd.f32 %v2841_v57, %v2840_v42 }
 0x330   : > { %v2630_v41 = vpack.c.bf16 %v2842_v56, %v2839_v14  ;;  %2941 = vmatmul.mubr.f32.gmra.mrb[38].mxu1 %v2842_v56 }
 0x332   : > { %v2843_v9 = vpop.f32.mrb[48].mxu0  ;;  %2654 = vst [vmem:[%s4715_s26 + $0x18] sm:$0xff] %v2630_v41  }
 0x333   : > { %v2844_v30 = vpop.f32.mrb[49].mxu0 }
 0x334   : > { %v2845_v1 = vadd.f32 %v2844_v30, %v2843_v9 }
 0x336   : > { %v2846_v39 = vpop.f32.mrb[50].mxu0  ;;  %2943 = vmatprep.mubr.f32.mxu1 %v2845_v1 }
 0x337   : > { %v2847_v16 = vpop.f32.mrb[51].mxu0 }
 0x338   : > { %v2848_v3 = vadd.f32 %v2847_v16, %v2846_v39 }
 0x33a   : > { %v2635_v18 = vpack.c.bf16 %v2848_v3, %v2845_v1  ;;  %2944 = vmatmul.mubr.f32.gmra.mrb[40].mxu1 %v2848_v3 }
 0x33c   : > { %2655 = vst [vmem:[%s4715_s26 + $0x20] sm:$0xff] %v2635_v18  }
 0x33d   : > { %v2849_v49 = vpop.f32.mrb[52].mxu0 }
 0x33e   : > { %v2850_v38 = vpop.f32.mrb[53].mxu0 }
 0x33f   : > { %v2851_v51 = vadd.f32 %v2850_v38, %v2849_v49 }
 0x341   : > { %v2852_v20 = vpop.f32.mrb[54].mxu0  ;;  %2946 = vmatprep.mubr.f32.mxu1 %v2851_v51 }
 0x342   : > { %v2853_v61 = vpop.f32.mrb[55].mxu0 }
 0x343   : > { %v2854_v23 = vadd.f32 %v2853_v61, %v2852_v20 }
 0x345   : > { %v2640_v29 = vpack.c.bf16 %v2854_v23, %v2851_v51  ;;  %2947 = vmatmul.mubr.f32.gmra.mrb[42].mxu1 %v2854_v23 }
 0x347   : > { %v2855_v27 = vpop.f32.mrb[56].mxu0  ;;  %2656 = vst [vmem:[%s4715_s26 + $0x28] sm:$0xff] %v2640_v29  }
 0x348   : > { %v2856_v37 = vpop.f32.mrb[57].mxu0 }
 0x349   : > { %v2857_v54 = vadd.f32 %v2856_v37, %v2855_v27 }
 0x34b   : > { %v2858_v62 = vpop.f32.mrb[58].mxu0  ;;  %2949 = vmatprep.mubr.f32.mxu1 %v2857_v54 }
 0x34c   : > { %v2859_v28 = vpop.f32.mrb[59].mxu0 }
 0x34d   : > { %v2860_v60 = vadd.f32 %v2859_v28, %v2858_v62 }
 0x34f   : > { %v2645_v55 = vpack.c.bf16 %v2860_v60, %v2857_v54  ;;  %2950 = vmatmul.mubr.f32.gmra.mrb[44].mxu1 %v2860_v60 }
 0x350   : > { %v2861_v58 = vpop.f32.mrb[60].mxu0 }
 0x351   : > { %2657 = vst [vmem:[%s4715_s26 + $0x30] sm:$0xff] %v2645_v55   ;;  %v2862_v10 = vpop.f32.mrb[61].mxu0 }
 0x352   : > { %v2863_v52 = vadd.f32 %v2862_v10, %v2861_v58 }
 0x354   : > { %v2864_v13 = vpop.f32.mrb[62].mxu0  ;;  %2952 = vmatprep.mubr.f32.mxu1 %v2863_v52 }
 0x355   : > { %v2865_v33 = vpop.f32.mrb[63].mxu0 }
 0x356   : > { %v2866_v0 = vadd.f32 %v2865_v33, %v2864_v13 }
 0x358   : > { %v2650_v44 = vpack.c.bf16 %v2866_v0, %v2863_v52  ;;  %2953 = vmatmul.mubr.f32.gmra.mrb[46].mxu1 %v2866_v0 }
 0x35a   : > { %2658 = vst [vmem:[%s4715_s26 + $0x38] sm:$0xff] %v2650_v44  }
 0x3db   : > { %v2933_v6 = vpop.f32.mrb[32].mxu1 }
 0x3dc   : > { %2334 = vst.msk [vmem:[%s4729_s28 + $0x8] sm:$0xff] %vm2332_vm3, %v2933_v6  ;;  %v2253_v24 = vpop.f32.mrb[33].mxu1 }
 0x3dd   : > { %2333 = vst.msk [vmem:[%s4729_s28] sm:$0xff] %vm2332_vm3, %v2253_v24 }
 0x3e6   : > { %v2936_v63 = vpop.f32.mrb[34].mxu1 }
 0x3e7   : > { %2336 = vst.msk [vmem:[%s4729_s28 + $0x18] sm:$0xff] %vm2332_vm3, %v2936_v63  ;;  %v2263_v47 = vpop.f32.mrb[35].mxu1 }
 0x3e8   : > { %2335 = vst.msk [vmem:[%s4729_s28 + $0x10] sm:$0xff] %vm2332_vm3, %v2263_v47 }
 0x3f2   : > { %v2939_v32 = vpop.f32.mrb[36].mxu1 }
 0x3f3   : > { %2338 = vst.msk [vmem:[%s4729_s28 + $0x28] sm:$0xff] %vm2332_vm3, %v2939_v32  ;;  %v2273_v50 = vpop.f32.mrb[37].mxu1 }
 0x3f4   : > { %2337 = vst.msk [vmem:[%s4729_s28 + $0x20] sm:$0xff] %vm2332_vm3, %v2273_v50 }
 0x403   : > { %v2942_v34 = vpop.f32.mrb[38].mxu1 }
 0x404   : > { %2340 = vst.msk [vmem:[%s4729_s28 + $0x38] sm:$0xff] %vm2332_vm3, %v2942_v34  ;;  %v2283_v48 = vpop.f32.mrb[39].mxu1 }
 0x405   : > { %2339 = vst.msk [vmem:[%s4729_s28 + $0x30] sm:$0xff] %vm2332_vm3, %v2283_v48 }
 0x40d   : > { %v2945_v5 = vpop.f32.mrb[40].mxu1 }
 0x40e   : > { %2342 = vst.msk [vmem:[%s4729_s28 + $0x48] sm:$0xff] %vm2332_vm3, %v2945_v5  ;;  %v2293_v26 = vpop.f32.mrb[41].mxu1 }
 0x40f   : > { %2341 = vst.msk [vmem:[%s4729_s28 + $0x40] sm:$0xff] %vm2332_vm3, %v2293_v26 }
 0x418   : > { %v2948_v35 = vpop.f32.mrb[42].mxu1 }
 0x419   : > { %2344 = vst.msk [vmem:[%s4729_s28 + $0x58] sm:$0xff] %vm2332_vm3, %v2948_v35  ;;  %v2303_v25 = vpop.f32.mrb[43].mxu1 }
 0x41a   : > { %2343 = vst.msk [vmem:[%s4729_s28 + $0x50] sm:$0xff] %vm2332_vm3, %v2303_v25 }
 0x422   : > { %v2951_v59 = vpop.f32.mrb[44].mxu1 }
 0x423   : > { %2346 = vst.msk [vmem:[%s4729_s28 + $0x68] sm:$0xff] %vm2332_vm3, %v2951_v59  ;;  %v2313_v12 = vpop.f32.mrb[45].mxu1 }
 0x424   : > { %2345 = vst.msk [vmem:[%s4729_s28 + $0x60] sm:$0xff] %vm2332_vm3, %v2313_v12 }
 0x42b   : > { %v2954_v43 = vpop.f32.mrb[46].mxu1 }
 0x42c   : > { %2348 = vst.msk [vmem:[%s4729_s28 + $0x78] sm:$0xff] %vm2332_vm3, %v2954_v43  ;;  %v2323_v19 = vpop.f32.mrb[47].mxu1 }
 0x42d   : > { %2347 = vst.msk [vmem:[%s4729_s28 + $0x70] sm:$0xff] %vm2332_vm3, %v2323_v19 }
 0x42e PF: > { %s20_s30 = sadd.s32 1, %s3296_s30  }
 0x42f   : > { %p17_p4 = scmp.ge.s32.totalorder %s20_s30, 4  }
 0x431   :  { %19 = sbr.rel (!%p17_p4) target bundleno = 1 (0x1), region = 97 }

</bundles_post_ra>
